<compile_context>
chip_gen: v6e
topology: v6e:2x2x1
jax: 0.10.0
libtpu: 0.0.40
codegen_flags: <defaults>
</compile_context>

<pallas_src>
import functools

import numpy as np
import jax
import jax.numpy as jnp
from jax import lax
from jax.experimental import pallas as pl
from jax.experimental.pallas import tpu as pltpu

EPS = 1e-5


def _relu6(x):
    return jnp.minimum(jnp.maximum(x, 0.0), 6.0)


def _mbconv_kernel(x_ref, w_exp_ref, g0_ref, b0_ref, dwt_ref, g1_ref, b1_ref,
                   w_se1_ref, b_se1_ref, w_se2_ref, b_se2_ref,
                   w_proj_ref, g2_ref, b2_ref,
                   o_ref, pad_ref, *, n, h, w, ksize, use_residual):
    cexp = g0_ref.shape[-1]
    cout = g2_ref.shape[-1]
    p = ksize // 2
    wc = w * cexp
    inv_r = 1.0 / (n * h * w)
    inv_hw = 1.0 / (h * w)

    def fold_w(v, c):
        # (rows, w*c) -> (rows, c): sum the w lane-groups (per-channel fold).
        out = v[:, 0:c]
        for wi in range(1, w):
            out = out + v[:, wi * c:(wi + 1) * c]
        return out

    def rep_w(v):
        # (rows, c) -> (rows, w*c): replicate per-channel values across w.
        return jnp.concatenate([v] * w, axis=-1)

    def bn_scale_shift(s1, s2, gamma, beta):
        # single-pass training-mode BN folded into a lane-tiled scale/shift
        mean = s1 * inv_r
        var = s2 * inv_r - mean * mean
        scale = gamma * lax.rsqrt(var + EPS)
        shift = beta - mean * scale
        return rep_w(scale), rep_w(shift)

    # ---- 1x1 expand conv (block-diagonal bf16 MXU matmul) + BN0 + ReLU6 ----
    y = jnp.dot(x_ref[...].astype(jnp.bfloat16), w_exp_ref[...],
                preferred_element_type=jnp.float32)              # (N*H, W*Cexp)
    sc0, sh0 = bn_scale_shift(
        fold_w(jnp.sum(y, axis=0, keepdims=True), cexp),
        fold_w(jnp.sum(y * y, axis=0, keepdims=True), cexp),
        g0_ref[...], b0_ref[...])
    y = _relu6(y * sc0 + sh0)

    # ---- depthwise KxK conv, stride 1, SAME, in the width-fused layout ----
    # zero only the halo rows/columns of the padded scratch, then the interior
    if p:
        zrow = jnp.zeros((n, p, (w + 2 * p) * cexp), jnp.float32)
        pad_ref[:, pl.ds(0, p), :] = zrow
        pad_ref[:, pl.ds(h + p, p), :] = zrow
        zcol = jnp.zeros((n, h, p * cexp), jnp.float32)
        pad_ref[:, pl.ds(p, h), pl.ds(0, p * cexp)] = zcol
        pad_ref[:, pl.ds(p, h), pl.ds((w + p) * cexp, p * cexp)] = zcol
    pad_ref[:, pl.ds(p, h), pl.ds(p * cexp, wc)] = y.reshape(n, h, wc)

    dwt = dwt_ref[...]                     # (K*K, W*Cexp), pre-tiled host-side
    acc = jnp.zeros((n, h, wc), jnp.float32)
    for kh in range(ksize):
        for kw in range(ksize):
            idx = kh * ksize + kw
            tap = dwt[idx:idx + 1].reshape(1, 1, wc)
            acc = acc + pad_ref[:, pl.ds(kh, h), pl.ds(kw * cexp, wc)] * tap

    # ---- BN1 + ReLU6 (single fused pass) ----
    sc1, sh1 = bn_scale_shift(
        fold_w(jnp.sum(acc, axis=(0, 1))[None, :], cexp),
        fold_w(jnp.sum(acc * acc, axis=(0, 1))[None, :], cexp),
        g1_ref[...], b1_ref[...])
    y = _relu6(acc * sc1.reshape(1, 1, wc) + sh1.reshape(1, 1, wc))  # (n,h,wc)

    # ---- squeeze-and-excite: plain pooled reduction + broadcast multiply ----
    pool = fold_w(jnp.sum(y, axis=1), cexp) * inv_hw                 # (n, Cexp)
    s = jnp.dot(pool.astype(jnp.bfloat16), w_se1_ref[...],
                preferred_element_type=jnp.float32) + b_se1_ref[...]
    s = s * jax.nn.sigmoid(s)                                        # SiLU
    s = jnp.dot(s.astype(jnp.bfloat16), w_se2_ref[...],
                preferred_element_type=jnp.float32) + b_se2_ref[...]
    s = jax.nn.sigmoid(s)                                            # (n, Cexp)
    y = y * rep_w(s).reshape(n, 1, wc)                               # (n,h,wc)

    # ---- 1x1 project conv (block-diagonal bf16) + BN2 (+ residual) ----
    z = jnp.dot(y.reshape(n * h, wc).astype(jnp.bfloat16), w_proj_ref[...],
                preferred_element_type=jnp.float32)              # (N*H, W*Cout)
    sc2, sh2 = bn_scale_shift(
        fold_w(jnp.sum(z, axis=0, keepdims=True), cout),
        fold_w(jnp.sum(z * z, axis=0, keepdims=True), cout),
        g2_ref[...], b2_ref[...])
    z = z * sc2 + sh2
    if use_residual:
        z = z + x_ref[...]
    o_ref[...] = z                                           # lane-dense store


def mbconv_forward(x_nchw, params, *, kernel_size=3, stride=1, use_residual=True):
    assert stride == 1, "TODO(synk): stride > 1 depthwise not implemented"
    n, cin, h, w = x_nchw.shape
    (w_exp, g0, b0, w_dw, g1, b1,
     w_se1, b_se1, w_se2, b_se2, w_proj, g2, b2) = params
    cexp = w_exp.shape[1]
    cout = w_proj.shape[1]
    p = kernel_size // 2
    f32, bf16 = jnp.float32, jnp.bfloat16

    # Width-fused, lane-dense activation layout: rows = N*H, lanes = W*C.
    x_f = jnp.transpose(x_nchw, (0, 2, 3, 1)).reshape(n * h, w * cin).astype(f32)

    # Host-side weight preprocessing (tiny tensors, pure layout glue):
    #  * block-diagonal 1x1-conv weights so the MXU consumes / produces the
    #    width-fused layout directly (bf16 operands, f32 accumulation)
    #  * depthwise taps pre-tiled across W so the kernel loads them once
    eye_w = jnp.eye(w, dtype=f32)
    w_exp_bd = jnp.kron(eye_w, w_exp).astype(bf16)     # (W*Cin, W*Cexp)
    w_proj_bd = jnp.kron(eye_w, w_proj).astype(bf16)   # (W*Cexp, W*Cout)
    dw_tiled = jnp.tile(w_dw, (1, w)).astype(f32)      # (K*K, W*Cexp)

    # VMEM budget from the actual working set (x2 headroom), capped below
    # v7x's 64 MiB/TC.  TODO(synk): shapes beyond this need a row-tiled grid.
    est_bytes = 4 * (8 * n * h * w * cexp
                     + n * (h + 2 * p) * (w + 2 * p) * cexp
                     + 2 * n * h * w * (cin + cout))
    est_bytes += 2 * (w * cin * w * cexp + w * cexp * w * cout) \
        + 4 * kernel_size * kernel_size * w * cexp
    vmem_limit = int(min(max(2 * est_bytes, 16 * 2 ** 20), 48 * 2 ** 20))

    kernel = functools.partial(_mbconv_kernel, n=n, h=h, w=w,
                               ksize=kernel_size, use_residual=use_residual)
    vmem = pl.BlockSpec(memory_space=pltpu.MemorySpace.VMEM)
    out = pl.pallas_call(
        kernel,
        out_shape=jax.ShapeDtypeStruct((n * h, w * cout), jnp.float32),
        in_specs=[vmem] * 14,
        out_specs=vmem,
        scratch_shapes=[pltpu.VMEM((n, h + 2 * p, (w + 2 * p) * cexp), jnp.float32)],
        compiler_params=pltpu.CompilerParams(vmem_limit_bytes=vmem_limit),
    )(x_f, w_exp_bd, g0, b0, dw_tiled, g1, b1,
      w_se1.astype(bf16), b_se1, w_se2.astype(bf16), b_se2, w_proj_bd, g2, b2)

    return jnp.transpose(out.reshape(n, h, w, cout), (0, 3, 1, 2))


def mbconv_ref(x_nchw, params, *, kernel_size=3, use_residual=True):
    """Pure-JAX f32 reference (NHWC), mirrors the PyTorch forward semantics."""
    (w_exp, g0, b0, w_dw, g1, b1,
     w_se1, b_se1, w_se2, b_se2, w_proj, g2, b2) = params
    x = jnp.transpose(x_nchw, (0, 2, 3, 1))
    n, h, w, cin = x.shape
    cexp = w_exp.shape[1]

    def bn(t, g, b):
        mean = t.mean(axis=(0, 1, 2), keepdims=True)
        var = ((t - mean) ** 2).mean(axis=(0, 1, 2), keepdims=True)
        return (t - mean) * lax.rsqrt(var + EPS) * g.reshape(1, 1, 1, -1) + b.reshape(1, 1, 1, -1)

    y = jnp.einsum('nhwc,ck->nhwk', x, w_exp)
    y = jnp.clip(bn(y, g0, b0), 0.0, 6.0)
    p = kernel_size // 2
    yp = jnp.pad(y, ((0, 0), (p, p), (p, p), (0, 0)))
    dw = w_dw.reshape(kernel_size, kernel_size, cexp)
    acc = jnp.zeros_like(y)
    for kh in range(kernel_size):
        for kw in range(kernel_size):
            acc = acc + yp[:, kh:kh + h, kw:kw + w, :] * dw[kh, kw]
    y = jnp.clip(bn(acc, g1, b1), 0.0, 6.0)
    s = y.mean(axis=(1, 2))
    s = jax.nn.silu(s @ w_se1 + b_se1.reshape(-1))
    s = jax.nn.sigmoid(s @ w_se2 + b_se2.reshape(-1))
    y = y * s[:, None, None, :]
    z = jnp.einsum('nhwc,ck->nhwk', y, w_proj)
    z = bn(z, g2, b2)
    if use_residual:
        z = z + x
    return jnp.transpose(z, (0, 3, 1, 2))


if __name__ == "__main__":
    # MBConvBlock(in=8, out=8, expand_ratio=4, kernel_size=3, stride=1, se_ratio=0.25)
    N, Cin, H, W = 2, 8, 16, 16
    Cout = 8
    expand_ratio, kernel_size, stride, se_ratio = 4, 3, 1, 0.25
    Cexp = Cin * expand_ratio
    Cse = Cexp // int(1 / se_ratio)
    use_residual = (Cin == Cout) and (stride == 1)

    key = jax.random.PRNGKey(0)
    ks = jax.random.split(key, 16)
    f32 = jnp.float32
    params = (
        jax.random.normal(ks[0], (Cin, Cexp), f32) / np.sqrt(Cin),          # expand_conv.weight
        1.0 + 0.1 * jax.random.normal(ks[1], (1, Cexp), f32),               # bn0.gamma
        0.1 * jax.random.normal(ks[2], (1, Cexp), f32),                     # bn0.beta
        jax.random.normal(ks[3], (kernel_size * kernel_size, Cexp), f32) / kernel_size,  # depthwise.weight
        1.0 + 0.1 * jax.random.normal(ks[4], (1, Cexp), f32),               # bn1.gamma
        0.1 * jax.random.normal(ks[5], (1, Cexp), f32),                     # bn1.beta
        jax.random.normal(ks[6], (Cexp, Cse), f32) / np.sqrt(Cexp),         # se.fc1.weight
        0.1 * jax.random.normal(ks[7], (1, Cse), f32),                      # se.fc1.bias
        jax.random.normal(ks[8], (Cse, Cexp), f32) / np.sqrt(Cse),          # se.fc2.weight
        0.1 * jax.random.normal(ks[9], (1, Cexp), f32),                     # se.fc2.bias
        jax.random.normal(ks[10], (Cexp, Cout), f32) / np.sqrt(Cexp),       # project_conv.weight
        1.0 + 0.1 * jax.random.normal(ks[11], (1, Cout), f32),              # bn2.gamma
        0.1 * jax.random.normal(ks[12], (1, Cout), f32),                    # bn2.beta
    )

    x = jax.random.normal(ks[13], (N, Cin, H, W), f32)

    out = mbconv_forward(x, params, kernel_size=kernel_size, stride=stride,
                         use_residual=use_residual)
    out = jax.block_until_ready(out)
    assert out.shape == (N, Cout, H, W)

    ref = jax.block_until_ready(
        mbconv_ref(x, params, kernel_size=kernel_size, use_residual=use_residual))
    # slightly looser atol than the pure-f32 version: MXU operands are bf16
    np.testing.assert_allclose(np.asarray(out), np.asarray(ref),
                               rtol=5e-2, atol=7.5e-2)

    print("KERNEL_OK")
</pallas_src>

<mosaic_0001>
module attributes {stable_mosaic.version = 11 : i64} {
  func.func @_mbconv_kernel(%arg0: memref<32x128xf32, #tpu.memory_space<vmem>>, %arg1: memref<128x512xbf16, #tpu.memory_space<vmem>>, %arg2: memref<1x32xf32, #tpu.memory_space<vmem>>, %arg3: memref<1x32xf32, #tpu.memory_space<vmem>>, %arg4: memref<9x512xf32, #tpu.memory_space<vmem>>, %arg5: memref<1x32xf32, #tpu.memory_space<vmem>>, %arg6: memref<1x32xf32, #tpu.memory_space<vmem>>, %arg7: memref<32x8xbf16, #tpu.memory_space<vmem>>, %arg8: memref<1x8xf32, #tpu.memory_space<vmem>>, %arg9: memref<8x32xbf16, #tpu.memory_space<vmem>>, %arg10: memref<1x32xf32, #tpu.memory_space<vmem>>, %arg11: memref<512x128xbf16, #tpu.memory_space<vmem>>, %arg12: memref<1x8xf32, #tpu.memory_space<vmem>>, %arg13: memref<1x8xf32, #tpu.memory_space<vmem>>, %arg14: memref<32x128xf32, #tpu.memory_space<vmem>>, %arg15: memref<2x18x576xf32, #tpu.memory_space<vmem>>) attributes {dimension_semantics = [], scalar_prefetch = 0 : i64, scratch_operands = 1 : i64, tpu.core_type = #tpu.core_type<tc>} {
    %c0 = arith.constant 0 : index
    %c0_0 = arith.constant 0 : index
    %0 = vector.load %arg0[%c0, %c0_0] : memref<32x128xf32, #tpu.memory_space<vmem>>, vector<32x128xf32>
    %1 = arith.truncf %0 : vector<32x128xf32> to vector<32x128xbf16>
    %c0_1 = arith.constant 0 : index
    %c0_2 = arith.constant 0 : index
    %2 = vector.load %arg1[%c0_1, %c0_2] : memref<128x512xbf16, #tpu.memory_space<vmem>>, vector<128x512xbf16>
    %cst = arith.constant dense<0.000000e+00> : vector<32x512xf32>
    %3 = tpu.matmul %1, %2, %cst {dimension_numbers = #tpu.dot_dimension_numbers<[1], [0], [0], [1], [0, 0, 1, 1], [], []>} : vector<32x128xbf16>, vector<128x512xbf16>, vector<32x512xf32> -> vector<32x512xf32>
    %cst_3 = arith.constant dense<0.000000e+00> : vector<512xf32>
    %4 = vector.multi_reduction <add>, %3, %cst_3 [0] : vector<32x512xf32> to vector<512xf32>
    %5 = vector.shape_cast %4 : vector<512xf32> to vector<1x512xf32>
    %6 = vector.extract_strided_slice %5 {offsets = [0, 0], sizes = [1, 32], strides = [1, 1]} : vector<1x512xf32> to vector<1x32xf32>
    %7 = vector.extract_strided_slice %5 {offsets = [0, 32], sizes = [1, 32], strides = [1, 1]} : vector<1x512xf32> to vector<1x32xf32>
    %8 = arith.addf %6, %7 : vector<1x32xf32>
    %9 = vector.extract_strided_slice %5 {offsets = [0, 64], sizes = [1, 32], strides = [1, 1]} : vector<1x512xf32> to vector<1x32xf32>
    %10 = arith.addf %8, %9 : vector<1x32xf32>
    %11 = vector.extract_strided_slice %5 {offsets = [0, 96], sizes = [1, 32], strides = [1, 1]} : vector<1x512xf32> to vector<1x32xf32>
    %12 = arith.addf %10, %11 : vector<1x32xf32>
    %13 = vector.extract_strided_slice %5 {offsets = [0, 128], sizes = [1, 32], strides = [1, 1]} : vector<1x512xf32> to vector<1x32xf32>
    %14 = arith.addf %12, %13 : vector<1x32xf32>
    %15 = vector.extract_strided_slice %5 {offsets = [0, 160], sizes = [1, 32], strides = [1, 1]} : vector<1x512xf32> to vector<1x32xf32>
    %16 = arith.addf %14, %15 : vector<1x32xf32>
    %17 = vector.extract_strided_slice %5 {offsets = [0, 192], sizes = [1, 32], strides = [1, 1]} : vector<1x512xf32> to vector<1x32xf32>
    %18 = arith.addf %16, %17 : vector<1x32xf32>
    %19 = vector.extract_strided_slice %5 {offsets = [0, 224], sizes = [1, 32], strides = [1, 1]} : vector<1x512xf32> to vector<1x32xf32>
    %20 = arith.addf %18, %19 : vector<1x32xf32>
    %21 = vector.extract_strided_slice %5 {offsets = [0, 256], sizes = [1, 32], strides = [1, 1]} : vector<1x512xf32> to vector<1x32xf32>
    %22 = arith.addf %20, %21 : vector<1x32xf32>
    %23 = vector.extract_strided_slice %5 {offsets = [0, 288], sizes = [1, 32], strides = [1, 1]} : vector<1x512xf32> to vector<1x32xf32>
    %24 = arith.addf %22, %23 : vector<1x32xf32>
    %25 = vector.extract_strided_slice %5 {offsets = [0, 320], sizes = [1, 32], strides = [1, 1]} : vector<1x512xf32> to vector<1x32xf32>
    %26 = arith.addf %24, %25 : vector<1x32xf32>
    %27 = vector.extract_strided_slice %5 {offsets = [0, 352], sizes = [1, 32], strides = [1, 1]} : vector<1x512xf32> to vector<1x32xf32>
    %28 = arith.addf %26, %27 : vector<1x32xf32>
    %29 = vector.extract_strided_slice %5 {offsets = [0, 384], sizes = [1, 32], strides = [1, 1]} : vector<1x512xf32> to vector<1x32xf32>
    %30 = arith.addf %28, %29 : vector<1x32xf32>
    %31 = vector.extract_strided_slice %5 {offsets = [0, 416], sizes = [1, 32], strides = [1, 1]} : vector<1x512xf32> to vector<1x32xf32>
    %32 = arith.addf %30, %31 : vector<1x32xf32>
    %33 = vector.extract_strided_slice %5 {offsets = [0, 448], sizes = [1, 32], strides = [1, 1]} : vector<1x512xf32> to vector<1x32xf32>
    %34 = arith.addf %32, %33 : vector<1x32xf32>
    %35 = vector.extract_strided_slice %5 {offsets = [0, 480], sizes = [1, 32], strides = [1, 1]} : vector<1x512xf32> to vector<1x32xf32>
    %36 = arith.addf %34, %35 : vector<1x32xf32>
    %37 = arith.mulf %3, %3 : vector<32x512xf32>
    %cst_4 = arith.constant dense<0.000000e+00> : vector<512xf32>
    %38 = vector.multi_reduction <add>, %37, %cst_4 [0] : vector<32x512xf32> to vector<512xf32>
    %39 = vector.shape_cast %38 : vector<512xf32> to vector<1x512xf32>
    %40 = vector.extract_strided_slice %39 {offsets = [0, 0], sizes = [1, 32], strides = [1, 1]} : vector<1x512xf32> to vector<1x32xf32>
    %41 = vector.extract_strided_slice %39 {offsets = [0, 32], sizes = [1, 32], strides = [1, 1]} : vector<1x512xf32> to vector<1x32xf32>
    %42 = arith.addf %40, %41 : vector<1x32xf32>
    %43 = vector.extract_strided_slice %39 {offsets = [0, 64], sizes = [1, 32], strides = [1, 1]} : vector<1x512xf32> to vector<1x32xf32>
    %44 = arith.addf %42, %43 : vector<1x32xf32>
    %45 = vector.extract_strided_slice %39 {offsets = [0, 96], sizes = [1, 32], strides = [1, 1]} : vector<1x512xf32> to vector<1x32xf32>
    %46 = arith.addf %44, %45 : vector<1x32xf32>
    %47 = vector.extract_strided_slice %39 {offsets = [0, 128], sizes = [1, 32], strides = [1, 1]} : vector<1x512xf32> to vector<1x32xf32>
    %48 = arith.addf %46, %47 : vector<1x32xf32>
    %49 = vector.extract_strided_slice %39 {offsets = [0, 160], sizes = [1, 32], strides = [1, 1]} : vector<1x512xf32> to vector<1x32xf32>
    %50 = arith.addf %48, %49 : vector<1x32xf32>
    %51 = vector.extract_strided_slice %39 {offsets = [0, 192], sizes = [1, 32], strides = [1, 1]} : vector<1x512xf32> to vector<1x32xf32>
    %52 = arith.addf %50, %51 : vector<1x32xf32>
    %53 = vector.extract_strided_slice %39 {offsets = [0, 224], sizes = [1, 32], strides = [1, 1]} : vector<1x512xf32> to vector<1x32xf32>
    %54 = arith.addf %52, %53 : vector<1x32xf32>
    %55 = vector.extract_strided_slice %39 {offsets = [0, 256], sizes = [1, 32], strides = [1, 1]} : vector<1x512xf32> to vector<1x32xf32>
    %56 = arith.addf %54, %55 : vector<1x32xf32>
    %57 = vector.extract_strided_slice %39 {offsets = [0, 288], sizes = [1, 32], strides = [1, 1]} : vector<1x512xf32> to vector<1x32xf32>
    %58 = arith.addf %56, %57 : vector<1x32xf32>
    %59 = vector.extract_strided_slice %39 {offsets = [0, 320], sizes = [1, 32], strides = [1, 1]} : vector<1x512xf32> to vector<1x32xf32>
    %60 = arith.addf %58, %59 : vector<1x32xf32>
    %61 = vector.extract_strided_slice %39 {offsets = [0, 352], sizes = [1, 32], strides = [1, 1]} : vector<1x512xf32> to vector<1x32xf32>
    %62 = arith.addf %60, %61 : vector<1x32xf32>
    %63 = vector.extract_strided_slice %39 {offsets = [0, 384], sizes = [1, 32], strides = [1, 1]} : vector<1x512xf32> to vector<1x32xf32>
    %64 = arith.addf %62, %63 : vector<1x32xf32>
    %65 = vector.extract_strided_slice %39 {offsets = [0, 416], sizes = [1, 32], strides = [1, 1]} : vector<1x512xf32> to vector<1x32xf32>
    %66 = arith.addf %64, %65 : vector<1x32xf32>
    %67 = vector.extract_strided_slice %39 {offsets = [0, 448], sizes = [1, 32], strides = [1, 1]} : vector<1x512xf32> to vector<1x32xf32>
    %68 = arith.addf %66, %67 : vector<1x32xf32>
    %69 = vector.extract_strided_slice %39 {offsets = [0, 480], sizes = [1, 32], strides = [1, 1]} : vector<1x512xf32> to vector<1x32xf32>
    %70 = arith.addf %68, %69 : vector<1x32xf32>
    %c0_5 = arith.constant 0 : index
    %c0_6 = arith.constant 0 : index
    %71 = vector.load %arg2[%c0_5, %c0_6] : memref<1x32xf32, #tpu.memory_space<vmem>>, vector<1x32xf32>
    %c0_7 = arith.constant 0 : index
    %c0_8 = arith.constant 0 : index
    %72 = vector.load %arg3[%c0_7, %c0_8] : memref<1x32xf32, #tpu.memory_space<vmem>>, vector<1x32xf32>
    %cst_9 = arith.constant 0.001953125 : f32
    %73 = vector.broadcast %cst_9 : f32 to vector<1x32xf32>
    %74 = arith.mulf %36, %73 : vector<1x32xf32>
    %cst_10 = arith.constant 0.001953125 : f32
    %75 = vector.broadcast %cst_10 : f32 to vector<1x32xf32>
    %76 = arith.mulf %70, %75 : vector<1x32xf32>
    %77 = arith.mulf %74, %74 : vector<1x32xf32>
    %78 = arith.subf %76, %77 : vector<1x32xf32>
    %cst_11 = arith.constant 9.99999974E-6 : f32
    %79 = vector.broadcast %cst_11 : f32 to vector<1x32xf32>
    %80 = arith.addf %78, %79 : vector<1x32xf32>
    %81 = math.rsqrt %80 : vector<1x32xf32>
    %82 = arith.mulf %71, %81 : vector<1x32xf32>
    %83 = arith.mulf %74, %82 : vector<1x32xf32>
    %84 = arith.subf %72, %83 : vector<1x32xf32>
    %85 = tpu.concatenate %82, %82, %82, %82, %82, %82, %82, %82, %82, %82, %82, %82, %82, %82, %82, %82 in 1 : vector<1x32xf32>, vector<1x32xf32>, vector<1x32xf32>, vector<1x32xf32>, vector<1x32xf32>, vector<1x32xf32>, vector<1x32xf32>, vector<1x32xf32>, vector<1x32xf32>, vector<1x32xf32>, vector<1x32xf32>, vector<1x32xf32>, vector<1x32xf32>, vector<1x32xf32>, vector<1x32xf32>, vector<1x32xf32> -> vector<1x512xf32>
    %86 = tpu.concatenate %84, %84, %84, %84, %84, %84, %84, %84, %84, %84, %84, %84, %84, %84, %84, %84 in 1 : vector<1x32xf32>, vector<1x32xf32>, vector<1x32xf32>, vector<1x32xf32>, vector<1x32xf32>, vector<1x32xf32>, vector<1x32xf32>, vector<1x32xf32>, vector<1x32xf32>, vector<1x32xf32>, vector<1x32xf32>, vector<1x32xf32>, vector<1x32xf32>, vector<1x32xf32>, vector<1x32xf32>, vector<1x32xf32> -> vector<1x512xf32>
    %87 = vector.broadcast %85 : vector<1x512xf32> to vector<32x512xf32>
    %88 = arith.mulf %3, %87 : vector<32x512xf32>
    %89 = vector.broadcast %86 : vector<1x512xf32> to vector<32x512xf32>
    %90 = arith.addf %88, %89 : vector<32x512xf32>
    %cst_12 = arith.constant 0.000000e+00 : f32
    %91 = vector.broadcast %cst_12 : f32 to vector<32x512xf32>
    %92 = arith.maximumf %90, %91 : vector<32x512xf32>
    %cst_13 = arith.constant 6.000000e+00 : f32
    %93 = vector.broadcast %cst_13 : f32 to vector<32x512xf32>
    %94 = arith.minimumf %92, %93 : vector<32x512xf32>
    %cst_14 = arith.constant 0.000000e+00 : f32
    %95 = vector.broadcast %cst_14 : f32 to vector<2x1x576xf32>
    %c0_15 = arith.constant 0 : index
    %c0_16 = arith.constant 0 : index
    %c0_17 = arith.constant 0 : index
    %96 = vector.load %arg15[%c0_15, %c0_16, %c0_17] : memref<2x18x576xf32, #tpu.memory_space<vmem>>, vector<2x1x576xf32>
    tpu.vector_store %arg15[%c0_15, %c0_16, %c0_17], %95 {strides = array<i32>} : memref<2x18x576xf32, #tpu.memory_space<vmem>>, vector<2x1x576xf32>,
    %c0_18 = arith.constant 0 : index
    %c17 = arith.constant 17 : index
    %c0_19 = arith.constant 0 : index
    %97 = vector.load %arg15[%c0_18, %c17, %c0_19] : memref<2x18x576xf32, #tpu.memory_space<vmem>>, vector<2x1x576xf32>
    tpu.vector_store %arg15[%c0_18, %c17, %c0_19], %95 {strides = array<i32>} : memref<2x18x576xf32, #tpu.memory_space<vmem>>, vector<2x1x576xf32>,
    %cst_20 = arith.constant 0.000000e+00 : f32
    %98 = vector.broadcast %cst_20 : f32 to vector<2x16x32xf32>
    %c0_21 = arith.constant 0 : index
    %c1 = arith.constant 1 : index
    %c0_22 = arith.constant 0 : index
    %99 = vector.load %arg15[%c0_21, %c1, %c0_22] : memref<2x18x576xf32, #tpu.memory_space<vmem>>, vector<2x16x32xf32>
    tpu.vector_store %arg15[%c0_21, %c1, %c0_22], %98 {strides = array<i32>} : memref<2x18x576xf32, #tpu.memory_space<vmem>>, vector<2x16x32xf32>,
    %c0_23 = arith.constant 0 : index
    %c1_24 = arith.constant 1 : index
    %c544 = arith.constant 544 : index
    %100 = vector.load %arg15[%c0_23, %c1_24, %c544] : memref<2x18x576xf32, #tpu.memory_space<vmem>>, vector<2x16x32xf32>
    tpu.vector_store %arg15[%c0_23, %c1_24, %c544], %98 {strides = array<i32>} : memref<2x18x576xf32, #tpu.memory_space<vmem>>, vector<2x16x32xf32>,
    %101 = vector.shape_cast %94 : vector<32x512xf32> to vector<2x16x512xf32>
    %c0_25 = arith.constant 0 : index
    %c1_26 = arith.constant 1 : index
    %c32 = arith.constant 32 : index
    %102 = vector.load %arg15[%c0_25, %c1_26, %c32] : memref<2x18x576xf32, #tpu.memory_space<vmem>>, vector<2x16x512xf32>
    tpu.vector_store %arg15[%c0_25, %c1_26, %c32], %101 {strides = array<i32>} : memref<2x18x576xf32, #tpu.memory_space<vmem>>, vector<2x16x512xf32>,
    %c0_27 = arith.constant 0 : index
    %c0_28 = arith.constant 0 : index
    %103 = vector.load %arg4[%c0_27, %c0_28] : memref<9x512xf32, #tpu.memory_space<vmem>>, vector<9x512xf32>
    %cst_29 = arith.constant 0.000000e+00 : f32
    %104 = vector.broadcast %cst_29 : f32 to vector<2x16x512xf32>
    %105 = vector.extract_strided_slice %103 {offsets = [0, 0], sizes = [1, 512], strides = [1, 1]} : vector<9x512xf32> to vector<1x512xf32>
    %106 = vector.shape_cast %105 : vector<1x512xf32> to vector<1x1x512xf32>
    %c0_30 = arith.constant 0 : index
    %c0_31 = arith.constant 0 : index
    %c0_32 = arith.constant 0 : index
    %107 = vector.load %arg15[%c0_30, %c0_31, %c0_32] : memref<2x18x576xf32, #tpu.memory_space<vmem>>, vector<2x16x512xf32>
    %108 = vector.broadcast %106 : vector<1x1x512xf32> to vector<2x16x512xf32>
    %109 = arith.mulf %107, %108 : vector<2x16x512xf32>
    %110 = arith.addf %104, %109 : vector<2x16x512xf32>
    %111 = vector.extract_strided_slice %103 {offsets = [1, 0], sizes = [1, 512], strides = [1, 1]} : vector<9x512xf32> to vector<1x512xf32>
    %112 = vector.shape_cast %111 : vector<1x512xf32> to vector<1x1x512xf32>
    %c0_33 = arith.constant 0 : index
    %c0_34 = arith.constant 0 : index
    %c32_35 = arith.constant 32 : index
    %113 = vector.load %arg15[%c0_33, %c0_34, %c32_35] : memref<2x18x576xf32, #tpu.memory_space<vmem>>, vector<2x16x512xf32>
    %114 = vector.broadcast %112 : vector<1x1x512xf32> to vector<2x16x512xf32>
    %115 = arith.mulf %113, %114 : vector<2x16x512xf32>
    %116 = arith.addf %110, %115 : vector<2x16x512xf32>
    %117 = vector.extract_strided_slice %103 {offsets = [2, 0], sizes = [1, 512], strides = [1, 1]} : vector<9x512xf32> to vector<1x512xf32>
    %118 = vector.shape_cast %117 : vector<1x512xf32> to vector<1x1x512xf32>
    %c0_36 = arith.constant 0 : index
    %c0_37 = arith.constant 0 : index
    %c64 = arith.constant 64 : index
    %119 = vector.load %arg15[%c0_36, %c0_37, %c64] : memref<2x18x576xf32, #tpu.memory_space<vmem>>, vector<2x16x512xf32>
    %120 = vector.broadcast %118 : vector<1x1x512xf32> to vector<2x16x512xf32>
    %121 = arith.mulf %119, %120 : vector<2x16x512xf32>
    %122 = arith.addf %116, %121 : vector<2x16x512xf32>
    %123 = vector.extract_strided_slice %103 {offsets = [3, 0], sizes = [1, 512], strides = [1, 1]} : vector<9x512xf32> to vector<1x512xf32>
    %124 = vector.shape_cast %123 : vector<1x512xf32> to vector<1x1x512xf32>
    %c0_38 = arith.constant 0 : index
    %c1_39 = arith.constant 1 : index
    %c0_40 = arith.constant 0 : index
    %125 = vector.load %arg15[%c0_38, %c1_39, %c0_40] : memref<2x18x576xf32, #tpu.memory_space<vmem>>, vector<2x16x512xf32>
    %126 = vector.broadcast %124 : vector<1x1x512xf32> to vector<2x16x512xf32>
    %127 = arith.mulf %125, %126 : vector<2x16x512xf32>
    %128 = arith.addf %122, %127 : vector<2x16x512xf32>
    %129 = vector.extract_strided_slice %103 {offsets = [4, 0], sizes = [1, 512], strides = [1, 1]} : vector<9x512xf32> to vector<1x512xf32>
    %130 = vector.shape_cast %129 : vector<1x512xf32> to vector<1x1x512xf32>
    %c0_41 = arith.constant 0 : index
    %c1_42 = arith.constant 1 : index
    %c32_43 = arith.constant 32 : index
    %131 = vector.load %arg15[%c0_41, %c1_42, %c32_43] : memref<2x18x576xf32, #tpu.memory_space<vmem>>, vector<2x16x512xf32>
    %132 = vector.broadcast %130 : vector<1x1x512xf32> to vector<2x16x512xf32>
    %133 = arith.mulf %131, %132 : vector<2x16x512xf32>
    %134 = arith.addf %128, %133 : vector<2x16x512xf32>
    %135 = vector.extract_strided_slice %103 {offsets = [5, 0], sizes = [1, 512], strides = [1, 1]} : vector<9x512xf32> to vector<1x512xf32>
    %136 = vector.shape_cast %135 : vector<1x512xf32> to vector<1x1x512xf32>
    %c0_44 = arith.constant 0 : index
    %c1_45 = arith.constant 1 : index
    %c64_46 = arith.constant 64 : index
    %137 = vector.load %arg15[%c0_44, %c1_45, %c64_46] : memref<2x18x576xf32, #tpu.memory_space<vmem>>, vector<2x16x512xf32>
    %138 = vector.broadcast %136 : vector<1x1x512xf32> to vector<2x16x512xf32>
    %139 = arith.mulf %137, %138 : vector<2x16x512xf32>
    %140 = arith.addf %134, %139 : vector<2x16x512xf32>
    %141 = vector.extract_strided_slice %103 {offsets = [6, 0], sizes = [1, 512], strides = [1, 1]} : vector<9x512xf32> to vector<1x512xf32>
    %142 = vector.shape_cast %141 : vector<1x512xf32> to vector<1x1x512xf32>
    %c0_47 = arith.constant 0 : index
    %c2 = arith.constant 2 : index
    %c0_48 = arith.constant 0 : index
    %143 = vector.load %arg15[%c0_47, %c2, %c0_48] : memref<2x18x576xf32, #tpu.memory_space<vmem>>, vector<2x16x512xf32>
    %144 = vector.broadcast %142 : vector<1x1x512xf32> to vector<2x16x512xf32>
    %145 = arith.mulf %143, %144 : vector<2x16x512xf32>
    %146 = arith.addf %140, %145 : vector<2x16x512xf32>
    %147 = vector.extract_strided_slice %103 {offsets = [7, 0], sizes = [1, 512], strides = [1, 1]} : vector<9x512xf32> to vector<1x512xf32>
    %148 = vector.shape_cast %147 : vector<1x512xf32> to vector<1x1x512xf32>
    %c0_49 = arith.constant 0 : index
    %c2_50 = arith.constant 2 : index
    %c32_51 = arith.constant 32 : index
    %149 = vector.load %arg15[%c0_49, %c2_50, %c32_51] : memref<2x18x576xf32, #tpu.memory_space<vmem>>, vector<2x16x512xf32>
    %150 = vector.broadcast %148 : vector<1x1x512xf32> to vector<2x16x512xf32>
    %151 = arith.mulf %149, %150 : vector<2x16x512xf32>
    %152 = arith.addf %146, %151 : vector<2x16x512xf32>
    %153 = vector.extract_strided_slice %103 {offsets = [8, 0], sizes = [1, 512], strides = [1, 1]} : vector<9x512xf32> to vector<1x512xf32>
    %154 = vector.shape_cast %153 : vector<1x512xf32> to vector<1x1x512xf32>
    %c0_52 = arith.constant 0 : index
    %c2_53 = arith.constant 2 : index
    %c64_54 = arith.constant 64 : index
    %155 = vector.load %arg15[%c0_52, %c2_53, %c64_54] : memref<2x18x576xf32, #tpu.memory_space<vmem>>, vector<2x16x512xf32>
    %156 = vector.broadcast %154 : vector<1x1x512xf32> to vector<2x16x512xf32>
    %157 = arith.mulf %155, %156 : vector<2x16x512xf32>
    %158 = arith.addf %152, %157 : vector<2x16x512xf32>
    %cst_55 = arith.constant dense<0.000000e+00> : vector<512xf32>
    %159 = vector.multi_reduction <add>, %158, %cst_55 [0, 1] : vector<2x16x512xf32> to vector<512xf32>
    %160 = vector.shape_cast %159 : vector<512xf32> to vector<1x512xf32>
    %161 = vector.extract_strided_slice %160 {offsets = [0, 0], sizes = [1, 32], strides = [1, 1]} : vector<1x512xf32> to vector<1x32xf32>
    %162 = vector.extract_strided_slice %160 {offsets = [0, 32], sizes = [1, 32], strides = [1, 1]} : vector<1x512xf32> to vector<1x32xf32>
    %163 = arith.addf %161, %162 : vector<1x32xf32>
    %164 = vector.extract_strided_slice %160 {offsets = [0, 64], sizes = [1, 32], strides = [1, 1]} : vector<1x512xf32> to vector<1x32xf32>
    %165 = arith.addf %163, %164 : vector<1x32xf32>
    %166 = vector.extract_strided_slice %160 {offsets = [0, 96], sizes = [1, 32], strides = [1, 1]} : vector<1x512xf32> to vector<1x32xf32>
    %167 = arith.addf %165, %166 : vector<1x32xf32>
    %168 = vector.extract_strided_slice %160 {offsets = [0, 128], sizes = [1, 32], strides = [1, 1]} : vector<1x512xf32> to vector<1x32xf32>
    %169 = arith.addf %167, %168 : vector<1x32xf32>
    %170 = vector.extract_strided_slice %160 {offsets = [0, 160], sizes = [1, 32], strides = [1, 1]} : vector<1x512xf32> to vector<1x32xf32>
    %171 = arith.addf %169, %170 : vector<1x32xf32>
    %172 = vector.extract_strided_slice %160 {offsets = [0, 192], sizes = [1, 32], strides = [1, 1]} : vector<1x512xf32> to vector<1x32xf32>
    %173 = arith.addf %171, %172 : vector<1x32xf32>
    %174 = vector.extract_strided_slice %160 {offsets = [0, 224], sizes = [1, 32], strides = [1, 1]} : vector<1x512xf32> to vector<1x32xf32>
    %175 = arith.addf %173, %174 : vector<1x32xf32>
    %176 = vector.extract_strided_slice %160 {offsets = [0, 256], sizes = [1, 32], strides = [1, 1]} : vector<1x512xf32> to vector<1x32xf32>
    %177 = arith.addf %175, %176 : vector<1x32xf32>
    %178 = vector.extract_strided_slice %160 {offsets = [0, 288], sizes = [1, 32], strides = [1, 1]} : vector<1x512xf32> to vector<1x32xf32>
    %179 = arith.addf %177, %178 : vector<1x32xf32>
    %180 = vector.extract_strided_slice %160 {offsets = [0, 320], sizes = [1, 32], strides = [1, 1]} : vector<1x512xf32> to vector<1x32xf32>
    %181 = arith.addf %179, %180 : vector<1x32xf32>
    %182 = vector.extract_strided_slice %160 {offsets = [0, 352], sizes = [1, 32], strides = [1, 1]} : vector<1x512xf32> to vector<1x32xf32>
    %183 = arith.addf %181, %182 : vector<1x32xf32>
    %184 = vector.extract_strided_slice %160 {offsets = [0, 384], sizes = [1, 32], strides = [1, 1]} : vector<1x512xf32> to vector<1x32xf32>
    %185 = arith.addf %183, %184 : vector<1x32xf32>
    %186 = vector.extract_strided_slice %160 {offsets = [0, 416], sizes = [1, 32], strides = [1, 1]} : vector<1x512xf32> to vector<1x32xf32>
    %187 = arith.addf %185, %186 : vector<1x32xf32>
    %188 = vector.extract_strided_slice %160 {offsets = [0, 448], sizes = [1, 32], strides = [1, 1]} : vector<1x512xf32> to vector<1x32xf32>
    %189 = arith.addf %187, %188 : vector<1x32xf32>
    %190 = vector.extract_strided_slice %160 {offsets = [0, 480], sizes = [1, 32], strides = [1, 1]} : vector<1x512xf32> to vector<1x32xf32>
    %191 = arith.addf %189, %190 : vector<1x32xf32>
    %192 = arith.mulf %158, %158 : vector<2x16x512xf32>
    %cst_56 = arith.constant dense<0.000000e+00> : vector<512xf32>
    %193 = vector.multi_reduction <add>, %192, %cst_56 [0, 1] : vector<2x16x512xf32> to vector<512xf32>
    %194 = vector.shape_cast %193 : vector<512xf32> to vector<1x512xf32>
    %195 = vector.extract_strided_slice %194 {offsets = [0, 0], sizes = [1, 32], strides = [1, 1]} : vector<1x512xf32> to vector<1x32xf32>
    %196 = vector.extract_strided_slice %194 {offsets = [0, 32], sizes = [1, 32], strides = [1, 1]} : vector<1x512xf32> to vector<1x32xf32>
    %197 = arith.addf %195, %196 : vector<1x32xf32>
    %198 = vector.extract_strided_slice %194 {offsets = [0, 64], sizes = [1, 32], strides = [1, 1]} : vector<1x512xf32> to vector<1x32xf32>
    %199 = arith.addf %197, %198 : vector<1x32xf32>
    %200 = vector.extract_strided_slice %194 {offsets = [0, 96], sizes = [1, 32], strides = [1, 1]} : vector<1x512xf32> to vector<1x32xf32>
    %201 = arith.addf %199, %200 : vector<1x32xf32>
    %202 = vector.extract_strided_slice %194 {offsets = [0, 128], sizes = [1, 32], strides = [1, 1]} : vector<1x512xf32> to vector<1x32xf32>
    %203 = arith.addf %201, %202 : vector<1x32xf32>
    %204 = vector.extract_strided_slice %194 {offsets = [0, 160], sizes = [1, 32], strides = [1, 1]} : vector<1x512xf32> to vector<1x32xf32>
    %205 = arith.addf %203, %204 : vector<1x32xf32>
    %206 = vector.extract_strided_slice %194 {offsets = [0, 192], sizes = [1, 32], strides = [1, 1]} : vector<1x512xf32> to vector<1x32xf32>
    %207 = arith.addf %205, %206 : vector<1x32xf32>
    %208 = vector.extract_strided_slice %194 {offsets = [0, 224], sizes = [1, 32], strides = [1, 1]} : vector<1x512xf32> to vector<1x32xf32>
    %209 = arith.addf %207, %208 : vector<1x32xf32>
    %210 = vector.extract_strided_slice %194 {offsets = [0, 256], sizes = [1, 32], strides = [1, 1]} : vector<1x512xf32> to vector<1x32xf32>
    %211 = arith.addf %209, %210 : vector<1x32xf32>
    %212 = vector.extract_strided_slice %194 {offsets = [0, 288], sizes = [1, 32], strides = [1, 1]} : vector<1x512xf32> to vector<1x32xf32>
    %213 = arith.addf %211, %212 : vector<1x32xf32>
    %214 = vector.extract_strided_slice %194 {offsets = [0, 320], sizes = [1, 32], strides = [1, 1]} : vector<1x512xf32> to vector<1x32xf32>
    %215 = arith.addf %213, %214 : vector<1x32xf32>
    %216 = vector.extract_strided_slice %194 {offsets = [0, 352], sizes = [1, 32], strides = [1, 1]} : vector<1x512xf32> to vector<1x32xf32>
    %217 = arith.addf %215, %216 : vector<1x32xf32>
    %218 = vector.extract_strided_slice %194 {offsets = [0, 384], sizes = [1, 32], strides = [1, 1]} : vector<1x512xf32> to vector<1x32xf32>
    %219 = arith.addf %217, %218 : vector<1x32xf32>
    %220 = vector.extract_strided_slice %194 {offsets = [0, 416], sizes = [1, 32], strides = [1, 1]} : vector<1x512xf32> to vector<1x32xf32>
    %221 = arith.addf %219, %220 : vector<1x32xf32>
    %222 = vector.extract_strided_slice %194 {offsets = [0, 448], sizes = [1, 32], strides = [1, 1]} : vector<1x512xf32> to vector<1x32xf32>
    %223 = arith.addf %221, %222 : vector<1x32xf32>
    %224 = vector.extract_strided_slice %194 {offsets = [0, 480], sizes = [1, 32], strides = [1, 1]} : vector<1x512xf32> to vector<1x32xf32>
    %225 = arith.addf %223, %224 : vector<1x32xf32>
    %c0_57 = arith.constant 0 : index
    %c0_58 = arith.constant 0 : index
    %226 = vector.load %arg5[%c0_57, %c0_58] : memref<1x32xf32, #tpu.memory_space<vmem>>, vector<1x32xf32>
    %c0_59 = arith.constant 0 : index
    %c0_60 = arith.constant 0 : index
    %227 = vector.load %arg6[%c0_59, %c0_60] : memref<1x32xf32, #tpu.memory_space<vmem>>, vector<1x32xf32>
    %cst_61 = arith.constant 0.001953125 : f32
    %228 = vector.broadcast %cst_61 : f32 to vector<1x32xf32>
    %229 = arith.mulf %191, %228 : vector<1x32xf32>
    %cst_62 = arith.constant 0.001953125 : f32
    %230 = vector.broadcast %cst_62 : f32 to vector<1x32xf32>
    %231 = arith.mulf %225, %230 : vector<1x32xf32>
    %232 = arith.mulf %229, %229 : vector<1x32xf32>
    %233 = arith.subf %231, %232 : vector<1x32xf32>
    %cst_63 = arith.constant 9.99999974E-6 : f32
    %234 = vector.broadcast %cst_63 : f32 to vector<1x32xf32>
    %235 = arith.addf %233, %234 : vector<1x32xf32>
    %236 = math.rsqrt %235 : vector<1x32xf32>
    %237 = arith.mulf %226, %236 : vector<1x32xf32>
    %238 = arith.mulf %229, %237 : vector<1x32xf32>
    %239 = arith.subf %227, %238 : vector<1x32xf32>
    %240 = tpu.concatenate %237, %237, %237, %237, %237, %237, %237, %237, %237, %237, %237, %237, %237, %237, %237, %237 in 1 : vector<1x32xf32>, vector<1x32xf32>, vector<1x32xf32>, vector<1x32xf32>, vector<1x32xf32>, vector<1x32xf32>, vector<1x32xf32>, vector<1x32xf32>, vector<1x32xf32>, vector<1x32xf32>, vector<1x32xf32>, vector<1x32xf32>, vector<1x32xf32>, vector<1x32xf32>, vector<1x32xf32>, vector<1x32xf32> -> vector<1x512xf32>
    %241 = tpu.concatenate %239, %239, %239, %239, %239, %239, %239, %239, %239, %239, %239, %239, %239, %239, %239, %239 in 1 : vector<1x32xf32>, vector<1x32xf32>, vector<1x32xf32>, vector<1x32xf32>, vector<1x32xf32>, vector<1x32xf32>, vector<1x32xf32>, vector<1x32xf32>, vector<1x32xf32>, vector<1x32xf32>, vector<1x32xf32>, vector<1x32xf32>, vector<1x32xf32>, vector<1x32xf32>, vector<1x32xf32>, vector<1x32xf32> -> vector<1x512xf32>
    %242 = vector.shape_cast %240 : vector<1x512xf32> to vector<1x1x512xf32>
    %243 = vector.broadcast %242 : vector<1x1x512xf32> to vector<2x16x512xf32>
    %244 = arith.mulf %158, %243 : vector<2x16x512xf32>
    %245 = vector.shape_cast %241 : vector<1x512xf32> to vector<1x1x512xf32>
    %246 = vector.broadcast %245 : vector<1x1x512xf32> to vector<2x16x512xf32>
    %247 = arith.addf %244, %246 : vector<2x16x512xf32>
    %cst_64 = arith.constant 0.000000e+00 : f32
    %248 = vector.broadcast %cst_64 : f32 to vector<2x16x512xf32>
    %249 = arith.maximumf %247, %248 : vector<2x16x512xf32>
    %cst_65 = arith.constant 6.000000e+00 : f32
    %250 = vector.broadcast %cst_65 : f32 to vector<2x16x512xf32>
    %251 = arith.minimumf %249, %250 : vector<2x16x512xf32>
    %cst_66 = arith.constant dense<0.000000e+00> : vector<2x512xf32>
    %252 = vector.multi_reduction <add>, %251, %cst_66 [1] : vector<2x16x512xf32> to vector<2x512xf32>
    %253 = vector.extract_strided_slice %252 {offsets = [0, 0], sizes = [2, 32], strides = [1, 1]} : vector<2x512xf32> to vector<2x32xf32>
    %254 = vector.extract_strided_slice %252 {offsets = [0, 32], sizes = [2, 32], strides = [1, 1]} : vector<2x512xf32> to vector<2x32xf32>
    %255 = arith.addf %253, %254 : vector<2x32xf32>
    %256 = vector.extract_strided_slice %252 {offsets = [0, 64], sizes = [2, 32], strides = [1, 1]} : vector<2x512xf32> to vector<2x32xf32>
    %257 = arith.addf %255, %256 : vector<2x32xf32>
    %258 = vector.extract_strided_slice %252 {offsets = [0, 96], sizes = [2, 32], strides = [1, 1]} : vector<2x512xf32> to vector<2x32xf32>
    %259 = arith.addf %257, %258 : vector<2x32xf32>
    %260 = vector.extract_strided_slice %252 {offsets = [0, 128], sizes = [2, 32], strides = [1, 1]} : vector<2x512xf32> to vector<2x32xf32>
    %261 = arith.addf %259, %260 : vector<2x32xf32>
    %262 = vector.extract_strided_slice %252 {offsets = [0, 160], sizes = [2, 32], strides = [1, 1]} : vector<2x512xf32> to vector<2x32xf32>
    %263 = arith.addf %261, %262 : vector<2x32xf32>
    %264 = vector.extract_strided_slice %252 {offsets = [0, 192], sizes = [2, 32], strides = [1, 1]} : vector<2x512xf32> to vector<2x32xf32>
    %265 = arith.addf %263, %264 : vector<2x32xf32>
    %266 = vector.extract_strided_slice %252 {offsets = [0, 224], sizes = [2, 32], strides = [1, 1]} : vector<2x512xf32> to vector<2x32xf32>
    %267 = arith.addf %265, %266 : vector<2x32xf32>
    %268 = vector.extract_strided_slice %252 {offsets = [0, 256], sizes = [2, 32], strides = [1, 1]} : vector<2x512xf32> to vector<2x32xf32>
    %269 = arith.addf %267, %268 : vector<2x32xf32>
    %270 = vector.extract_strided_slice %252 {offsets = [0, 288], sizes = [2, 32], strides = [1, 1]} : vector<2x512xf32> to vector<2x32xf32>
    %271 = arith.addf %269, %270 : vector<2x32xf32>
    %272 = vector.extract_strided_slice %252 {offsets = [0, 320], sizes = [2, 32], strides = [1, 1]} : vector<2x512xf32> to vector<2x32xf32>
    %273 = arith.addf %271, %272 : vector<2x32xf32>
    %274 = vector.extract_strided_slice %252 {offsets = [0, 352], sizes = [2, 32], strides = [1, 1]} : vector<2x512xf32> to vector<2x32xf32>
    %275 = arith.addf %273, %274 : vector<2x32xf32>
    %276 = vector.extract_strided_slice %252 {offsets = [0, 384], sizes = [2, 32], strides = [1, 1]} : vector<2x512xf32> to vector<2x32xf32>
    %277 = arith.addf %275, %276 : vector<2x32xf32>
    %278 = vector.extract_strided_slice %252 {offsets = [0, 416], sizes = [2, 32], strides = [1, 1]} : vector<2x512xf32> to vector<2x32xf32>
    %279 = arith.addf %277, %278 : vector<2x32xf32>
    %280 = vector.extract_strided_slice %252 {offsets = [0, 448], sizes = [2, 32], strides = [1, 1]} : vector<2x512xf32> to vector<2x32xf32>
    %281 = arith.addf %279, %280 : vector<2x32xf32>
    %282 = vector.extract_strided_slice %252 {offsets = [0, 480], sizes = [2, 32], strides = [1, 1]} : vector<2x512xf32> to vector<2x32xf32>
    %283 = arith.addf %281, %282 : vector<2x32xf32>
    %cst_67 = arith.constant 3.906250e-03 : f32
    %284 = vector.broadcast %cst_67 : f32 to vector<2x32xf32>
    %285 = arith.mulf %283, %284 : vector<2x32xf32>
    %286 = arith.truncf %285 : vector<2x32xf32> to vector<2x32xbf16>
    %c0_68 = arith.constant 0 : index
    %c0_69 = arith.constant 0 : index
    %287 = vector.load %arg7[%c0_68, %c0_69] : memref<32x8xbf16, #tpu.memory_space<vmem>>, vector<32x8xbf16>
    %cst_70 = arith.constant dense<0.000000e+00> : vector<2x8xf32>
    %288 = tpu.matmul %286, %287, %cst_70 {dimension_numbers = #tpu.dot_dimension_numbers<[1], [0], [0], [1], [0, 0, 1, 1], [], []>} : vector<2x32xbf16>, vector<32x8xbf16>, vector<2x8xf32> -> vector<2x8xf32>
    %c0_71 = arith.constant 0 : index
    %c0_72 = arith.constant 0 : index
    %289 = vector.load %arg8[%c0_71, %c0_72] : memref<1x8xf32, #tpu.memory_space<vmem>>, vector<1x8xf32>
    %290 = vector.broadcast %289 : vector<1x8xf32> to vector<2x8xf32>
    %291 = arith.addf %288, %290 : vector<2x8xf32>
    %292 = arith.negf %291 : vector<2x8xf32>
    %293 = math.exp %292 : vector<2x8xf32>
    %cst_73 = arith.constant 1.000000e+00 : f32
    %294 = vector.broadcast %cst_73 : f32 to vector<2x8xf32>
    %295 = arith.addf %294, %293 : vector<2x8xf32>
    %296 = arith.divf %294, %295 : vector<2x8xf32>
    %297 = arith.mulf %291, %296 : vector<2x8xf32>
    %298 = arith.truncf %297 : vector<2x8xf32> to vector<2x8xbf16>
    %c0_74 = arith.constant 0 : index
    %c0_75 = arith.constant 0 : index
    %299 = vector.load %arg9[%c0_74, %c0_75] : memref<8x32xbf16, #tpu.memory_space<vmem>>, vector<8x32xbf16>
    %cst_76 = arith.constant dense<0.000000e+00> : vector<2x32xf32>
    %300 = tpu.matmul %298, %299, %cst_76 {dimension_numbers = #tpu.dot_dimension_numbers<[1], [0], [0], [1], [0, 0, 1, 1], [], []>} : vector<2x8xbf16>, vector<8x32xbf16>, vector<2x32xf32> -> vector<2x32xf32>
    %c0_77 = arith.constant 0 : index
    %c0_78 = arith.constant 0 : index
    %301 = vector.load %arg10[%c0_77, %c0_78] : memref<1x32xf32, #tpu.memory_space<vmem>>, vector<1x32xf32>
    %302 = vector.broadcast %301 : vector<1x32xf32> to vector<2x32xf32>
    %303 = arith.addf %300, %302 : vector<2x32xf32>
    %304 = arith.negf %303 : vector<2x32xf32>
    %305 = math.exp %304 : vector<2x32xf32>
    %cst_79 = arith.constant 1.000000e+00 : f32
    %306 = vector.broadcast %cst_79 : f32 to vector<2x32xf32>
    %307 = arith.addf %306, %305 : vector<2x32xf32>
    %308 = arith.divf %306, %307 : vector<2x32xf32>
    %309 = tpu.concatenate %308, %308, %308, %308, %308, %308, %308, %308, %308, %308, %308, %308, %308, %308, %308, %308 in 1 : vector<2x32xf32>, vector<2x32xf32>, vector<2x32xf32>, vector<2x32xf32>, vector<2x32xf32>, vector<2x32xf32>, vector<2x32xf32>, vector<2x32xf32>, vector<2x32xf32>, vector<2x32xf32>, vector<2x32xf32>, vector<2x32xf32>, vector<2x32xf32>, vector<2x32xf32>, vector<2x32xf32>, vector<2x32xf32> -> vector<2x512xf32>
    %310 = vector.shape_cast %309 : vector<2x512xf32> to vector<2x1x512xf32>
    %311 = vector.broadcast %310 : vector<2x1x512xf32> to vector<2x16x512xf32>
    %312 = arith.mulf %251, %311 : vector<2x16x512xf32>
    %313 = vector.shape_cast %312 : vector<2x16x512xf32> to vector<32x512xf32>
    %314 = arith.truncf %313 : vector<32x512xf32> to vector<32x512xbf16>
    %c0_80 = arith.constant 0 : index
    %c0_81 = arith.constant 0 : index
    %315 = vector.load %arg11[%c0_80, %c0_81] : memref<512x128xbf16, #tpu.memory_space<vmem>>, vector<512x128xbf16>
    %cst_82 = arith.constant dense<0.000000e+00> : vector<32x128xf32>
    %316 = tpu.matmul %314, %315, %cst_82 {dimension_numbers = #tpu.dot_dimension_numbers<[1], [0], [0], [1], [0, 0, 1, 1], [], []>} : vector<32x512xbf16>, vector<512x128xbf16>, vector<32x128xf32> -> vector<32x128xf32>
    %cst_83 = arith.constant dense<0.000000e+00> : vector<128xf32>
    %317 = vector.multi_reduction <add>, %316, %cst_83 [0] : vector<32x128xf32> to vector<128xf32>
    %318 = vector.shape_cast %317 : vector<128xf32> to vector<1x128xf32>
    %319 = vector.extract_strided_slice %318 {offsets = [0, 0], sizes = [1, 8], strides = [1, 1]} : vector<1x128xf32> to vector<1x8xf32>
    %320 = vector.extract_strided_slice %318 {offsets = [0, 8], sizes = [1, 8], strides = [1, 1]} : vector<1x128xf32> to vector<1x8xf32>
    %321 = arith.addf %319, %320 : vector<1x8xf32>
    %322 = vector.extract_strided_slice %318 {offsets = [0, 16], sizes = [1, 8], strides = [1, 1]} : vector<1x128xf32> to vector<1x8xf32>
    %323 = arith.addf %321, %322 : vector<1x8xf32>
    %324 = vector.extract_strided_slice %318 {offsets = [0, 24], sizes = [1, 8], strides = [1, 1]} : vector<1x128xf32> to vector<1x8xf32>
    %325 = arith.addf %323, %324 : vector<1x8xf32>
    %326 = vector.extract_strided_slice %318 {offsets = [0, 32], sizes = [1, 8], strides = [1, 1]} : vector<1x128xf32> to vector<1x8xf32>
    %327 = arith.addf %325, %326 : vector<1x8xf32>
    %328 = vector.extract_strided_slice %318 {offsets = [0, 40], sizes = [1, 8], strides = [1, 1]} : vector<1x128xf32> to vector<1x8xf32>
    %329 = arith.addf %327, %328 : vector<1x8xf32>
    %330 = vector.extract_strided_slice %318 {offsets = [0, 48], sizes = [1, 8], strides = [1, 1]} : vector<1x128xf32> to vector<1x8xf32>
    %331 = arith.addf %329, %330 : vector<1x8xf32>
    %332 = vector.extract_strided_slice %318 {offsets = [0, 56], sizes = [1, 8], strides = [1, 1]} : vector<1x128xf32> to vector<1x8xf32>
    %333 = arith.addf %331, %332 : vector<1x8xf32>
    %334 = vector.extract_strided_slice %318 {offsets = [0, 64], sizes = [1, 8], strides = [1, 1]} : vector<1x128xf32> to vector<1x8xf32>
    %335 = arith.addf %333, %334 : vector<1x8xf32>
    %336 = vector.extract_strided_slice %318 {offsets = [0, 72], sizes = [1, 8], strides = [1, 1]} : vector<1x128xf32> to vector<1x8xf32>
    %337 = arith.addf %335, %336 : vector<1x8xf32>
    %338 = vector.extract_strided_slice %318 {offsets = [0, 80], sizes = [1, 8], strides = [1, 1]} : vector<1x128xf32> to vector<1x8xf32>
    %339 = arith.addf %337, %338 : vector<1x8xf32>
    %340 = vector.extract_strided_slice %318 {offsets = [0, 88], sizes = [1, 8], strides = [1, 1]} : vector<1x128xf32> to vector<1x8xf32>
    %341 = arith.addf %339, %340 : vector<1x8xf32>
    %342 = vector.extract_strided_slice %318 {offsets = [0, 96], sizes = [1, 8], strides = [1, 1]} : vector<1x128xf32> to vector<1x8xf32>
    %343 = arith.addf %341, %342 : vector<1x8xf32>
    %344 = vector.extract_strided_slice %318 {offsets = [0, 104], sizes = [1, 8], strides = [1, 1]} : vector<1x128xf32> to vector<1x8xf32>
    %345 = arith.addf %343, %344 : vector<1x8xf32>
    %346 = vector.extract_strided_slice %318 {offsets = [0, 112], sizes = [1, 8], strides = [1, 1]} : vector<1x128xf32> to vector<1x8xf32>
    %347 = arith.addf %345, %346 : vector<1x8xf32>
    %348 = vector.extract_strided_slice %318 {offsets = [0, 120], sizes = [1, 8], strides = [1, 1]} : vector<1x128xf32> to vector<1x8xf32>
    %349 = arith.addf %347, %348 : vector<1x8xf32>
    %350 = arith.mulf %316, %316 : vector<32x128xf32>
    %cst_84 = arith.constant dense<0.000000e+00> : vector<128xf32>
    %351 = vector.multi_reduction <add>, %350, %cst_84 [0] : vector<32x128xf32> to vector<128xf32>
    %352 = vector.shape_cast %351 : vector<128xf32> to vector<1x128xf32>
    %353 = vector.extract_strided_slice %352 {offsets = [0, 0], sizes = [1, 8], strides = [1, 1]} : vector<1x128xf32> to vector<1x8xf32>
    %354 = vector.extract_strided_slice %352 {offsets = [0, 8], sizes = [1, 8], strides = [1, 1]} : vector<1x128xf32> to vector<1x8xf32>
    %355 = arith.addf %353, %354 : vector<1x8xf32>
    %356 = vector.extract_strided_slice %352 {offsets = [0, 16], sizes = [1, 8], strides = [1, 1]} : vector<1x128xf32> to vector<1x8xf32>
    %357 = arith.addf %355, %356 : vector<1x8xf32>
    %358 = vector.extract_strided_slice %352 {offsets = [0, 24], sizes = [1, 8], strides = [1, 1]} : vector<1x128xf32> to vector<1x8xf32>
    %359 = arith.addf %357, %358 : vector<1x8xf32>
    %360 = vector.extract_strided_slice %352 {offsets = [0, 32], sizes = [1, 8], strides = [1, 1]} : vector<1x128xf32> to vector<1x8xf32>
    %361 = arith.addf %359, %360 : vector<1x8xf32>
    %362 = vector.extract_strided_slice %352 {offsets = [0, 40], sizes = [1, 8], strides = [1, 1]} : vector<1x128xf32> to vector<1x8xf32>
    %363 = arith.addf %361, %362 : vector<1x8xf32>
    %364 = vector.extract_strided_slice %352 {offsets = [0, 48], sizes = [1, 8], strides = [1, 1]} : vector<1x128xf32> to vector<1x8xf32>
    %365 = arith.addf %363, %364 : vector<1x8xf32>
    %366 = vector.extract_strided_slice %352 {offsets = [0, 56], sizes = [1, 8], strides = [1, 1]} : vector<1x128xf32> to vector<1x8xf32>
    %367 = arith.addf %365, %366 : vector<1x8xf32>
    %368 = vector.extract_strided_slice %352 {offsets = [0, 64], sizes = [1, 8], strides = [1, 1]} : vector<1x128xf32> to vector<1x8xf32>
    %369 = arith.addf %367, %368 : vector<1x8xf32>
    %370 = vector.extract_strided_slice %352 {offsets = [0, 72], sizes = [1, 8], strides = [1, 1]} : vector<1x128xf32> to vector<1x8xf32>
    %371 = arith.addf %369, %370 : vector<1x8xf32>
    %372 = vector.extract_strided_slice %352 {offsets = [0, 80], sizes = [1, 8], strides = [1, 1]} : vector<1x128xf32> to vector<1x8xf32>
    %373 = arith.addf %371, %372 : vector<1x8xf32>
    %374 = vector.extract_strided_slice %352 {offsets = [0, 88], sizes = [1, 8], strides = [1, 1]} : vector<1x128xf32> to vector<1x8xf32>
    %375 = arith.addf %373, %374 : vector<1x8xf32>
    %376 = vector.extract_strided_slice %352 {offsets = [0, 96], sizes = [1, 8], strides = [1, 1]} : vector<1x128xf32> to vector<1x8xf32>
    %377 = arith.addf %375, %376 : vector<1x8xf32>
    %378 = vector.extract_strided_slice %352 {offsets = [0, 104], sizes = [1, 8], strides = [1, 1]} : vector<1x128xf32> to vector<1x8xf32>
    %379 = arith.addf %377, %378 : vector<1x8xf32>
    %380 = vector.extract_strided_slice %352 {offsets = [0, 112], sizes = [1, 8], strides = [1, 1]} : vector<1x128xf32> to vector<1x8xf32>
    %381 = arith.addf %379, %380 : vector<1x8xf32>
    %382 = vector.extract_strided_slice %352 {offsets = [0, 120], sizes = [1, 8], strides = [1, 1]} : vector<1x128xf32> to vector<1x8xf32>
    %383 = arith.addf %381, %382 : vector<1x8xf32>
    %c0_85 = arith.constant 0 : index
    %c0_86 = arith.constant 0 : index
    %384 = vector.load %arg12[%c0_85, %c0_86] : memref<1x8xf32, #tpu.memory_space<vmem>>, vector<1x8xf32>
    %c0_87 = arith.constant 0 : index
    %c0_88 = arith.constant 0 : index
    %385 = vector.load %arg13[%c0_87, %c0_88] : memref<1x8xf32, #tpu.memory_space<vmem>>, vector<1x8xf32>
    %cst_89 = arith.constant 0.001953125 : f32
    %386 = vector.broadcast %cst_89 : f32 to vector<1x8xf32>
    %387 = arith.mulf %349, %386 : vector<1x8xf32>
    %cst_90 = arith.constant 0.001953125 : f32
    %388 = vector.broadcast %cst_90 : f32 to vector<1x8xf32>
    %389 = arith.mulf %383, %388 : vector<1x8xf32>
    %390 = arith.mulf %387, %387 : vector<1x8xf32>
    %391 = arith.subf %389, %390 : vector<1x8xf32>
    %cst_91 = arith.constant 9.99999974E-6 : f32
    %392 = vector.broadcast %cst_91 : f32 to vector<1x8xf32>
    %393 = arith.addf %391, %392 : vector<1x8xf32>
    %394 = math.rsqrt %393 : vector<1x8xf32>
    %395 = arith.mulf %384, %394 : vector<1x8xf32>
    %396 = arith.mulf %387, %395 : vector<1x8xf32>
    %397 = arith.subf %385, %396 : vector<1x8xf32>
    %398 = tpu.concatenate %395, %395, %395, %395, %395, %395, %395, %395, %395, %395, %395, %395, %395, %395, %395, %395 in 1 : vector<1x8xf32>, vector<1x8xf32>, vector<1x8xf32>, vector<1x8xf32>, vector<1x8xf32>, vector<1x8xf32>, vector<1x8xf32>, vector<1x8xf32>, vector<1x8xf32>, vector<1x8xf32>, vector<1x8xf32>, vector<1x8xf32>, vector<1x8xf32>, vector<1x8xf32>, vector<1x8xf32>, vector<1x8xf32> -> vector<1x128xf32>
    %399 = tpu.concatenate %397, %397, %397, %397, %397, %397, %397, %397, %397, %397, %397, %397, %397, %397, %397, %397 in 1 : vector<1x8xf32>, vector<1x8xf32>, vector<1x8xf32>, vector<1x8xf32>, vector<1x8xf32>, vector<1x8xf32>, vector<1x8xf32>, vector<1x8xf32>, vector<1x8xf32>, vector<1x8xf32>, vector<1x8xf32>, vector<1x8xf32>, vector<1x8xf32>, vector<1x8xf32>, vector<1x8xf32>, vector<1x8xf32> -> vector<1x128xf32>
    %400 = vector.broadcast %398 : vector<1x128xf32> to vector<32x128xf32>
    %401 = arith.mulf %316, %400 : vector<32x128xf32>
    %402 = vector.broadcast %399 : vector<1x128xf32> to vector<32x128xf32>
    %403 = arith.addf %401, %402 : vector<32x128xf32>
    %c0_92 = arith.constant 0 : index
    %c0_93 = arith.constant 0 : index
    %404 = vector.load %arg0[%c0_92, %c0_93] : memref<32x128xf32, #tpu.memory_space<vmem>>, vector<32x128xf32>
    %405 = arith.addf %403, %404 : vector<32x128xf32>
    %c0_94 = arith.constant 0 : index
    %c0_95 = arith.constant 0 : index
    %406 = vector.load %arg14[%c0_94, %c0_95] : memref<32x128xf32, #tpu.memory_space<vmem>>, vector<32x128xf32>
    tpu.vector_store %arg14[%c0_94, %c0_95], %405 {strides = array<i32>} : memref<32x128xf32, #tpu.memory_space<vmem>>, vector<32x128xf32>,
    return
  }
}

</mosaic_0001>

<bundles_post_ra>
// kernel: tpu_custom_call.1
= control target key start
LH: loop header
LB: loop body
LE: loop exit
PB: predicated region body
PF: predicated region fallthrough
CT: control target
= control target key end

     0   :  { %19 = vsyncpa [#allocation4], 0  ;;  %s7195_s0 = inlined_call_operand.hbm [shape: f32[32,128], index: 0, kind: input, shape index: {}]   ;;  %s7196_s1 = inlined_call_operand.hbm [shape: bf16[128,512], index: 1, kind: input, shape index: {}]   ;;  %s7197_s2 = inlined_call_operand.vmem [shape: f32[1,32], index: 2, kind: input, shape index: {}]   ;;  %s7198_s3 = inlined_call_operand.vmem [shape: f32[1,32], index: 3, kind: input, shape index: {}]   ;;  %s7199_s4 = inlined_call_operand.hbm [shape: f32[9,512], index: 4, kind: input, shape index: {}]   ;;  %s7200_s5 = inlined_call_operand.vmem [shape: f32[1,32], index: 5, kind: input, shape index: {}]   ;;  %s7201_s6 = inlined_call_operand.vmem [shape: f32[1,32], index: 6, kind: input, shape index: {}]   ;;  %s7202_s7 = inlined_call_operand.vmem [shape: bf16[32,8], index: 7, kind: input, shape index: {}]   ;;  %s7203_s8 = inlined_call_operand.vmem [shape: f32[1,8], index: 8, kind: input, shape index: {}]   ;;  %s7204_s9 = inlined_call_operand.vmem [shape: bf16[8,32], index: 9, kind: input, shape index: {}]   ;;  %s7205_s10 = inlined_call_operand.vmem [shape: f32[1,32], index: 10, kind: input, shape index: {}]   ;;  %s7206_s11 = inlined_call_operand.hbm [shape: bf16[512,128], index: 11, kind: input, shape index: {}]   ;;  %s7207_s12 = inlined_call_operand.vmem [shape: f32[1,8], index: 12, kind: input, shape index: {}]   ;;  %s7208_s13 = inlined_call_operand.vmem [shape: f32[1,8], index: 13, kind: input, shape index: {}]   ;;  %s7209_s14 = inlined_call_operand.hbm [shape: f32[32,128], index: 14, kind: output, shape index: {}]  }
   0x1   :  { %20 = vsyncpa [#allocation7], 0 }
   0x2   :  { %21 = vsyncpa [#allocation10], 0 }
   0x3   :  { %22 = vsyncpa [#allocation5], 0  ;;  %s4419_s29 = smov [#allocation6]  }
   0x4   :  { %s40_s30 = sshll.u32 %s4419_s29, 4  ;;  %s41_s30 = int_to_ptr.vmem [resolvable:$true] %s40_s30 }
   0x5   :  { %s4319_s15 = scalar_lea.vmem %s41_s30, 4096  ;;  %p4324_p1 = scmp.lt.s32.totalorder %s41_s30, %s41_s30 }
   0x6   :  { %p4320_p0 = scmp.ne.s32.totalorder %s41_s30, %s4319_s15  ;;  %p4325_p2 = scmp.lt.s32.totalorder %s4319_s15, %s4319_s15 }
   0x8   :  { %p4326_p3 = por %p4325_p2, %p4324_p1 }
   0xa   :  { %p4327_p4 = pnand %p4326_p3, %p4320_p0 }
   0xc   :  { %4330 = shalt.err (!%p4327_p4)
}
   0xd   :  { %s4420_s16 = smov 256   ;;  %s4421_s17 = smov 16  }
   0xe   :  { %46 = dma.hbm_to_vmem [thread:$0]  %s7196_s1, 4096, %s41_s30, [#allocation7], %s4420_s16, %s4420_s16, %s4421_s17  }
   0xf   :  { %s4422_s20 = smov [#allocation3]  }
  0x10   :  { %s28_s21 = sshll.u32 %s4422_s20, 4  ;;  %s29_s21 = int_to_ptr.vmem [resolvable:$true] %s28_s21 }
  0x11   :  { %s4339_s22 = scalar_lea.vmem %s29_s21, 512  ;;  %p4344_p6 = scmp.lt.s32.totalorder %s29_s21, %s29_s21 }
  0x12   :  { %p4340_p5 = scmp.ne.s32.totalorder %s29_s21, %s4339_s22  ;;  %p4345_p7 = scmp.lt.s32.totalorder %s4339_s22, %s4339_s22 }
  0x14   :  { %p4346_p8 = por %p4345_p7, %p4344_p6 }
  0x16   :  { %p4347_p9 = pnand %p4346_p8, %p4340_p5 }
  0x18   :  { %4350 = shalt.err (!%p4347_p9)
}
  0x19   :  { %s4423_s23 = smov 128   ;;  %s4424_s24 = smov 8  }
  0x1a   :  { %34 = dma.hbm_to_vmem [thread:$0]  %s7195_s0, 512, %s29_s21, [#allocation4], %s4423_s23, %s4423_s23, %s4424_s24  }
  0x1b   :  { %s4425_s1 = smov [#allocation8]  }
  0x1c   :  { %s56_s27 = sshll.u32 %s4425_s1, 4  ;;  %s57_s27 = int_to_ptr.vmem [resolvable:$true] %s56_s27 }
  0x1d   :  { %s4359_s28 = scalar_lea.vmem %s57_s27, 1024  ;;  %p4364_p11 = scmp.lt.s32.totalorder %s57_s27, %s57_s27 }
  0x1e   :  { %p4360_p10 = scmp.ne.s32.totalorder %s57_s27, %s4359_s28  ;;  %p4365_p12 = scmp.lt.s32.totalorder %s4359_s28, %s4359_s28 }
  0x20   :  { %p4366_p13 = por %p4365_p12, %p4364_p11 }
  0x22   :  { %p4367_p0 = pnand %p4366_p13, %p4360_p10 }
  0x24   :  { %4370 = shalt.err (!%p4367_p0)
}
  0x25   :  { %s4426_s29 = smov 512   ;;  %s4427_s30 = smov 32  }
  0x26   :  { %62 = dma.hbm_to_vmem [thread:$0]  %s7199_s4, 1024, %s57_s27, [#allocation7], %s4426_s29, %s4426_s29, %s4427_s30  }
  0x27   :  { %s4428_s18 = smov [#allocation9]  }
  0x28   :  { %s80_s19 = sshll.u32 %s4428_s18, 4  ;;  %s81_s19 = int_to_ptr.vmem [resolvable:$true] %s80_s19 }
  0x29   :  { %s4379_s0 = scalar_lea.vmem %s81_s19, 4096  ;;  %p4384_p2 = scmp.lt.s32.totalorder %s81_s19, %s81_s19 }
  0x2a   :  { %p4380_p1 = scmp.ne.s32.totalorder %s81_s19, %s4379_s0  ;;  %p4385_p3 = scmp.lt.s32.totalorder %s4379_s0, %s4379_s0 }
  0x2c   :  { %p4386_p4 = por %p4385_p3, %p4384_p2 }
  0x2e   :  { %p4387_p5 = pnand %p4386_p4, %p4380_p1 }
  0x30   :  { %4390 = shalt.err (!%p4387_p5)
}
  0x31   :  { %s4429_s20 = smov 64   ;;  %s4430_s21 = smov 4  }
  0x32   :  { %86 = dma.hbm_to_vmem [thread:$0]  %s7206_s11, 4096, %s81_s19, [#allocation10], %s4429_s20, %s4429_s20, %s4430_s21  }
  0x33   :  { %4411 = dma.done.wait [#allocation4], 512  }
  0x34   :  { %4412 = vsyncadd [#allocation4], 4294966784 }
  0x35   :  { %4413 = dma.done.wait [#allocation7], 5120  }
  0x36   :  { %4414 = vsyncadd [#allocation7], 4294962176 }
  0x37   :  { %4415 = dma.done.wait [#allocation10], 4096  }
  0x38   :  { %4416 = vsyncadd [#allocation10], 4294963200  ;;  %v4431_v0 = vmov 0   ;;  %v4189_v1 = vld [vmem:[#allocation6 + $0xe4] ss:$16 sps:$4 sm:$0xff]   ;;  %v7210_v16 = vlaneseq  ;;  %v929_v37 = vld [vmem:[#allocation8 + $0x8] sm:$0xff] }
  0x39   :  { %334 = vmatprep.mubr.bf16.mxu0 %v4431_v0  ;;  %387 = vmatprep.mubr.bf16.mxu1 %v4431_v0  ;;  %v4191_v2 = vld [vmem:[#allocation6 + $0xec] ss:$16 sps:$4 sm:$0xff]   ;;  %v4193_v3 = vld [vmem:[#allocation6 + $0xe0] ss:$16 sps:$4 sm:$0xff]   ;;  %v4194_v4 = vld [vmem:[#allocation6 + $0xe8] ss:$16 sps:$4 sm:$0xff]  }
  0x3a   :  { %302 = vmatprep.subr.bf16.mxu0 %v4189_v1  ;;  %355 = vmatprep.subr.bf16.mxu1 %v4191_v2  ;;  %v4195_v5 = vld [vmem:[#allocation6 + $0xc4] ss:$16 sps:$4 sm:$0xff]   ;;  %v4197_v6 = vld [vmem:[#allocation6 + $0xcc] ss:$16 sps:$4 sm:$0xff]   ;;  %v4199_v7 = vld [vmem:[#allocation6 + $0xc0] ss:$16 sps:$4 sm:$0xff]  }
  0x3b   :  { %303 = vmatpush1.bf16.msra.mxu0 %v4193_v3  ;;  %356 = vmatpush1.bf16.msra.mxu1 %v4194_v4  ;;  %v4200_v8 = vld [vmem:[#allocation6 + $0xc8] ss:$16 sps:$4 sm:$0xff]   ;;  %v4201_v9 = vld [vmem:[#allocation6 + $0xa4] ss:$16 sps:$4 sm:$0xff]   ;;  %v4203_v10 = vld [vmem:[#allocation6 + $0xac] ss:$16 sps:$4 sm:$0xff]  }
  0x3c   :  { %304 = vmatprep.subr.bf16.mxu0 %v4195_v5  ;;  %357 = vmatprep.subr.bf16.mxu1 %v4197_v6  ;;  %v4205_v11 = vld [vmem:[#allocation6 + $0xa0] ss:$16 sps:$4 sm:$0xff]   ;;  %v4206_v12 = vld [vmem:[#allocation6 + $0xa8] ss:$16 sps:$4 sm:$0xff]   ;;  %v4207_v13 = vld [vmem:[#allocation6 + $0x84] ss:$16 sps:$4 sm:$0xff]  }
  0x3d   :  { %v4209_v14 = vld [vmem:[#allocation6 + $0x8c] ss:$16 sps:$4 sm:$0xff]   ;;  %v4211_v15 = vld [vmem:[#allocation6 + $0x80] ss:$16 sps:$4 sm:$0xff]   ;;  %v4212_v17 = vld [vmem:[#allocation6 + $0x88] ss:$16 sps:$4 sm:$0xff]  }
  0x3e   :  { %v4213_v18 = vld [vmem:[#allocation6 + $0x64] ss:$16 sps:$4 sm:$0xff]   ;;  %v4215_v19 = vld [vmem:[#allocation6 + $0x6c] ss:$16 sps:$4 sm:$0xff]   ;;  %v4217_v20 = vld [vmem:[#allocation6 + $0x60] ss:$16 sps:$4 sm:$0xff]  }
  0x3f   :  { %305 = vmatpush1.bf16.msra.mxu0 %v4199_v7  ;;  %358 = vmatpush1.bf16.msra.mxu1 %v4200_v8  ;;  %v4218_v21 = vld [vmem:[#allocation6 + $0x68] ss:$16 sps:$4 sm:$0xff]   ;;  %v4544_v22 = vshrl.u32 %v7210_v16, 7  ;;  %v4219_v23 = vld [vmem:[#allocation6 + $0x44] ss:$16 sps:$4 sm:$0xff]   ;;  %s4432_s4 = smov 96  }
  0x40   :  { %306 = vmatprep.subr.bf16.mxu0 %v4201_v9  ;;  %359 = vmatprep.subr.bf16.mxu1 %v4203_v10  ;;  %v4221_v24 = vld [vmem:[#allocation6 + $0x4c] ss:$16 sps:$4 sm:$0xff]   ;;  %v4223_v26 = vld [vmem:[#allocation6 + $0x40] ss:$16 sps:$4 sm:$0xff]   ;;  %v4224_v27 = vld [vmem:[#allocation6 + $0x48] ss:$16 sps:$4 sm:$0xff]  }
  0x41   :  { %7306 = vst [vmem:[#allocation16_spill] sm:$0xff] %v4544_v22  ;;  %v4547_v25 = vsub.s32 1, %v4544_v22  ;;  %v4225_v28 = vld [vmem:[#allocation6 + $0x24] ss:$16 sps:$4 sm:$0xff]   ;;  %v4227_v29 = vld [vmem:[#allocation6 + $0x2c] ss:$16 sps:$4 sm:$0xff]  }
  0x42   :  { %v928_v30 = vld [vmem:[#allocation8] sm:$0xff]  ;;  %v4550_v31 = vsub.s32 2, %v4544_v22  ;;  %v4553_v32 = vsub.s32 4, %v4544_v22  ;;  %v4556_v33 = vsub.s32 5, %v4544_v22  ;;  %v4230_v35 = vld [vmem:[#allocation6 + $0x28] ss:$16 sps:$4 sm:$0xff]  }
  0x43   :  { %307 = vmatpush1.bf16.msra.mxu0 %v4205_v11  ;;  %360 = vmatpush1.bf16.msra.mxu1 %v4206_v12  ;;  %7307 = vst [vmem:[#allocation17_spill] sm:$0xff] %v4547_v25  ;;  %v4229_v34 = vld [vmem:[#allocation6 + $0x20] ss:$16 sps:$4 sm:$0xff]   ;;  %v1007_v36 = vrot.slane %v928_v30, %v4547_v25  ;;  %v4560_v38 = vsub.s32 7, %v4544_v22  ;;  %v4231_v39 = vld [vmem:[#allocation6 + $0x4] ss:$16 sps:$4 sm:$0xff]   ;;  %v1011_v41 = vrot.slane %v929_v37, %v4547_v25 }
  0x44   :  { %308 = vmatprep.subr.bf16.mxu0 %v4207_v13  ;;  %361 = vmatprep.subr.bf16.mxu1 %v4209_v14  ;;  %7308 = vst [vmem:[#allocation18_spill] sm:$0xff] %v4550_v31  ;;  %v4233_v40 = vld [vmem:[#allocation6 + $0xc] ss:$16 sps:$4 sm:$0xff]   ;;  %v4235_v42 = vld [vmem:[#allocation6] ss:$16 sps:$4 sm:$0xff]   ;;  %v1175_v46 = vrot.slane %v929_v37, %v4550_v31  ;;  %v1171_v47 = vrot.slane %v928_v30, %v4550_v31  ;;  %vm631_vm0 = vcmask 261120  }
  0x45   :  { %v4236_v43 = vld [vmem:[#allocation6 + $0x8] ss:$16 sps:$4 sm:$0xff]   ;;  %v104_v44 = vld [vmem:[#allocation3] sm:$0xff]  ;;  %1024 = vrot.lane.b32.xlu0 %v1007_v36, %s4427_s30  ;;  %1026 = vrot.lane.b32.xlu1 %v1011_v41, %s4427_s30  ;;  %v1492_v48 = vrot.slane %v928_v30, %v4553_v32  ;;  %v930_v50 = vld [vmem:[#allocation8 + $0x10] sm:$0xff]  ;;  %v1496_v51 = vrot.slane %v929_v37, %v4553_v32  ;;  %v1730_v54 = vrot.slane %v929_v37, %v4556_v33  ;;  %vm635_vm1 = vcmask 785408   ;;  %s4437_s21 = smov 120  }
  0x46   :  { %v105_v45 = vld [vmem:[#allocation3 + $0x8] sm:$0xff]  ;;  %v106_v52 = vld [vmem:[#allocation3 + $0x10] sm:$0xff]  ;;  %v107_v53 = vld [vmem:[#allocation3 + $0x18] sm:$0xff]  ;;  %v1726_v55 = vrot.slane %v928_v30, %v4556_v33  ;;  %v1015_v56 = vrot.slane %v930_v50, %v4547_v25  ;;  %v2117_v58 = vrot.slane %v928_v30, %v4560_v38  ;;  %v2121_v59 = vrot.slane %v929_v37, %v4560_v38  ;;  %s4438_s22 = smov 104   ;;  %s4439_s25 = smov 88  }
  0x47   :  { %309 = vmatpush1.bf16.msra.mxu0 %v4211_v15  ;;  %362 = vmatpush1.bf16.msra.mxu1 %v4212_v17  ;;  %v108_v49 = vpack.c.bf16 %v105_v45, %v104_v44  ;;  %v109_v57 = vpack.c.bf16 %v107_v53, %v106_v52  ;;  %v4042_v60 = vld [vmem:[#allocation8 + $0x20] ss:$0 sm:$0xff]  ;;  %v1179_v61 = vrot.slane %v930_v50, %v4550_v31  ;;  %v931_v2 = vld [vmem:[#allocation8 + $0x18] sm:$0xff]  ;;  %v4044_v6 = vld [vmem:[#allocation8 + $0x30] ss:$0 sm:$0xff]  ;;  %vm633_vm2 = vcmask 523264  }
  0x48   :  { %310 = vmatprep.subr.bf16.mxu0 %v4213_v18  ;;  %363 = vmatprep.subr.bf16.mxu1 %v4215_v19  ;;  %v2125_v62 = vrot.slane %v930_v50, %v4560_v38  ;;  %v1500_v63 = vrot.slane %v930_v50, %v4553_v32  ;;  %v1734_v1 = vrot.slane %v930_v50, %v4556_v33  ;;  %v4045_v9 = vld [vmem:[#allocation8 + $0x38] ss:$0 sm:$0xff]  ;;  %vm741_vm3 = vcmask 261121   ;;  %s4440_s11 = smov 80   ;;  %s4441_s26 = smov 72  }
  0x49   :  { %1190 = vrot.lane.b32.xlu0 %v1175_v46, %s4429_s20  ;;  %1188 = vrot.lane.b32.xlu1 %v1171_v47, %s4429_s20  ;;  %v1019_v3 = vrot.slane %v931_v2, %v4547_v25  ;;  %v1183_v4 = vrot.slane %v931_v2, %v4550_v31  ;;  %v1504_v5 = vrot.slane %v931_v2, %v4553_v32  ;;  %vm744_vm4 = vcmask 253952   ;;  %s4442_s1 = smov 56   ;;  %s4443_s27 = smov 48  }
  0x4a   :  { %v1738_v7 = vrot.slane %v931_v2, %v4556_v33  ;;  %v2129_v8 = vrot.slane %v931_v2, %v4560_v38  ;;  %vm749_vm6 = vcmask 523521   ;;  %vm753_vm7 = vcmask 516352  }
  0x4b   :  { %311 = vmatpush1.bf16.msra.mxu0 %v4217_v20  ;;  %364 = vmatpush1.bf16.msra.mxu1 %v4218_v21  ;;  %vm774_vm8 = vcmask 1040384   ;;  %vm751_vm9 = vcmask 523520   ;;  %vm895_vm10 = vcmask 1047809   ;;  %vm907_vm11 = vcmask 1040640  }
  0x4c   :  { %312 = vmatprep.subr.bf16.mxu0 %v4219_v23  ;;  %365 = vmatprep.subr.bf16.mxu1 %v4221_v24  ;;  %vm901_vm12 = vcmask 1047808   ;;  %vm1412_vm13 = vcmask 1046528   ;;  %vm2037_vm14 = vcmask 1045504   ;;  %vm4434_vm15 = vmmov 0  }
  0x4d   :  { %1509 = vrot.lane.b32.xlu0 %v1492_v48, %s4427_s30  ;;  %1511 = vrot.lane.b32.xlu1 %v1496_v51, %s4427_s30 }
  0x4f   :  { %313 = vmatpush1.bf16.msra.mxu0 %v4223_v26  ;;  %366 = vmatpush1.bf16.msra.mxu1 %v4224_v27 }
  0x50   :  { %314 = vmatprep.subr.bf16.mxu0 %v4225_v28  ;;  %367 = vmatprep.subr.bf16.mxu1 %v4227_v29 }
  0x51   :  { %1745 = vrot.lane.b32.xlu0 %v1730_v54, %s4429_s20  ;;  %1743 = vrot.lane.b32.xlu1 %v1726_v55, %s4429_s20 }
  0x53   :  { %315 = vmatpush1.bf16.msra.mxu0 %v4229_v34  ;;  %368 = vmatpush1.bf16.msra.mxu1 %v4230_v35 }
  0x54   :  { %316 = vmatprep.subr.bf16.mxu0 %v4231_v39  ;;  %369 = vmatprep.subr.bf16.mxu1 %v4233_v40 }
  0x55   :  { %1028 = vrot.lane.b32.xlu0 %v1015_v56, %s4427_s30  ;;  %2134 = vrot.lane.b32.xlu1 %v2117_v58, %s4427_s30 }
  0x57   :  { %317 = vmatpush1.bf16.msra.mxu0 %v4235_v42  ;;  %370 = vmatpush1.bf16.msra.mxu1 %v4236_v43 }
  0x59   :  { %2136 = vrot.lane.b32.xlu0 %v2121_v59, %s4427_s30  ;;  %2368 = vrot.lane.b32.xlu1 %v4042_v60, %s4429_s20 }
  0x5a   :  { %335 = vmatmul.mubr.bf16.vlgmr.msra.gmra.mxu0 %v108_v49  ;;  %388 = vmatmul.mubr.bf16.vlgmr.msra.gmra.mxu1 %v108_v49 }
  0x5b   :  { %344 = vmatprep.mubr.bf16.mxu0 %v4431_v0  ;;  %397 = vmatprep.mubr.bf16.mxu1 %v4431_v0  ;;  %v4043_v0 = vld [vmem:[#allocation8 + $0x28] ss:$0 sm:$0xff] }
  0x5d   :  { %1192 = vrot.lane.b32.xlu0 %v1179_v61, %s4429_s20  ;;  %2138 = vrot.lane.b32.xlu1 %v2125_v62, %s4427_s30 }
  0x61   :  { %1513 = vrot.lane.b32.xlu0 %v1500_v63, %s4427_s30  ;;  %1515 = vrot.lane.b32.xlu1 %v1504_v5, %s4427_s30 }
  0x62   :  { %345 = vmatmul.mubr.bf16.gmra.mxu0 %v109_v57  ;;  %398 = vmatmul.mubr.bf16.gmra.mxu1 %v109_v57 }
  0x65   :  { %2370 = vrot.lane.b32.xlu0 %v4043_v0, %s4429_s20  ;;  %1749 = vrot.lane.b32.xlu1 %v1738_v7, %s4429_s20 }
  0x69   :  { %1747 = vrot.lane.b32.xlu0 %v1734_v1, %s4429_s20  ;;  %2374 = vrot.lane.b32.xlu1 %v4045_v9, %s4429_s20 }
  0x6d   :  { %1030 = vrot.lane.b32.xlu0 %v1019_v3, %s4427_s30 }
  0x71   :  { %1194 = vrot.lane.b32.xlu0 %v1183_v4, %s4429_s20 }
  0x75   :  { %2372 = vrot.lane.b32.xlu0 %v4044_v6, %s4429_s20 }
  0x79   :  { %2140 = vrot.lane.b32.xlu0 %v2129_v8, %s4427_s30 }
 0x11a   :  { %v4607_v10 = vpop.f32.mrf.mxu0  ;;  %v4609_v11 = vpop.f32.mrf.mxu1 }
 0x11b   :  { %v499_v23 = vmul.f32 %v4607_v10, %v4607_v10  ;;  %v501_v34 = vmul.f32 %v4609_v11, %v4609_v11 }
 0x11c   :  { %v4611_v12 = vpop.f32.mrf.mxu0  ;;  %v4613_v13 = vpop.f32.mrf.mxu1 }
 0x11d   :  { %v500_v8 = vmul.f32 %v4611_v12, %v4611_v12 }
 0x11e   :  { %v4615_v14 = vpop.f32.mrf.mxu0  ;;  %v4617_v15 = vpop.f32.mrf.mxu1 }
 0x11f   :  { %v503_v19 = vmul.f32 %v4615_v14, %v4615_v14  ;;  %v408_v24 = vadd.f32 %v4615_v14, %v4607_v10  ;;  %v426_v26 = vadd.f32 %v4617_v15, %v4609_v11  ;;  %v505_v35 = vmul.f32 %v4617_v15, %v4617_v15 }
 0x120   :  { %v4619_v17 = vpop.f32.mrf.mxu0  ;;  %v4621_v18 = vpop.f32.mrf.mxu1 }
 0x121   :  { %v515_v30 = vadd.f32 %v503_v19, %v499_v23  ;;  %v417_v36 = vadd.f32 %v4619_v17, %v4611_v12  ;;  %v533_v49 = vadd.f32 %v505_v35, %v501_v34  ;;  %v504_v0 = vmul.f32 %v4619_v17, %v4619_v17 }
 0x122   :  { %v4625_v20 = vpop.f32.mrf.mxu0  ;;  %v4627_v21 = vpop.f32.mrf.mxu1  ;;  %v435_v1 = vadd.f32 %v4621_v18, %v4613_v13  ;;  %v506_v35 = vmul.f32 %v4621_v18, %v4621_v18 }
 0x123   :  { %v507_v27 = vmul.f32 %v4625_v20, %v4625_v20  ;;  %v409_v32 = vadd.f32 %v408_v24, %v4625_v20  ;;  %v427_v33 = vadd.f32 %v426_v26, %v4627_v21  ;;  %v509_v43 = vmul.f32 %v4627_v21, %v4627_v21 }
 0x124   :  { %v4637_v28 = vpop.f32.mrf.mxu0  ;;  %v4639_v29 = vpop.f32.mrf.mxu1  ;;  %v524_v23 = vadd.f32 %v504_v0, %v500_v8 }
 0x125   :  { %v516_v39 = vadd.f32 %v515_v30, %v507_v27  ;;  %v418_v45 = vadd.f32 %v417_v36, %v4637_v28  ;;  %v534_v55 = vadd.f32 %v533_v49, %v509_v43  ;;  %v508_v9 = vmul.f32 %v4637_v28, %v4637_v28 }
 0x126   :  { %v4649_v37 = vpop.f32.mrf.mxu0  ;;  %v4651_v38 = vpop.f32.mrf.mxu1  ;;  %v436_v19 = vadd.f32 %v435_v1, %v4639_v29  ;;  %v502_v43 = vmul.f32 %v4613_v13, %v4613_v13 }
 0x127   :  { %v410_v40 = vadd.f32 %v409_v32, %v4649_v37  ;;  %v511_v41 = vmul.f32 %v4649_v37, %v4649_v37  ;;  %v428_v42 = vadd.f32 %v427_v33, %v4651_v38  ;;  %v513_v50 = vmul.f32 %v4651_v38, %v4651_v38 }
 0x128   :  { %v4659_v44 = vpop.f32.mrf.mxu0  ;;  %v4669_v5 = vpop.f32.mrf.mxu1  ;;  %v525_v34 = vadd.f32 %v524_v23, %v508_v9 }
 0x129   :  { %v411_v46 = vrot.slane %v410_v40, 4  ;;  %v517_v47 = vadd.f32 %v516_v39, %v511_v41  ;;  %v429_v48 = vrot.slane %v428_v42, 4  ;;  %v419_v54 = vadd.f32 %v418_v45, %v4659_v44 }
 0x12a   :  { %v535_v58 = vadd.f32 %v534_v55, %v513_v50  ;;  %v512_v24 = vmul.f32 %v4659_v44, %v4659_v44  ;;  %v437_v26 = vadd.f32 %v436_v19, %v4669_v5  ;;  %v510_v45 = vmul.f32 %v4639_v29, %v4639_v29  ;;  %v4741_v19 = vpop.permute.xlu0 %1024 }
 0x12b   :  { %v412_v51 = vadd.f32 %v411_v46, %v410_v40  ;;  %v518_v52 = vrot.slane %v517_v47, 4  ;;  %v430_v53 = vadd.f32 %v429_v48, %v428_v42  ;;  %v420_v62 = vrot.slane %v419_v54, 4 }
 0x12c   :  { %v536_v2 = vrot.slane %v535_v58, 4  ;;  %v526_v36 = vadd.f32 %v525_v34, %v512_v24  ;;  %v438_v41 = vrot.slane %v437_v26, 4  ;;  %v542_v46 = vadd.f32 %v506_v35, %v502_v43 }
 0x12d   :  { %v413_v56 = vrot.slane %v412_v51, 2  ;;  %v431_v57 = vrot.slane %v430_v53, 2  ;;  %v519_v60 = vadd.f32 %v518_v52, %v517_v47  ;;  %v421_v4 = vadd.f32 %v420_v62, %v419_v54 }
 0x12e   :  { %v537_v27 = vadd.f32 %v536_v2, %v535_v58  ;;  %v527_v47 = vrot.slane %v526_v36, 4  ;;  %v514_v48 = vmul.f32 %v4669_v5, %v4669_v5  ;;  %v439_v49 = vadd.f32 %v438_v41, %v437_v26  ;;  %v4749_v24 = vpop.permute.xlu0 %1190 }
 0x12f   :  { %v414_v59 = vadd.f32 %v413_v56, %v412_v51  ;;  %v432_v61 = vadd.f32 %v431_v57, %v430_v53  ;;  %v520_v3 = vrot.slane %v519_v60, 2  ;;  %v422_v30 = vrot.slane %v421_v4, 2 }
 0x130   :  { %v538_v39 = vrot.slane %v537_v27, 2  ;;  %v543_v53 = vadd.f32 %v542_v46, %v510_v45  ;;  %v528_v55 = vadd.f32 %v527_v47, %v526_v36  ;;  %v440_v56 = vrot.slane %v439_v49, 2 }
 0x131   :  { %v415_v63 = vrot.slane %v414_v59, 1  ;;  %v433_v7 = vrot.slane %v432_v61, 1  ;;  %v521_v33 = vadd.f32 %v520_v3, %v519_v60  ;;  %v423_v40 = vadd.f32 %v422_v30, %v421_v4 }
 0x132   :  { %v539_v52 = vadd.f32 %v538_v39, %v537_v27  ;;  %v544_v54 = vadd.f32 %v543_v53, %v514_v48  ;;  %v441_v60 = vadd.f32 %v440_v56, %v439_v49  ;;  %v4755_v26 = vpop.permute.xlu0 %1509 }
 0x133   :  { %v4671_v6 = vadd.f32 %v415_v63, %v414_v59  ;;  %v4685_v32 = vadd.f32 %v433_v7, %v432_v61  ;;  %v522_v42 = vrot.slane %v521_v33, 1  ;;  %v424_v51 = vrot.slane %v423_v40, 1 }
 0x134   :  { %v540_v58 = vrot.slane %v539_v52, 1  ;;  %v529_v59 = vrot.slane %v528_v55, 2  ;;  %v545_v61 = vrot.slane %v544_v54, 4  ;;  %v442_v0 = vrot.slane %v441_v60, 1 }
 0x135   :  { %453 = vrot.lane.b32.xlu1 %v4671_v6, %s4427_s30  ;;  %445 = vrot.lane.b32.xlu0 %v4671_v6, %s4432_s4  ;;  %v4703_v50 = vadd.f32 %v522_v42, %v521_v33  ;;  %v4709_v57 = vadd.f32 %v424_v51, %v423_v40  ;;  %v4761_v33 = vpop.permute.xlu1 %1026 }
 0x136   :  { %v4715_v62 = vadd.f32 %v540_v58, %v539_v52  ;;  %v546_v63 = vadd.f32 %v545_v61, %v544_v54  ;;  %v530_v1 = vadd.f32 %v529_v59, %v528_v55  ;;  %v4725_v3 = vadd.f32 %v442_v0, %v441_v60  ;;  %v4757_v27 = vpop.permute.xlu0 %1745 }
 0x137   :  { %7309 = vst [vmem:[#allocation19_spill] sm:$0xff] %v4757_v27 }
 0x138   :  { %v547_v2 = vrot.slane %v546_v63, 2  ;;  %v531_v4 = vrot.slane %v530_v1, 1 }
 0x139   :  { %477 = vrot.lane.b32.xlu1 %v4685_v32, %s4429_s20  ;;  %449 = vrot.lane.b32.xlu0 %v4671_v6, %s4429_s20  ;;  %v4765_v35 = vpop.permute.xlu1 %1188 }
 0x13a   :  { %v4731_v7 = vadd.f32 %v531_v4, %v530_v1  ;;  %v548_v8 = vadd.f32 %v547_v2, %v546_v63  ;;  %v4759_v30 = vpop.permute.xlu0 %1028 }
 0x13c   :  { %v549_v9 = vrot.slane %v548_v8, 1 }
 0x13d   :  { %481 = vrot.lane.b32.xlu1 %v4685_v32, %s4427_s30  ;;  %473 = vrot.lane.b32.xlu0 %v4685_v32, %s4432_s4  ;;  %v4769_v39 = vpop.permute.xlu1 %1511 }
 0x13e   :  { %v4743_v23 = vadd.f32 %v549_v9, %v548_v8  ;;  %v4763_v34 = vpop.permute.xlu0 %2136  ;;  %7311 = vst [vmem:[#allocation21_spill] sm:$0xff] %v4769_v39 }
 0x13f   :  { %7310 = vst [vmem:[#allocation20_spill] sm:$0xff] %v4763_v34 }
 0x141   :  { %552 = vrot.lane.b32.xlu1 %v4703_v50, %s4432_s4  ;;  %556 = vrot.lane.b32.xlu0 %v4703_v50, %s4429_s20  ;;  %v4773_v41 = vpop.permute.xlu1 %1743 }
 0x142   :  { %v4767_v36 = vpop.permute.xlu0 %1192 }
 0x145   :  { %560 = vrot.lane.b32.xlu1 %v4703_v50, %s4427_s30  ;;  %459 = vrot.lane.b32.xlu0 %v4709_v57, %s4432_s4  ;;  %v4777_v43 = vpop.permute.xlu1 %2134 }
 0x146   :  { %v4771_v40 = vpop.permute.xlu0 %1513 }
 0x147   :  { %7312 = vst [vmem:[#allocation22_spill] sm:$0xff] %v4771_v40 }
 0x149   :  { %463 = vrot.lane.b32.xlu1 %v4709_v57, %s4429_s20  ;;  %580 = vrot.lane.b32.xlu0 %v4715_v62, %s4432_s4  ;;  %v4781_v46 = vpop.permute.xlu1 %2368 }
 0x14a   :  { %v4775_v42 = vpop.permute.xlu0 %2370 }
 0x14b   :  { %7313 = vst [vmem:[#allocation23_spill] sm:$0xff] %v4775_v42 }
 0x14d   :  { %467 = vrot.lane.b32.xlu1 %v4709_v57, %s4427_s30  ;;  %584 = vrot.lane.b32.xlu0 %v4715_v62, %s4429_s20  ;;  %v4785_v48 = vpop.permute.xlu1 %2138 }
 0x14e   :  { %v4779_v45 = vpop.permute.xlu0 %1747  ;;  %7315 = vst [vmem:[#allocation25_spill] sm:$0xff] %v4785_v48 }
 0x14f   :  { %7314 = vst [vmem:[#allocation24_spill] sm:$0xff] %v4779_v45 }
 0x151   :  { %588 = vrot.lane.b32.xlu1 %v4715_v62, %s4427_s30  ;;  %487 = vrot.lane.b32.xlu0 %v4725_v3, %s4432_s4  ;;  %v4789_v51 = vpop.permute.xlu1 %1515 }
 0x152   :  { %v4783_v47 = vpop.permute.xlu0 %1030 }
 0x155   :  { %491 = vrot.lane.b32.xlu1 %v4725_v3, %s4429_s20  ;;  %566 = vrot.lane.b32.xlu0 %v4731_v7, %s4432_s4  ;;  %v4793_v53 = vpop.permute.xlu1 %1749 }
 0x156   :  { %v4787_v49 = vpop.permute.xlu0 %1194  ;;  %7317 = vst [vmem:[#allocation27_spill] sm:$0xff] %v4793_v53 }
 0x159   :  { %495 = vrot.lane.b32.xlu1 %v4725_v3, %s4427_s30  ;;  %570 = vrot.lane.b32.xlu0 %v4731_v7, %s4429_s20  ;;  %v4797_v55 = vpop.permute.xlu1 %2374 }
 0x15a   :  { %v4791_v52 = vpop.permute.xlu0 %2372 }
 0x15b   :  { %7316 = vst [vmem:[#allocation26_spill] sm:$0xff] %v4791_v52 }
 0x15d   :  { %574 = vrot.lane.b32.xlu1 %v4731_v7, %s4427_s30  ;;  %594 = vrot.lane.b32.xlu0 %v4743_v23, %s4432_s4 }
 0x15e   :  { %v4795_v54 = vpop.permute.xlu0 %2140 }
 0x15f   :  { %7318 = vst [vmem:[#allocation28_spill] sm:$0xff] %v4795_v54 }
 0x161   :  { %602 = vrot.lane.b32.xlu1 %v4743_v23, %s4427_s30  ;;  %598 = vrot.lane.b32.xlu0 %v4743_v23, %s4429_s20 }
 0x1a7   :  { %v454_v56 = vpop.permute.xlu1 %453  ;;  %v446_v58 = vpop.permute.xlu0 %445 }
 0x1a8   :  { %v448_v0 = vadd.f32 %v446_v58, %v4671_v6 }
 0x1ab   :  { %v478_v59 = vpop.permute.xlu1 %477  ;;  %v450_v60 = vpop.permute.xlu0 %449 }
 0x1ac   :  { %v452_v1 = vadd.f32 %v450_v60, %v448_v0 }
 0x1ae   :  { %v456_v8 = vadd.f32 %v454_v56, %v452_v1 }
 0x1af   :  { %v482_v61 = vpop.permute.xlu1 %481  ;;  %v474_v63 = vpop.permute.xlu0 %473 }
 0x1b0   :  { %v457_v31 = vadd.f32 %v456_v8, %v4709_v57 }
 0x1b3   :  { %v553_v2 = vpop.permute.xlu1 %552  ;;  %v557_v4 = vpop.permute.xlu0 %556 }
 0x1b4   :  { %v555_v42 = vadd.f32 %v553_v2, %v4703_v50 }
 0x1b6   :  { %v559_v39 = vadd.f32 %v557_v4, %v555_v42 }
 0x1b7   :  { %v561_v9 = vpop.permute.xlu1 %560  ;;  %v460_v16 = vpop.permute.xlu0 %459 }
 0x1b8   :  { %v462_v48 = vadd.f32 %v460_v16, %v457_v31  ;;  %v563_v56 = vadd.f32 %v561_v9, %v559_v39 }
 0x1ba   :  { %v564_v8 = vadd.f32 %v563_v56, %v4731_v7 }
 0x1bb   :  { %v464_v25 = vpop.permute.xlu1 %463  ;;  %v581_v52 = vpop.permute.xlu0 %580 }
 0x1bc   :  { %v466_v45 = vadd.f32 %v464_v25, %v462_v48 }
 0x1bf   :  { %v468_v40 = vpop.permute.xlu1 %467  ;;  %v585_v34 = vpop.permute.xlu0 %584 }
 0x1c0   :  { %v470_v27 = vadd.f32 %v468_v40, %v466_v45 }
 0x1c2   :  { %v471_v6 = vadd.f32 %v470_v27, %v4685_v32 }
 0x1c3   :  { %v589_v58 = vpop.permute.xlu1 %588  ;;  %v488_v60 = vpop.permute.xlu0 %487 }
 0x1c4   :  { %v476_v0 = vadd.f32 %v474_v63, %v471_v6 }
 0x1c6   :  { %v480_v1 = vadd.f32 %v478_v59, %v476_v0 }
 0x1c7   :  { %v492_v54 = vpop.permute.xlu1 %491  ;;  %v567_v53 = vpop.permute.xlu0 %566 }
 0x1c8   :  { %v484_v57 = vadd.f32 %v482_v61, %v480_v1  ;;  %v569_v50 = vadd.f32 %v567_v53, %v564_v8 }
 0x1ca   :  { %v485_v25 = vadd.f32 %v484_v57, %v4725_v3 }
 0x1cb   :  { %v496_v16 = vpop.permute.xlu1 %495  ;;  %v571_v31 = vpop.permute.xlu0 %570 }
 0x1cc   :  { %v573_v48 = vadd.f32 %v571_v31, %v569_v50  ;;  %v490_v45 = vadd.f32 %v488_v60, %v485_v25 }
 0x1ce   :  { %v494_v63 = vadd.f32 %v492_v54, %v490_v45  ;;  %v607_v54 = vld [vmem:[%s7198_s3] sm:$0x1]  ;;  %s4445_s3 = smov 24  }
 0x1cf   :  { %v575_v40 = vpop.permute.xlu1 %574  ;;  %v595_v59 = vpop.permute.xlu0 %594 }
 0x1d0   :  { %v577_v42 = vadd.f32 %v575_v40, %v573_v48  ;;  %v498_v4 = vadd.f32 %v496_v16, %v494_v63 }
 0x1d2   :  { %v578_v32 = vadd.f32 %v577_v42, %v4715_v62  ;;  %v608_v6 = vmul.f32 0.001953125, %v498_v4  ;;  %v606_v62 = vld [vmem:[%s7197_s2] sm:$0x1]  ;;  %s4444_s2 = smov 40  }
 0x1d3   :  { %v599_v9 = vpop.permute.xlu0 %598  ;;  %v603_v0 = vpop.permute.xlu1 %602 }
 0x1d4   :  { %v583_v27 = vadd.f32 %v581_v52, %v578_v32  ;;  %v610_v56 = vmul.f32 %v608_v6, %v608_v6 }
 0x1d6   :  { %v587_v39 = vadd.f32 %v585_v34, %v583_v27  ;;  %v4811_v34 = vsub.s32 0, %v4544_v22 }
 0x1d8   :  { %v591_v2 = vadd.f32 %v589_v58, %v587_v39  ;;  %7319 = vst [vmem:[#allocation29_spill] sm:$0xff] %v4811_v34 }
 0x1da   :  { %v592_v61 = vadd.f32 %v591_v2, %v4743_v23  ;;  %v7225_v2 = vmov 0.0  }
 0x1db   :  { %742 = vst.msk [vmem:[#allocation2] sm:$0xfe] %vm741_vm3, %v7225_v2  ;;  %746 = vst.msk [vmem:[#allocation2 + $0x78] sm:$0xfe] %vm741_vm3, %v7225_v2  ;;  %4147 = vmatprep.subr.bf16.mxu0 %v7225_v2  ;;  %4155 = vmatprep.subr.bf16.mxu1 %v7225_v2 }
 0x1dc   :  { %v597_v7 = vadd.f32 %v595_v59, %v592_v61  ;;  %743 = vst.msk [vmem:[#allocation2 + $0x28] sm:$0xff] %vm631_vm0, %v7225_v2  ;;  %747 = vst.msk [vmem:[#allocation2 + $0xa0] sm:$0xff] %vm631_vm0, %v7225_v2 }
 0x1dd   :  { %745 = vst.msk [vmem:[#allocation2 + $0x50] sm:$0x1] %vm744_vm4, %v7225_v2  ;;  %748 = vst.msk [vmem:[#allocation2 + $0xc8] sm:$0x1] %vm744_vm4, %v7225_v2 }
 0x1de   :  { %v601_v53 = vadd.f32 %v599_v9, %v597_v7  ;;  %755 = vst.msk [vmem:[#allocation2 + $0x98] sm:$0xfe] %vm749_vm6, %v7225_v2  ;;  %750 = vst.msk [vmem:[#allocation2 + $0x20] sm:$0xfe] %vm749_vm6, %v7225_v2  ;;  %vm3873_vm6 = vcmask 130048  }
 0x1df   :  { %754 = vst.msk [vmem:[#allocation2 + $0x70] sm:$0x1] %vm753_vm7, %v7225_v2  ;;  %757 = vst.msk [vmem:[#allocation2 + $0xe8] sm:$0x1] %vm753_vm7, %v7225_v2  ;;  %vm3875_vm7 = vcmask 195584  }
 0x1e0   :  { %v605_v3 = vadd.f32 %v603_v0, %v601_v53  ;;  %752 = vst.msk [vmem:[#allocation2 + $0x48] sm:$0xff] %vm751_vm9, %v7225_v2  ;;  %756 = vst.msk [vmem:[#allocation2 + $0xc0] sm:$0xff] %vm751_vm9, %v7225_v2  ;;  %vm3880_vm9 = vcmask 392192  }
 0x1e2   :  { %v609_v1 = vmul.f32 0.001953125, %v605_v3 }
 0x1e4   :  { %v611_v57 = vsub.f32 %v609_v1, %v610_v56 }
 0x1e6   :  { %v612_v60 = vadd.f32 1e-05, %v611_v57 }
 0x1e8   :  { %4271 = vrsqrt.f32 %v612_v60 }
 0x1f5   :  { %v4272_v52 = vpop.eup %4271 }
 0x1f6   :  { %v614_v23 = vmul.f32 %v4272_v52, %v606_v62 }
 0x1f8   :  { %v621_v58 = vrot.slane %v614_v23, %v4811_v34  ;;  %v615_v8 = vmul.f32 %v614_v23, %v608_v6 }
 0x1fa   :  { %625 = vrot.lane.b32.xlu1 %v621_v58, %s4429_s20  ;;  %622 = vrot.lane.b32.xlu0 %v621_v58, %s4427_s30  ;;  %v616_v16 = vsub.f32 %v607_v54, %v615_v8 }
 0x1fc   :  { %v641_v31 = vrot.slane %v616_v16, %v4811_v34 }
 0x1fe   :  { %628 = vrot.lane.b32.xlu0 %v621_v58, %s4432_s4  ;;  %642 = vrot.lane.b32.xlu1 %v641_v31, %s4427_s30 }
 0x202   :  { %645 = vrot.lane.b32.xlu0 %v641_v31, %s4429_s20  ;;  %648 = vrot.lane.b32.xlu1 %v641_v31, %s4432_s4 }
 0x26c   :  { %v626_v50 = vpop.permute.xlu1 %625  ;;  %v623_v25 = vpop.permute.xlu0 %622 }
 0x26d   :  { %v632_v48 = vsel %vm631_vm0, %v614_v23, %v623_v25 }
 0x26e   :  { %v634_v40 = vsel %vm633_vm2, %v632_v48, %v626_v50 }
 0x270   :  { %v629_v42 = vpop.permute.xlu0 %628  ;;  %v643_v45 = vpop.permute.xlu1 %642 }
 0x271   :  { %v636_v32 = vsel %vm635_vm1, %v634_v40, %v629_v42  ;;  %v651_v63 = vsel %vm631_vm0, %v616_v16, %v643_v45 }
 0x272   :  { %v4828_v27 = vrot.slane %v636_v32, %v4811_v34 }
 0x274   :  { %v646_v39 = vpop.permute.xlu0 %645  ;;  %v649_v59 = vpop.permute.xlu1 %648  ;;  %v659_v7 = vmul.f32 %v4828_v27, %v4611_v12  ;;  %v658_v6 = vmul.f32 %v4828_v27, %v4607_v10  ;;  %v667_v53 = vmul.f32 %v4828_v27, %v4637_v28  ;;  %v666_v0 = vmul.f32 %v4828_v27, %v4625_v20 }
 0x275   :  { %v652_v4 = vsel %vm633_vm2, %v651_v63, %v646_v39  ;;  %v663_v3 = vmul.f32 %v4828_v27, %v4619_v17  ;;  %v662_v56 = vmul.f32 %v4828_v27, %v4615_v14  ;;  %v671_v20 = vmul.f32 %v4828_v27, %v4659_v44 }
 0x276   :  { %v653_v61 = vsel %vm635_vm1, %v652_v4, %v649_v59  ;;  %v670_v17 = vmul.f32 %v4828_v27, %v4649_v37  ;;  %v664_v40 = vmul.f32 %v4828_v27, %v4617_v15  ;;  %v660_v32 = vmul.f32 %v4828_v27, %v4609_v11 }
 0x277   :  { %v4846_v9 = vrot.slane %v653_v61, %v4811_v34  ;;  %v672_v11 = vmul.f32 %v4828_v27, %v4651_v38 }
 0x279   :  { %v679_v12 = vadd.f32 %v4846_v9, %v659_v7  ;;  %v678_v1 = vadd.f32 %v4846_v9, %v658_v6  ;;  %v687_v57 = vadd.f32 %v4846_v9, %v667_v53  ;;  %v686_v10 = vadd.f32 %v4846_v9, %v666_v0 }
 0x27a   :  { %v683_v60 = vadd.f32 %v4846_v9, %v663_v3  ;;  %v682_v28 = vadd.f32 %v4846_v9, %v662_v56  ;;  %v691_v8 = vadd.f32 %v4846_v9, %v671_v20  ;;  %v690_v16 = vadd.f32 %v4846_v9, %v670_v17 }
 0x27b   :  { %v695_v62 = vmax.f32 %v679_v12, 0.0  ;;  %v694_v14 = vmax.f32 %v678_v1, 0.0  ;;  %v703_v52 = vmax.f32 %v687_v57, 0.0  ;;  %v702_v23 = vmax.f32 %v686_v10, 0.0 }
 0x27c   :  { %v699_v31 = vmax.f32 %v683_v60, 0.0  ;;  %v698_v50 = vmax.f32 %v682_v28, 0.0  ;;  %v707_v42 = vmax.f32 %v691_v8, 0.0  ;;  %v706_v45 = vmax.f32 %v690_v16, 0.0 }
 0x27d   :  { %v4868_v54 = vmin.f32 %v695_v62, 6.0  ;;  %v4870_v58 = vmin.f32 %v694_v14, 6.0  ;;  %v4876_v48 = vmin.f32 %v703_v52, 6.0  ;;  %v4878_v37 = vmin.f32 %v702_v23, 6.0 }
 0x27e   :  { %v4890_v63 = vmin.f32 %v699_v31, 6.0  ;;  %v4892_v39 = vmin.f32 %v698_v50, 6.0  ;;  %v684_v4 = vadd.f32 %v4846_v9, %v664_v40  ;;  %v680_v61 = vadd.f32 %v4846_v9, %v660_v32 }
 0x27f   :  { %v776_v25 = vrot.slane %v4868_v54, 7  ;;  %v775_v44 = vrot.slane %v4870_v58, 7  ;;  %v788_v15 = vrot.slane %v4876_v48, 7  ;;  %v787_v59 = vrot.slane %v4878_v37, 7 }
 0x280   :  { %v668_v7 = vmul.f32 %v4828_v27, %v4627_v21  ;;  %v4912_v6 = vmin.f32 %v707_v42, 6.0  ;;  %v4914_v53 = vmin.f32 %v706_v45, 6.0  ;;  %v692_v0 = vadd.f32 %v4846_v9, %v672_v11 }
 0x281   :  { %801 = vrot.lane.b32.xlu1 %v776_v25, %s4427_s30  ;;  %799 = vrot.lane.b32.xlu0 %v775_v44, %s4427_s30  ;;  %v781_v38 = vrot.slane %v4890_v63, 7  ;;  %v779_v21 = vrot.slane %v4892_v39, 7  ;;  %v700_v56 = vmax.f32 %v684_v4, 0.0  ;;  %v696_v12 = vmax.f32 %v680_v61, 0.0 }
 0x282   :  { %v688_v3 = vadd.f32 %v4846_v9, %v668_v7  ;;  %v669_v1 = vmul.f32 %v4828_v27, %v4639_v29  ;;  %v661_v57 = vmul.f32 %v4828_v27, %v4613_v13  ;;  %v793_v10 = vrot.slane %v4912_v6, 7 }
 0x283   :  { %v791_v60 = vrot.slane %v4914_v53, 7  ;;  %v708_v28 = vmax.f32 %v692_v0, 0.0  ;;  %v4932_v29 = vmin.f32 %v700_v56, 6.0  ;;  %v4934_v14 = vmin.f32 %v696_v12, 6.0 }
 0x284   :  { %v704_v20 = vmax.f32 %v688_v3, 0.0  ;;  %v689_v17 = vadd.f32 %v4846_v9, %v669_v1  ;;  %v681_v62 = vadd.f32 %v4846_v9, %v661_v57  ;;  %v7320_v13 = vlaneseq }
 0x285   :  { %825 = vrot.lane.b32.xlu1 %v788_v15, %s4427_s30  ;;  %823 = vrot.lane.b32.xlu0 %v787_v59, %s4427_s30  ;;  %v665_v52 = vmul.f32 %v4828_v27, %v4621_v18  ;;  %v783_v16 = vrot.slane %v4932_v29, 7  ;;  %v777_v31 = vrot.slane %v4934_v14, 7  ;;  %v724_v50 = vmin.f32 %v708_v28, 6.0 }
 0x286   :  { %vm728_vm5 = vcmp.lt.s32.totalorder %v7320_v13, 576  ;;  %v705_v18 = vmax.f32 %v689_v17, 0.0  ;;  %v697_v23 = vmax.f32 %v681_v62, 0.0  ;;  %v720_v40 = vmin.f32 %v704_v20, 6.0 }
 0x287   :  { %730 = vst.msk [vmem:[#allocation2] ss:$8 sm:$0xf] %vm728_vm5, %v7225_v2  ;;  %731 = vst.msk [vmem:[#allocation2] ss:$8 sm:$0x10] %vm728_vm5, %v7225_v2  ;;  %v685_v8 = vadd.f32 %v4846_v9, %v665_v52  ;;  %v673_v42 = vmul.f32 %v4828_v27, %v4669_v5  ;;  %v792_v12 = vsel %vm774_vm8, %v787_v59, %v791_v60 }
 0x288   :  { %733 = vst.msk [vmem:[#allocation2 + $0x78] ss:$8 sm:$0xf] %vm728_vm5, %v7225_v2  ;;  %734 = vst.msk [vmem:[#allocation2 + $0x78] ss:$8 sm:$0x10] %vm728_vm5, %v7225_v2  ;;  %v782_v58 = vsel %vm774_vm8, %v776_v25, %v781_v38  ;;  %v794_v37 = vsel %vm774_vm8, %v788_v15, %v793_v10  ;;  %v784_v63 = vsel %vm774_vm8, %v777_v31, %v783_v16 }
 0x289   :  { %817 = vrot.lane.b32.xlu1 %v781_v38, %s4427_s30  ;;  %815 = vrot.lane.b32.xlu0 %v779_v21, %s4427_s30  ;;  %736 = vst.msk [vmem:[#allocation2 + $0x51] ss:$8 sm:$0xf] %vm728_vm5, %v7225_v2  ;;  %737 = vst.msk [vmem:[#allocation2 + $0x51] ss:$8 sm:$0x10] %vm728_vm5, %v7225_v2  ;;  %v693_v32 = vadd.f32 %v4846_v9, %v673_v42  ;;  %v780_v9 = vsel %vm774_vm8, %v775_v44, %v779_v21 }
 0x28a   :  { %739 = vst.msk [vmem:[#allocation2 + $0xc9] ss:$8 sm:$0xf] %vm728_vm5, %v7225_v2  ;;  %740 = vst.msk [vmem:[#allocation2 + $0xc9] ss:$8 sm:$0x10] %vm728_vm5, %v7225_v2 }
 0x28b   :  { %v701_v45 = vmax.f32 %v685_v8, 0.0  ;;  %v795_v39 = vrot.slane %v724_v50, 7  ;;  %v789_v4 = vrot.slane %v720_v40, 7  ;;  %v721_v61 = vmin.f32 %v705_v18, 6.0 }
 0x28c   :  { %v713_v11 = vmin.f32 %v697_v23, 6.0  ;;  %v709_v3 = vmax.f32 %v693_v32, 0.0  ;;  %vm3157_vm5 = vcmask 64512  }
 0x28d   :  { %841 = vrot.lane.b32.xlu1 %v793_v10, %s4427_s30  ;;  %839 = vrot.lane.b32.xlu0 %v791_v60, %s4427_s30  ;;  %v790_v7 = vrot.slane %v721_v61, 7  ;;  %v717_v0 = vmin.f32 %v701_v45, 6.0  ;;  %v796_v44 = vsel %vm774_vm8, %v789_v4, %v795_v39 }
 0x28e   :  { %v778_v53 = vrot.slane %v713_v11, 7  ;;  %v725_v27 = vmin.f32 %v709_v3, 6.0 }
 0x28f   :  { %v785_v5 = vrot.slane %v717_v0, 7 }
 0x290   :  { %v797_v56 = vrot.slane %v725_v27, 7 }
 0x291   :  { %819 = vrot.lane.b32.xlu1 %v783_v16, %s4427_s30  ;;  %803 = vrot.lane.b32.xlu0 %v777_v31, %s4427_s30  ;;  %v786_v54 = vsel %vm774_vm8, %v778_v53, %v785_v5 }
 0x292   :  { %v798_v25 = vsel %vm774_vm8, %v790_v7, %v797_v56  ;;  %vm3878_vm8 = vcmask 326656  }
 0x295   :  { %843 = vrot.lane.b32.xlu1 %v795_v39, %s4427_s30  ;;  %827 = vrot.lane.b32.xlu0 %v789_v4, %s4427_s30 }
 0x299   :  { %829 = vrot.lane.b32.xlu1 %v790_v7, %s4427_s30  ;;  %805 = vrot.lane.b32.xlu0 %v778_v53, %s4427_s30 }
 0x29d   :  { %821 = vrot.lane.b32.xlu1 %v785_v5, %s4427_s30  ;;  %807 = vrot.lane.b32.xlu0 %v780_v9, %s4427_s30 }
 0x2a1   :  { %845 = vrot.lane.b32.xlu1 %v797_v56, %s4427_s30  ;;  %831 = vrot.lane.b32.xlu0 %v792_v12, %s4427_s30 }
 0x2a5   :  { %809 = vrot.lane.b32.xlu1 %v782_v58, %s4427_s30  ;;  %835 = vrot.lane.b32.xlu0 %v796_v44, %s4427_s30 }
 0x2a9   :  { %833 = vrot.lane.b32.xlu1 %v794_v37, %s4427_s30 }
 0x2ad   :  { %811 = vrot.lane.b32.xlu1 %v784_v63, %s4427_s30 }
 0x2b1   :  { %813 = vrot.lane.b32.xlu1 %v786_v54, %s4427_s30 }
 0x2b5   :  { %837 = vrot.lane.b32.xlu1 %v798_v25, %s4427_s30 }
 0x2f3   :  { %v802_v59 = vpop.permute.xlu1 %801  ;;  %v800_v6 = vpop.permute.xlu0 %799 }
 0x2f4   :  { %v847_v48 = vsel %vm631_vm0, %v800_v6, %v802_v59  ;;  %896 = vst.msk [vmem:[#allocation2] sm:$0xfe] %vm895_vm10, %v800_v6 }
 0x2f5   :  { %897 = vst [vmem:[#allocation2 + $0x8] sm:$0xfe] %v847_v48 }
 0x2f7   :  { %v826_v15 = vpop.permute.xlu1 %825  ;;  %v824_v38 = vpop.permute.xlu0 %823 }
 0x2f8   :  { %v856_v21 = vsel %vm631_vm0, %v824_v38, %v826_v15  ;;  %913 = vst.msk [vmem:[#allocation2 + $0x78] sm:$0xfe] %vm895_vm10, %v824_v38  ;;  %vm3882_vm10 = vcmask 457728  }
 0x2f9   :  { %914 = vst [vmem:[#allocation2 + $0x80] sm:$0xfe] %v856_v21 }
 0x2fb   :  { %v818_v1 = vpop.permute.xlu1 %817  ;;  %v816_v57 = vpop.permute.xlu0 %815  ;;  %v936_v10 = vld [vmem:[#allocation2] sm:$0xff] }
 0x2fc   :  { %v853_v60 = vsel %vm631_vm0, %v816_v57, %v818_v1  ;;  %908 = vst.msk [vmem:[#allocation2 + $0x50] sm:$0x1] %vm907_vm11, %v816_v57  ;;  %v1040_v28 = vmul.f32 %v4741_v19, %v936_v10  ;;  %v1204_v8 = vmul.f32 %v4765_v35, %v936_v10  ;;  %v937_v38 = vld [vmem:[#allocation2 + $0x8] sm:$0xff] }
 0x2fd   :  { %909 = vst [vmem:[#allocation2 + $0x58] sm:$0x1] %v853_v60 }
 0x2fe   :  { %1080 = vrot.lane.b32.xlu0 %v1040_v28, %s4432_s4 }
 0x2ff   :  { %v842_v20 = vpop.permute.xlu1 %841  ;;  %v840_v17 = vpop.permute.xlu0 %839  ;;  %v944_v62 = vld [vmem:[#allocation2 + $0x78] sm:$0xff] }
 0x300   :  { %v862_v29 = vsel %vm631_vm0, %v840_v17, %v842_v20  ;;  %923 = vst.msk [vmem:[#allocation2 + $0xc8] sm:$0x1] %vm907_vm11, %v840_v17  ;;  %v1050_v14 = vmul.f32 %v4741_v19, %v944_v62  ;;  %v1214_v42 = vmul.f32 %v4765_v35, %v944_v62  ;;  %vm3885_vm11 = vcmask 588800  }
 0x301   :  { %924 = vst [vmem:[#allocation2 + $0xd0] sm:$0x1] %v862_v29 }
 0x302   :  { %1100 = vrot.lane.b32.xlu0 %v1050_v14, %s4432_s4 }
 0x303   :  { %v820_v13 = vpop.permute.xlu1 %819  ;;  %v804_v52 = vpop.permute.xlu0 %803 }
 0x304   :  { %v854_v18 = vsel %vm631_vm0, %v818_v1, %v820_v13  ;;  %v848_v23 = vsel %vm631_vm0, %v802_v59, %v804_v52  ;;  %v5056_v1 = vsel %vm631_vm0, %v4741_v19, %v4761_v33 }
 0x305   :  { %910 = vst [vmem:[#allocation2 + $0x60] sm:$0x1] %v854_v18  ;;  %898 = vst [vmem:[#allocation2 + $0x10] sm:$0xfe] %v848_v23  ;;  %v1041_v60 = vmul.f32 %v5056_v1, %v937_v38  ;;  %v1196_v18 = vsel %vm633_vm2, %v4765_v35, %v4749_v24 }
 0x306   :  { %1244 = vrot.lane.b32.xlu0 %v1204_v8, %s4429_s20  ;;  %v1205_v8 = vmul.f32 %v1196_v18, %v937_v38 }
 0x307   :  { %v844_v16 = vpop.permute.xlu1 %843  ;;  %v828_v31 = vpop.permute.xlu0 %827 }
 0x308   :  { %v863_v50 = vsel %vm631_vm0, %v842_v20, %v844_v16  ;;  %v857_v40 = vsel %vm631_vm0, %v826_v15, %v828_v31  ;;  %v5065_v20 = vld [vmem:[#allocation2 + $0x80] sm:$0xff] }
 0x309   :  { %925 = vst [vmem:[#allocation2 + $0xd8] sm:$0x1] %v863_v50  ;;  %915 = vst [vmem:[#allocation2 + $0x88] sm:$0xfe] %v857_v40  ;;  %v1051_v29 = vmul.f32 %v5056_v1, %v5065_v20 }
 0x30a   :  { %1264 = vrot.lane.b32.xlu0 %v1214_v42, %s4429_s20 }
 0x30b   :  { %v830_v45 = vpop.permute.xlu1 %829  ;;  %v806_v32 = vpop.permute.xlu0 %805 }
 0x30c   :  { %v858_v39 = vsel %vm631_vm0, %v828_v31, %v830_v45  ;;  %917 = vst.msk [vmem:[#allocation2 + $0x98] sm:$0xfe] %vm741_vm3, %v830_v45  ;;  %v849_v4 = vsel %vm631_vm0, %v804_v52, %v806_v32  ;;  %900 = vst.msk [vmem:[#allocation2 + $0x20] sm:$0xfe] %vm741_vm3, %v806_v32  ;;  %v938_v14 = vld [vmem:[#allocation2 + $0x10] sm:$0xff]  ;;  %vm3083_vm3 = vcmask 1041409  }
 0x30d   :  { %916 = vst [vmem:[#allocation2 + $0x90] sm:$0xfe] %v858_v39  ;;  %899 = vst [vmem:[#allocation2 + $0x18] sm:$0xfe] %v849_v4  ;;  %v5116_v39 = vsel %vm631_vm0, %v4759_v30, %v4783_v47 }
 0x30f   :  { %v822_v61 = vpop.permute.xlu1 %821  ;;  %v808_v11 = vpop.permute.xlu0 %807 }
 0x310   :  { %v855_v7 = vsel %vm631_vm0, %v820_v13, %v822_v61  ;;  %912 = vst.msk [vmem:[#allocation2 + $0x70] sm:$0x1] %vm744_vm4, %v822_v61  ;;  %v5083_v13 = vsel %vm631_vm0, %v4761_v33, %v4759_v30  ;;  %v946_v31 = vld [vmem:[#allocation2 + $0x88] sm:$0xff]  ;;  %v1215_v33 = vmul.f32 %v1196_v18, %v5065_v20  ;;  %v5127_v61 = vsel %vm633_vm2, %v4767_v36, %v4787_v49 }
 0x311   :  { %902 = vst.msk [vmem:[#allocation2 + $0x28] sm:$0xff] %vm901_vm12, %v808_v11  ;;  %911 = vst [vmem:[#allocation2 + $0x68] sm:$0x1] %v855_v7  ;;  %v1052_v50 = vmul.f32 %v5083_v13, %v946_v31 }
 0x313   :  { %v846_v53 = vpop.permute.xlu1 %845  ;;  %v832_v0 = vpop.permute.xlu0 %831  ;;  %v1000_v3 = vld [vmem:[#allocation2 + $0x20] sm:$0xff]  ;;  %v1002_v5 = vld [vmem:[#allocation2 + $0x98] sm:$0xff] }
 0x314   :  { %v864_v27 = vsel %vm631_vm0, %v844_v16, %v846_v53  ;;  %927 = vst.msk [vmem:[#allocation2 + $0xe8] sm:$0x1] %vm744_vm4, %v846_v53  ;;  %v1044_v9 = vmul.f32 %v4783_v47, %v1000_v3  ;;  %v1054_v56 = vmul.f32 %v4783_v47, %v1002_v5  ;;  %v1208_v37 = vmul.f32 %v4787_v49, %v1000_v3  ;;  %v5107_v45 = vld [vmem:[#allocation2 + $0x90] sm:$0xff]  ;;  %v5109_v32 = vld [vmem:[#allocation2 + $0x18] sm:$0xff] }
 0x315   :  { %918 = vst.msk [vmem:[#allocation2 + $0xa0] sm:$0xff] %vm901_vm12, %v832_v0  ;;  %926 = vst [vmem:[#allocation2 + $0xe0] sm:$0x1] %v864_v27  ;;  %v1218_v48 = vmul.f32 %v4787_v49, %v1002_v5  ;;  %v1042_v16 = vmul.f32 %v5083_v13, %v938_v14  ;;  %v1043_v4 = vmul.f32 %v5116_v39, %v5109_v32  ;;  %vm3161_vm4 = vcmask 1043456  }
 0x316   :  { %1088 = vrot.lane.b32.xlu1 %v1044_v9, %s4432_s4  ;;  %1108 = vrot.lane.b32.xlu0 %v1054_v56, %s4432_s4  ;;  %v1207_v30 = vmul.f32 %v5127_v61, %v5109_v32  ;;  %vm3887_vm12 = vcmask 654336  }
 0x317   :  { %v810_v12 = vpop.permute.xlu1 %809  ;;  %v836_v54 = vpop.permute.xlu0 %835 }
 0x318   :  { %v5027_v58 = vld [vmem:[#allocation2 + $0x28] sm:$0xff]  ;;  %v5030_v44 = vsel %vm631_vm0, %v808_v11, %v810_v12  ;;  %v1217_v11 = vmul.f32 %v5127_v61, %v5107_v45 }
 0x319   :  { %v1045_v63 = vmul.f32 %v4741_v19, %v5027_v58  ;;  %903 = vst [vmem:[#allocation2 + $0x30] sm:$0xff] %v5030_v44  ;;  %v1209_v15 = vmul.f32 %v4765_v35, %v5027_v58  ;;  %v1046_v3 = vmul.f32 %v5056_v1, %v5030_v44  ;;  %v1210_v27 = vmul.f32 %v1196_v18, %v5030_v44 }
 0x31a   :  { %1252 = vrot.lane.b32.xlu1 %v1208_v37, %s4429_s20  ;;  %v1530_v37 = vmul.f32 %v4755_v26, %v5027_v58 }
 0x31b   :  { %1090 = vrot.lane.b32.xlu0 %v1045_v63, %s4432_s4  ;;  %v834_v25 = vpop.permute.xlu1 %833 }
 0x31c   :  { %v5039_v59 = vsel %vm631_vm0, %v832_v0, %v834_v25  ;;  %v5042_v6 = vsel %vm631_vm0, %v834_v25, %v836_v54  ;;  %v5049_v21 = vld [vmem:[#allocation2 + $0xa0] sm:$0xff]  ;;  %v1336_v25 = vld [vmem:[#allocation2 + $0x50] sm:$0x1] }
 0x31d   :  { %919 = vst [vmem:[#allocation2 + $0xa8] sm:$0xff] %v5039_v59  ;;  %920 = vst [vmem:[#allocation2 + $0xb0] sm:$0xff] %v5042_v6  ;;  %v1055_v28 = vmul.f32 %v4741_v19, %v5049_v21  ;;  %v1219_v19 = vmul.f32 %v4765_v35, %v5049_v21  ;;  %v5103_v35 = vsel %vm633_vm2, %v4749_v24, %v4767_v36 }
 0x31e   :  { %1272 = vrot.lane.b32.xlu1 %v1218_v48, %s4429_s20  ;;  %v1206_v40 = vmul.f32 %v5103_v35, %v938_v14  ;;  %v1216_v42 = vmul.f32 %v5103_v35, %v946_v31  ;;  %v1053_v24 = vmul.f32 %v5116_v39, %v5107_v45  ;;  %v1220_v63 = vmul.f32 %v1196_v18, %v5039_v59 }
 0x31f   :  { %1254 = vrot.lane.b32.xlu0 %v1209_v15, %s4429_s20  ;;  %v812_v57 = vpop.permute.xlu1 %811  ;;  %v1586_v48 = vrot.slane %v1530_v37, 1  ;;  %v1535_v38 = vmul.f32 %v4755_v26, %v1336_v25  ;;  %v1764_v18 = vmul.f32 %v4773_v41, %v5027_v58  ;;  %v1221_v31 = vmul.f32 %v5103_v35, %v5042_v6 }
 0x320   :  { %v5059_v10 = vsel %vm631_vm0, %v810_v12, %v812_v57  ;;  %v1056_v12 = vmul.f32 %v5056_v1, %v5039_v59 }
 0x321   :  { %904 = vst [vmem:[#allocation2 + $0x38] sm:$0xff] %v5059_v10  ;;  %v1211_v56 = vmul.f32 %v5103_v35, %v5059_v10  ;;  %v1047_v1 = vmul.f32 %v5083_v13, %v5059_v10 }
 0x322   :  { %1082 = vrot.lane.b32.xlu1 %v1041_v60, %s4432_s4 }
 0x323   :  { %1110 = vrot.lane.b32.xlu0 %v1055_v28, %s4432_s4  ;;  %v814_v17 = vpop.permute.xlu1 %813  ;;  %v1545_v28 = vmul.f32 %v4755_v26, %v5049_v21 }
 0x324   :  { %v5070_v62 = vsel %vm631_vm0, %v812_v57, %v814_v17  ;;  %906 = vst.msk [vmem:[#allocation2 + $0x48] sm:$0xff] %vm631_vm0, %v814_v17  ;;  %v1340_v57 = vld [vmem:[#allocation2 + $0x78] sm:$0xfe]  ;;  %v1600_v17 = vrot.slane %v1535_v38, 1 }
 0x325   :  { %905 = vst [vmem:[#allocation2 + $0x40] sm:$0xff] %v5070_v62  ;;  %v1048_v35 = vmul.f32 %v5116_v39, %v5070_v62 }
 0x326   :  { %1102 = vrot.lane.b32.xlu1 %v1051_v29, %s4432_s4  ;;  %v1540_v29 = vmul.f32 %v4755_v26, %v1340_v57  ;;  %v1601_v14 = vsel %vm1412_vm13, %v1586_v48, %v1600_v17 }
 0x327   :  { %1274 = vrot.lane.b32.xlu0 %v1219_v19, %s4429_s20  ;;  %v838_v52 = vpop.permute.xlu1 %837  ;;  %v1057_v19 = vmul.f32 %v5083_v13, %v5042_v6 }
 0x328   :  { %v5089_v23 = vsel %vm631_vm0, %v836_v54, %v838_v52  ;;  %922 = vst.msk [vmem:[#allocation2 + $0xc0] sm:$0xff] %vm631_vm0, %v838_v52  ;;  %v1611_v52 = vrot.slane %v1545_v28, 1 }
 0x329   :  { %921 = vst [vmem:[#allocation2 + $0xb8] sm:$0xff] %v5089_v23  ;;  %v1058_v54 = vmul.f32 %v5116_v39, %v5089_v23 }
 0x32a   :  { %1246 = vrot.lane.b32.xlu1 %v1205_v8, %s4429_s20  ;;  %v1610_v8 = vrot.slane %v1540_v29, 1 }
 0x32b   :  { %1084 = vrot.lane.b32.xlu0 %v1042_v16, %s4432_s4  ;;  %v5135_v53 = vld [vmem:[#allocation2 + $0x48] sm:$0xff] }
 0x32c   :  { %v1049_v36 = vmul.f32 %v4783_v47, %v5135_v53  ;;  %v1213_v5 = vmul.f32 %v4787_v49, %v5135_v53  ;;  %v1612_v13 = vsel %vm1412_vm13, %v1610_v8, %v1611_v52 }
 0x32e   :  { %1266 = vrot.lane.b32.xlu1 %v1215_v33, %s4429_s20  ;;  %v5189_v33 = vld [vmem:[#allocation2 + $0x70] sm:$0x3] }
 0x32f   :  { %1104 = vrot.lane.b32.xlu0 %v1052_v50, %s4432_s4  ;;  %v5133_v7 = vld [vmem:[#allocation2 + $0xc0] sm:$0xff]  ;;  %v1820_v50 = vrot.slane %v1764_v18, 1 }
 0x330   :  { %v1223_v0 = vmul.f32 %v4787_v49, %v5133_v7  ;;  %v1059_v9 = vmul.f32 %v4783_v47, %v5133_v7  ;;  %v1332_v49 = vld [vmem:[#allocation2] sm:$0xfe] }
 0x331   :  { %v1525_v47 = vmul.f32 %v4755_v26, %v1332_v49  ;;  %v1759_v16 = vmul.f32 %v4773_v41, %v1332_v49 }
 0x332   :  { %1248 = vrot.lane.b32.xlu1 %v1206_v40, %s4429_s20  ;;  %v5196_v40 = vmul.f32 %v4797_v55, %v5135_v53 }
 0x333   :  { %1268 = vrot.lane.b32.xlu0 %v1216_v42, %s4429_s20  ;;  %v1585_v15 = vrot.slane %v1525_v47, 1  ;;  %v1819_v42 = vrot.slane %v1759_v16, 1  ;;  %v2389_v47 = vmul.f32 %v4781_v46, %v5027_v58  ;;  %v5245_v16 = vmul.f32 %v4781_v46, %v5049_v21 }
 0x334   :  { %7321 = vst [vmem:[#allocation30_spill] sm:$0xff] %v5196_v40 }
 0x335   :  { %v1587_v60 = vsel %vm1412_vm13, %v1585_v15, %v1586_v48  ;;  %v1222_v48 = vmul.f32 %v5127_v61, %v5089_v23  ;;  %v1961_v15 = vld [vmem:[#allocation2 + $0x50] sm:$0x3] }
 0x336   :  { %1106 = vrot.lane.b32.xlu1 %v1053_v24, %s4432_s4  ;;  %v1769_v24 = vmul.f32 %v4773_v41, %v1336_v25  ;;  %v2394_v29 = vmul.f32 %v4781_v46, %v1961_v15 }
 0x337   :  { %1086 = vrot.lane.b32.xlu0 %v1043_v4, %s4432_s4  ;;  %v2398_v4 = vmul.f32 %v4797_v55, %v5189_v33 }
 0x33a   :  { %1270 = vrot.lane.b32.xlu1 %v1217_v11, %s4429_s20  ;;  %v5203_v11 = vld [vmem:[#allocation2 + $0x78] sm:$0xfc] }
 0x33b   :  { %1250 = vrot.lane.b32.xlu0 %v1207_v30, %s4429_s20  ;;  %v7228_v30 = vrot.slane %v5196_v40, 2  ;;  %v2165_v39 = vmul.f32 %v4777_v43, %v5203_v11 }
 0x33e   :  { %1282 = vrot.lane.b32.xlu1 %v1223_v0, %s4429_s20  ;;  %v1821_v0 = vsel %vm1412_vm13, %v1819_v42, %v1820_v50  ;;  %v1485_v42 = vld [vmem:[#allocation2 + $0x20] sm:$0xfe] }
 0x33f   :  { %1098 = vrot.lane.b32.xlu0 %v1049_v36, %s4432_s4  ;;  %v5209_v36 = vmul.f32 %v4777_v43, %v5049_v21 }
 0x341   :  { %v2236_v37 = vrot.slane %v5209_v36, 2 }
 0x342   :  { %1092 = vrot.lane.b32.xlu1 %v1046_v3, %s4432_s4  ;;  %v2467_v3 = vrot.slane %v2398_v4, 2 }
 0x343   :  { %1262 = vrot.lane.b32.xlu0 %v1213_v5, %s4429_s20  ;;  %v1834_v5 = vrot.slane %v1769_v24, 1  ;;  %v2155_v24 = vmul.f32 %v4777_v43, %v5027_v58 }
 0x345   :  { %v1835_v49 = vsel %vm1412_vm13, %v1820_v50, %v1834_v5  ;;  %v1529_v5 = vmul.f32 %v4789_v51, %v1485_v42 }
 0x346   :  { %1256 = vrot.lane.b32.xlu1 %v1210_v27, %s4429_s20  ;;  %v5218_v27 = vsel %vm2037_vm14, %v7228_v30, %v2467_v3 }
 0x347   :  { %1118 = vrot.lane.b32.xlu0 %v1059_v9, %s4432_s4  ;;  %v1212_v9 = vmul.f32 %v5127_v61, %v5070_v62  ;;  %v1969_v61 = vld [vmem:[#allocation2 + $0xc8] sm:$0x3] }
 0x348   :  { %v2409_v50 = vmul.f32 %v4781_v46, %v1969_v61 }
 0x34a   :  { %1112 = vrot.lane.b32.xlu1 %v1056_v12, %s4432_s4  ;;  %v1344_v12 = vld [vmem:[#allocation2 + $0xc8] sm:$0x1] }
 0x34b   :  { %1258 = vrot.lane.b32.xlu0 %v1211_v56, %s4429_s20  ;;  %v1957_v56 = vld [vmem:[#allocation2] sm:$0xfc]  ;;  %v1550_v25 = vmul.f32 %v4755_v26, %v1344_v12 }
 0x34c   :  { %v2150_v58 = vmul.f32 %v4777_v43, %v1957_v56 }
 0x34d   :  { %v1625_v17 = vrot.slane %v1550_v25, 1  ;;  %v1597_v25 = vrot.slane %v1529_v5, 1 }
 0x34e   :  { %1276 = vrot.lane.b32.xlu1 %v1220_v63, %s4429_s20  ;;  %v2235_v63 = vrot.slane %v2165_v39, 2  ;;  %v2211_v39 = vrot.slane %v2155_v24, 2 }
 0x34f   :  { %1116 = vrot.lane.b32.xlu0 %v1058_v54, %s4432_s4  ;;  %v2384_v54 = vmul.f32 %v4781_v46, %v1957_v56  ;;  %v1626_v18 = vsel %vm1412_vm13, %v1611_v52, %v1625_v17 }
 0x350   :  { %v2237_v38 = vsel %vm2037_vm14, %v2235_v63, %v2236_v37 }
 0x351   :  { %v2444_v28 = vrot.slane %v2384_v54, 2 }
 0x352   :  { %1094 = vrot.lane.b32.xlu1 %v1047_v1, %s4432_s4  ;;  %v2445_v1 = vrot.slane %v2389_v47, 2  ;;  %v7322_v47 = vld [vmem:[#allocation27_spill] sm:$0xff] }
 0x353   :  { %1635 = vrot.lane.b32.xlu0 %v1587_v60, %s4432_s4  ;;  %v1779_v60 = vmul.f32 %v4773_v41, %v5049_v21  ;;  %v2470_v21 = vrot.slane %v5245_v16, 2  ;;  %v5269_v63 = vmul.f32 %v7322_v47, %v5135_v53  ;;  %v1763_v56 = vmul.f32 %v7322_v47, %v1485_v42  ;;  %v5295_v16 = vld [vmem:[#allocation2 + $0x20] sm:$0xfc] }
 0x355   :  { %v1845_v8 = vrot.slane %v1779_v60, 1  ;;  %v1832_v17 = vrot.slane %v5269_v63, 1 }
 0x356   :  { %1114 = vrot.lane.b32.xlu1 %v1057_v19, %s4432_s4  ;;  %v1774_v19 = vmul.f32 %v4773_v41, %v1340_v57  ;;  %v1784_v57 = vmul.f32 %v4773_v41, %v1344_v12 }
 0x357   :  { %1645 = vrot.lane.b32.xlu0 %v1601_v14, %s4432_s4  ;;  %v2446_v14 = vsel %vm2037_vm14, %v2444_v28, %v2445_v1 }
 0x358   :  { %v1859_v3 = vrot.slane %v1784_v57, 1  ;;  %v7325_v57 = vld [vmem:[#allocation28_spill] sm:$0xff] }
 0x359   :  { %v5304_v42 = vmul.f32 %v7325_v57, %v5135_v53 }
 0x35a   :  { %1278 = vrot.lane.b32.xlu1 %v1221_v31, %s4429_s20  ;;  %v2459_v31 = vrot.slane %v2394_v29, 2  ;;  %v1860_v12 = vsel %vm1412_vm13, %v1845_v8, %v1859_v3  ;;  %v5286_v29 = vmul.f32 %v4789_v51, %v5133_v7  ;;  %v1486_v3 = vld [vmem:[#allocation2 + $0x70] sm:$0x1] }
 0x35b   :  { %1655 = vrot.lane.b32.xlu0 %v1612_v13, %s4432_s4  ;;  %v1844_v13 = vrot.slane %v1774_v19, 1  ;;  %v1831_v19 = vrot.slane %v1763_v56, 1  ;;  %v1539_v36 = vmul.f32 %v4789_v51, %v1486_v3  ;;  %v5335_v56 = vld [vmem:[#allocation2 + $0xd0] sm:$0x1] }
 0x35c   :  { %v2460_v52 = vsel %vm2037_vm14, %v2445_v1, %v2459_v31  ;;  %v5277_v1 = vld [vmem:[#allocation2 + $0xe8] sm:$0x1] }
 0x35d   :  { %v1846_v4 = vsel %vm1412_vm13, %v1844_v13, %v1845_v8  ;;  %v1833_v31 = vsel %vm1412_vm13, %v1831_v19, %v1832_v17 }
 0x35e   :  { %1096 = vrot.lane.b32.xlu1 %v1048_v35, %s4432_s4  ;;  %v5258_v35 = vmul.f32 %v4789_v51, %v5135_v53 }
 0x35f   :  { %1869 = vrot.lane.b32.xlu0 %v1821_v0, %s4429_s20  ;;  %v2484_v0 = vrot.slane %v2409_v50, 2  ;;  %v1623_v50 = vrot.slane %v5286_v29, 1 }
 0x362   :  { %1260 = vrot.lane.b32.xlu1 %v1212_v9, %s4429_s20  ;;  %v2485_v9 = vsel %vm2037_vm14, %v2470_v21, %v2484_v0  ;;  %v5312_v0 = vld [vmem:[#allocation2 + $0x98] sm:$0xfc] }
 0x363   :  { %1879 = vrot.lane.b32.xlu0 %v1835_v49, %s4429_s20  ;;  %v1598_v49 = vrot.slane %v5258_v35, 1 }
 0x365   :  { %v1599_v60 = vsel %vm1412_vm13, %v1597_v25, %v1598_v49  ;;  %v2169_v25 = vmul.f32 %v7325_v57, %v5312_v0 }
 0x366   :  { %1280 = vrot.lane.b32.xlu1 %v1222_v48, %s4429_s20  ;;  %v2210_v48 = vrot.slane %v2150_v58, 2  ;;  %v2223_v58 = vrot.slane %v5304_v42, 2 }
 0x367   :  { %2280 = vrot.lane.b32.xlu0 %v2237_v38, %s4432_s4  ;;  %v2160_v38 = vmul.f32 %v4777_v43, %v1961_v15 }
 0x368   :  { %v2212_v28 = vsel %vm2037_vm14, %v2210_v48, %v2211_v39 }
 0x369   :  { %v2225_v15 = vrot.slane %v2160_v38, 2  ;;  %v1487_v38 = vld [vmem:[#allocation2 + $0x98] sm:$0xfe] }
 0x36a   :  { %1665 = vrot.lane.b32.xlu1 %v1626_v18, %s4432_s4  ;;  %v2175_v18 = vmul.f32 %v4777_v43, %v1969_v61 }
 0x36b   :  { %2494 = vrot.lane.b32.xlu0 %v2446_v14, %s4429_s20  ;;  %v1554_v14 = vmul.f32 %v4789_v51, %v5277_v1  ;;  %v2226_v13 = vsel %vm2037_vm14, %v2211_v39, %v2225_v15  ;;  %v5321_v39 = vmul.f32 %v7325_v57, %v5133_v7  ;;  %v1608_v15 = vrot.slane %v1539_v36, 1 }
 0x36c   :  { %v2250_v24 = vrot.slane %v2175_v18, 2  ;;  %v1544_v18 = vmul.f32 %v4789_v51, %v1487_v38 }
 0x36d   :  { %v1633_v61 = vrot.slane %v1554_v14, 1  ;;  %7326 = vst [vmem:[#allocation28_spill] sm:$0xff] %v5321_v39  ;;  %v7227_v29 = vrot.slane %v5321_v39, 2 }
 0x36e   :  { %1889 = vrot.lane.b32.xlu1 %v1846_v4, %s4429_s20  ;;  %v2399_v4 = vmul.f32 %v4781_v46, %v5203_v11  ;;  %v2251_v53 = vsel %vm2037_vm14, %v2236_v37, %v2250_v24  ;;  %v7328_v37 = vld [vmem:[#allocation21_spill] sm:$0xff] }
 0x36f   :  { %2504 = vrot.lane.b32.xlu0 %v2460_v52, %s4429_s20  ;;  %v2154_v52 = vmul.f32 %v7325_v57, %v5295_v16  ;;  %v1634_v5 = vsel %vm1412_vm13, %v1623_v50, %v1633_v61  ;;  %v5333_v48 = vsel %vm631_vm0, %v4755_v26, %v7328_v37  ;;  %7329 = vst [vmem:[#allocation21_spill] sm:$0xff] %v5335_v56  ;;  %v2247_v26 = vrot.slane %v2169_v25, 2 }
 0x370   :  { %v5271_v54 = vpop.permute.xlu0 %1080  ;;  %v5344_v19 = vmul.f32 %v5333_v48, %v5039_v59  ;;  %v1551_v14 = vmul.f32 %v5333_v48, %v5335_v56 }
 0x371   :  { %7323 = vst [vmem:[#allocation27_spill] sm:$0xff] %v5271_v54  ;;  %v2222_v11 = vrot.slane %v2154_v52, 2  ;;  %v2249_v24 = vsel %vm2037_vm14, %v2247_v26, %v7227_v29  ;;  %v1609_v52 = vsel %vm1412_vm13, %v1598_v49, %v1608_v15 }
 0x372   :  { %1899 = vrot.lane.b32.xlu1 %v1860_v12, %s4429_s20  ;;  %v2469_v12 = vrot.slane %v2399_v4, 2  ;;  %v7229_v4 = vrot.slane %v5344_v19, 1 }
 0x373   :  { %2524 = vrot.lane.b32.xlu0 %v2485_v9, %s4429_s20 }
 0x374   :  { %v5293_v8 = vpop.permute.xlu0 %1100 }
 0x375   :  { %7324 = vst [vmem:[#allocation31_spill] sm:$0xff] %v5293_v8 }
 0x376   :  { %2260 = vrot.lane.b32.xlu1 %v2212_v28, %s4432_s4  ;;  %v2471_v28 = vsel %vm2037_vm14, %v2469_v12, %v2470_v21  ;;  %v5353_v21 = vld [vmem:[#allocation2 + $0x80] sm:$0xfe]  ;;  %v1773_v12 = vmul.f32 %v7322_v47, %v1486_v3 }
 0x377   :  { %1643 = vrot.lane.b32.xlu0 %v1599_v60, %s4432_s4  ;;  %v2224_v60 = vsel %vm2037_vm14, %v2222_v11, %v2223_v58 }
 0x378   :  { %v5323_v9 = vpop.permute.xlu0 %1244  ;;  %v1842_v3 = vrot.slane %v1773_v12, 1 }
 0x379   :  { %7327 = vst [vmem:[#allocation32_spill] sm:$0xff] %v5323_v9 }
 0x37a   :  { %2270 = vrot.lane.b32.xlu1 %v2226_v13, %s4432_s4  ;;  %v7331_v13 = vld [vmem:[#allocation19_spill] sm:$0xff] }
 0x37b   :  { %1877 = vrot.lane.b32.xlu0 %v1833_v31, %s4429_s20  ;;  %v5358_v61 = vsel %vm633_vm2, %v4773_v41, %v7331_v13  ;;  %v1622_v41 = vrot.slane %v1544_v18, 1 }
 0x37c   :  { %v5351_v31 = vpop.permute.xlu0 %1264  ;;  %v1775_v11 = vmul.f32 %v5358_v61, %v5353_v21  ;;  %v1785_v15 = vmul.f32 %v5358_v61, %v5335_v56  ;;  %v5505_v56 = vld [vmem:[#allocation2 + $0xd0] sm:$0x3] }
 0x37d   :  { %7330 = vst [vmem:[#allocation33_spill] sm:$0xff] %v5351_v31  ;;  %v1624_v36 = vsel %vm1412_vm13, %v1622_v41, %v1623_v50  ;;  %v5393_v50 = vld [vmem:[#allocation2 + $0x8] sm:$0xfc] }
 0x37e   :  { %2290 = vrot.lane.b32.xlu1 %v2251_v53, %s4432_s4  ;;  %v1627_v53 = vrot.slane %v1551_v14, 1  ;;  %v1847_v26 = vrot.slane %v1775_v11, 1  ;;  %v1778_v14 = vmul.f32 %v7322_v47, %v1487_v38  ;;  %v1861_v11 = vrot.slane %v1785_v15, 1 }
 0x37f   :  { %1673 = vrot.lane.b32.xlu0 %v1634_v5, %s4432_s4  ;;  %v1780_v5 = vmul.f32 %v5358_v61, %v5039_v59 }
 0x380   :  { %v1628_v49 = vsel %vm1412_vm13, %v7229_v4, %v1627_v53  ;;  %v1843_v53 = vsel %vm1412_vm13, %v1832_v17, %v1842_v3  ;;  %v1856_v12 = vrot.slane %v1778_v14, 1 }
 0x382   :  { %2514 = vrot.lane.b32.xlu1 %v2471_v28, %s4429_s20  ;;  %v1783_v28 = vmul.f32 %v7322_v47, %v5133_v7 }
 0x383   :  { %2268 = vrot.lane.b32.xlu0 %v2224_v60, %s4432_s4  ;;  %v1848_v60 = vrot.slane %v1780_v5, 1 }
 0x384   :  { %v1857_v41 = vrot.slane %v1783_v28, 1 }
 0x385   :  { %v1849_v5 = vsel %vm1412_vm13, %v1847_v26, %v1848_v60  ;;  %v1862_v28 = vsel %vm1412_vm13, %v1848_v60, %v1861_v11  ;;  %v5435_v11 = vld [vmem:[#allocation2 + $0x10] sm:$0xfe] }
 0x386   :  { %1653 = vrot.lane.b32.xlu1 %v1609_v52, %s4432_s4  ;;  %v7333_v52 = vld [vmem:[#allocation20_spill] sm:$0xff]  ;;  %v1858_v26 = vsel %vm1412_vm13, %v1856_v12, %v1857_v41  ;;  %v5437_v12 = vld [vmem:[#allocation2 + $0x8] sm:$0xfe] }
 0x387   :  { %2288 = vrot.lane.b32.xlu0 %v2249_v24, %s4432_s4  ;;  %v5398_v7 = vsel %vm631_vm0, %v4777_v43, %v7333_v52  ;;  %7338 = vst [vmem:[#allocation35_spill] sm:$0xff] %v5437_v12  ;;  %v1760_v40 = vmul.f32 %v5358_v61, %v5437_v12 }
 0x388   :  { %v5374_v25 = vpop.permute.xlu1 %1088  ;;  %v5376_v35 = vpop.permute.xlu0 %1108  ;;  %v2156_v38 = vmul.f32 %v5398_v7, %v5030_v44  ;;  %v2151_v43 = vmul.f32 %v5398_v7, %v5393_v50 }
 0x38a   :  { %1663 = vrot.lane.b32.xlu1 %v1624_v36, %s4432_s4  ;;  %v5412_v36 = vld [vmem:[#allocation2 + $0x58] sm:$0x3]  ;;  %v2214_v3 = vrot.slane %v2156_v38, 2  ;;  %v2213_v14 = vrot.slane %v2151_v43, 2 }
 0x38b   :  { %1667 = vrot.lane.b32.xlu0 %v1628_v49, %s4432_s4  ;;  %v1788_v49 = vmul.f32 %v7322_v47, %v5277_v1  ;;  %v2161_v15 = vmul.f32 %v5398_v7, %v5412_v36 }
 0x38c   :  { %v5389_v18 = vpop.permute.xlu1 %1252 }
 0x38d   :  { %v5391_v24 = vpop.permute.xlu0 %1090  ;;  %v1867_v1 = vrot.slane %v1788_v49, 1  ;;  %v2227_v49 = vrot.slane %v2161_v15, 2 }
 0x38e   :  { %7332 = vst [vmem:[#allocation19_spill] sm:$0xff] %v5391_v24  ;;  %1887 = vrot.lane.b32.xlu1 %v1843_v53, %s4429_s20  ;;  %v7335_v53 = vld [vmem:[#allocation22_spill] sm:$0xff] }
 0x38f   :  { %1891 = vrot.lane.b32.xlu0 %v1849_v5, %s4429_s20  ;;  %v2164_v5 = vmul.f32 %v7325_v57, %v5189_v33  ;;  %v5429_v2 = vsel %vm631_vm0, %v7328_v37, %v7335_v53  ;;  %v1868_v43 = vsel %vm1412_vm13, %v1857_v41, %v1867_v1  ;;  %v1531_v37 = vmul.f32 %v5333_v48, %v5030_v44 }
 0x390   :  { %v5414_v63 = vpop.permute.xlu1 %1272  ;;  %v5443_v33 = vmul.f32 %v5429_v2, %v5059_v10  ;;  %v1527_v29 = vmul.f32 %v5429_v2, %v5435_v11  ;;  %v5454_v41 = vsub.s32 3, %v4544_v22  ;;  %v2228_v4 = vsel %vm2037_vm14, %v2214_v3, %v2227_v49 }
 0x391   :  { %v5416_v17 = vpop.permute.xlu0 %1254  ;;  %v5471_v31 = vmul.f32 %v5429_v2, %v5042_v6 }
 0x392   :  { %7334 = vst [vmem:[#allocation20_spill] sm:$0xff] %v5416_v17  ;;  %1897 = vrot.lane.b32.xlu1 %v1858_v26, %s4429_s20  ;;  %v2233_v26 = vrot.slane %v2164_v5, 2  ;;  %7339 = vst [vmem:[#allocation36_spill] sm:$0xff] %v5454_v41  ;;  %v5486_v5 = vld [vmem:[#allocation8 + $0x8] sm:$0xff] }
 0x393   :  { %1901 = vrot.lane.b32.xlu0 %v1862_v28, %s4429_s20  ;;  %v2215_v28 = vsel %vm2037_vm14, %v2213_v14, %v2214_v3  ;;  %v1526_v14 = vmul.f32 %v5333_v48, %v5437_v12  ;;  %v1591_v3 = vrot.slane %v1527_v29, 1  ;;  %v5509_v9 = vrot.slane %v5486_v5, %v4811_v34 }
 0x394   :  { %v5431_v60 = vpop.permute.xlu1 %1082  ;;  %v2234_v15 = vsel %vm2037_vm14, %v2223_v58, %v2233_v26  ;;  %v5479_v58 = vld [vmem:[#allocation2 + $0x60] sm:$0x1]  ;;  %v7342_v26 = vld [vmem:[#allocation24_spill] sm:$0xff] }
 0x395   :  { %7336 = vst [vmem:[#allocation22_spill] sm:$0xff] %v5431_v60  ;;  %v5433_v38 = vpop.permute.xlu0 %1110  ;;  %v1588_v49 = vrot.slane %v1526_v14, 1  ;;  %7343 = vst [vmem:[#allocation24_spill] sm:$0xff] %v5486_v5  ;;  %v977_v39 = vmul.f32 %v5509_v9, %v5065_v20 }
 0x396   :  { %7337 = vst [vmem:[#allocation34_spill] sm:$0xff] %v5433_v38  ;;  %1907 = vrot.lane.b32.xlu1 %v1868_v43, %s4429_s20  ;;  %v5463_v43 = vld [vmem:[#allocation2 + $0x58] sm:$0x1]  ;;  %v1589_v38 = vrot.slane %v1531_v37, 1  ;;  %v5484_v37 = vsel %vm633_vm2, %v7331_v13, %v7342_v26  ;;  %7348 = vst [vmem:[#allocation42_spill] sm:$0xff] %v5509_v9 }
 0x397   :  { %2262 = vrot.lane.b32.xlu0 %v2215_v28, %s4432_s4  ;;  %v5461_v28 = vld [vmem:[#allocation2 + $0x88] sm:$0xfe]  ;;  %v1536_v42 = vmul.f32 %v5333_v48, %v5463_v43  ;;  %v5503_v13 = vmul.f32 %v5484_v37, %v5059_v10  ;;  %v5594_v9 = vld [vmem:[#allocation2 + $0x90] sm:$0xfe] }
 0x398   :  { %v5456_v1 = vpop.permute.xlu1 %1102  ;;  %v1590_v17 = vsel %vm1412_vm13, %v1588_v49, %v1589_v38  ;;  %v7349_v49 = vld [vmem:[#allocation23_spill] sm:$0xff] }
 0x399   :  { %7340 = vst [vmem:[#allocation37_spill] sm:$0xff] %v5456_v1  ;;  %v5458_v30 = vpop.permute.xlu0 %1274 }
 0x39a   :  { %7341 = vst [vmem:[#allocation38_spill] sm:$0xff] %v5458_v30  ;;  %2278 = vrot.lane.b32.xlu1 %v2234_v15, %s4432_s4  ;;  %v1542_v30 = vmul.f32 %v5429_v2, %v5461_v28  ;;  %v7347_v15 = vrot.slane %v5443_v33, 1 }
 0x39b   :  { %2272 = vrot.lane.b32.xlu0 %v2228_v4, %s4432_s4  ;;  %v5490_v4 = vrot.slane %v5486_v5, %v5454_v41  ;;  %v5532_v5 = vld [vmem:[#allocation8 + $0x18] sm:$0xff] }
 0x39c   :  { %v5492_v29 = vpop.permute.xlu1 %1246  ;;  %v1593_v8 = vsel %vm1412_vm13, %v1591_v3, %v7347_v15  ;;  %v1771_v3 = vmul.f32 %v5484_v37, %v5479_v58  ;;  %v5518_v15 = vsel %vm633_vm2, %v4781_v46, %v7349_v49  ;;  %v1616_v24 = vrot.slane %v1542_v30, 1  ;;  %7353 = vst [vmem:[#allocation45_spill] sm:$0xff] %v5532_v5 }
 0x39d   :  { %7344 = vst [vmem:[#allocation39_spill] sm:$0xff] %v5490_v4  ;;  %7345 = vst [vmem:[#allocation40_spill] sm:$0xff] %v5492_v29  ;;  %v5494_v14 = vpop.permute.xlu0 %1084  ;;  %v1541_v29 = vmul.f32 %v5333_v48, %v5353_v21  ;;  %v5524_v54 = vmul.f32 %v5490_v4, %v5039_v59  ;;  %v5536_v46 = vrot.slane %v5532_v5, %v4811_v34 }
 0x39e   :  { %7346 = vst [vmem:[#allocation41_spill] sm:$0xff] %v5494_v14  ;;  %1637 = vrot.lane.b32.xlu1 %v1590_v17, %s4432_s4  ;;  %v1602_v14 = vrot.slane %v1536_v42, 1  ;;  %v5540_v30 = vmul.f32 %v5398_v7, %v5039_v59  ;;  %v2176_v48 = vmul.f32 %v5398_v7, %v5505_v56  ;;  %v7354_v42 = vrot.slane %v5471_v31, 1 }
 0x39f   :  { %1639 = vrot.lane.b32.xlu0 %v1593_v8, %s4432_s4  ;;  %7350 = vst [vmem:[#allocation23_spill] sm:$0xff] %v5524_v54  ;;  %v1377_v8 = vmul.f32 %v5490_v4, %v5353_v21 }
 0x3a0   :  { %v5528_v17 = vpop.permute.xlu1 %1266  ;;  %v1618_v4 = vsel %vm1412_vm13, %v1616_v24, %v7354_v42  ;;  %v1603_v22 = vsel %vm1412_vm13, %v1589_v38, %v1602_v14  ;;  %v1613_v24 = vrot.slane %v1541_v29, 1  ;;  %v5562_v42 = vld [vmem:[#allocation2 + $0x80] sm:$0xfc]  ;;  %v5566_v38 = vrot.slane %v5532_v5, %v5454_v41 }
 0x3a1   :  { %7351 = vst [vmem:[#allocation43_spill] sm:$0xff] %v5528_v17  ;;  %v5530_v60 = vpop.permute.xlu0 %1104  ;;  %v7357_v5 = vrot.slane %v5503_v13, 1 }
 0x3a2   :  { %7352 = vst [vmem:[#allocation44_spill] sm:$0xff] %v5530_v60  ;;  %v1129_v21 = vsel %vm635_vm1, %v5456_v1, %v5530_v60  ;;  %1647 = vrot.lane.b32.xlu1 %v1603_v22, %s4432_s4  ;;  %v5560_v60 = vmul.f32 %v5358_v61, %v5030_v44  ;;  %v1838_v1 = vrot.slane %v1771_v3, 1  ;;  %v5576_v3 = vmul.f32 %v5518_v15, %v5039_v59 }
 0x3a3   :  { %1659 = vrot.lane.b32.xlu0 %v1618_v4, %s4432_s4  ;;  %v1436_v4 = vrot.slane %v1377_v8, 1  ;;  %v1161_v14 = vadd.f32 %v1129_v21, %v977_v39  ;;  %v7358_v39 = vrot.slane %v5344_v19, 1  ;;  %v2252_v21 = vrot.slane %v2176_v48, 2 }
 0x3a4   :  { %v5569_v22 = vpop.permute.xlu1 %1248  ;;  %v1839_v20 = vsel %vm1412_vm13, %v7357_v5, %v1838_v1  ;;  %v1822_v59 = vrot.slane %v1760_v40, 1  ;;  %v1823_v12 = vrot.slane %v5560_v60, 1  ;;  %v1770_v19 = vmul.f32 %v5358_v61, %v5463_v43  ;;  %v5598_v1 = vld [vmem:[#allocation2 + $0xd8] sm:$0x1] }
 0x3a5   :  { %7355 = vst [vmem:[#allocation46_spill] sm:$0xff] %v5569_v22  ;;  %v5571_v34 = vpop.permute.xlu0 %1268  ;;  %v1615_v8 = vsel %vm1412_vm13, %v1613_v24, %v7358_v39  ;;  %7359 = vst [vmem:[#allocation48_spill] sm:$0xff] %v5598_v1  ;;  %v7360_v5 = vrot.slane %v5524_v54, 1  ;;  %v5605_v40 = vmul.f32 %v5566_v38, %v5070_v62  ;;  %v5609_v60 = vmul.f32 %v5566_v38, %v5089_v23 }
 0x3a6   :  { %7356 = vst [vmem:[#allocation47_spill] sm:$0xff] %v5571_v34  ;;  %v1293_v29 = vsel %vm633_vm2, %v5528_v17, %v5571_v34  ;;  %1657 = vrot.lane.b32.xlu1 %v1615_v8, %s4432_s4  ;;  %v2400_v34 = vmul.f32 %v5518_v15, %v5562_v42  ;;  %v5592_v17 = vld [vmem:[#allocation2 + $0x18] sm:$0xfe]  ;;  %v979_v24 = vmul.f32 %v5536_v46, %v5107_v45 }
 0x3a7   :  { %v1325_v22 = vadd.f32 %v1293_v29, %v1161_v14  ;;  %1883 = vrot.lane.b32.xlu0 %v1839_v20, %s4429_s20  ;;  %v1438_v48 = vsel %vm1412_vm13, %v1436_v4, %v7360_v5  ;;  %7361 = vst [vmem:[#allocation49_spill] sm:$0xff] %v5605_v40  ;;  %7362 = vst [vmem:[#allocation50_spill] sm:$0xff] %v5609_v60  ;;  %v7365_v14 = vrot.slane %v5540_v30, 2 }
 0x3a8   :  { %v5613_v20 = vpop.permute.xlu1 %1106  ;;  %v1379_v5 = vmul.f32 %v5566_v38, %v5594_v9  ;;  %v1367_v54 = vmul.f32 %v5566_v38, %v5592_v17  ;;  %v1786_v4 = vmul.f32 %v5484_v37, %v5598_v1 }
 0x3a9   :  { %7363 = vst [vmem:[#allocation51_spill] sm:$0xff] %v5613_v20  ;;  %v5615_v61 = vpop.permute.xlu0 %1086  ;;  %v2253_v29 = vsel %vm2037_vm14, %v7365_v14, %v2252_v21  ;;  %v5621_v39 = vadd.f32 %v1438_v48, %v1325_v22  ;;  %v1131_v8 = vsel %vm635_vm1, %v5613_v20, %v5376_v35  ;;  %v971_v21 = vmul.f32 %v5536_v46, %v5109_v32 }
 0x3aa   :  { %7364 = vst [vmem:[#allocation52_spill] sm:$0xff] %v5615_v61  ;;  %v1123_v45 = vsel %vm635_vm1, %v5615_v61, %v5374_v25  ;;  %v1824_v22 = vsel %vm1412_vm13, %v1822_v59, %v1823_v12  ;;  %v2472_v48 = vrot.slane %v2400_v34, 2  ;;  %v1552_v35 = vmul.f32 %v5429_v2, %v5598_v1 }
 0x3ab   :  { %7366 = vst [vmem:[#allocation53_spill] sm:$0xff] %v5621_v39  ;;  %2292 = vrot.lane.b32.xlu0 %v2253_v29, %s4432_s4  ;;  %1871 = vrot.lane.b32.xlu1 %v1824_v22, %s4429_s20  ;;  %v1836_v25 = vrot.slane %v1770_v19, 1  ;;  %v1537_v14 = vmul.f32 %v5429_v2, %v5479_v58  ;;  %v1163_v39 = vadd.f32 %v1131_v8, %v979_v24  ;;  %v7369_v34 = vrot.slane %v5576_v3, 2 }
 0x3ac   :  { %v1155_v32 = vadd.f32 %v1123_v45, %v971_v21  ;;  %v5644_v61 = vpop.permute.xlu1 %1270  ;;  %v5653_v19 = vmul.f32 %v5484_v37, %v5042_v6  ;;  %v1442_v8 = vrot.slane %v1379_v5, 1  ;;  %v1422_v45 = vrot.slane %v1367_v54, 1  ;;  %v7370_v21 = vld [vmem:[#allocation25_spill] sm:$0xff] }
 0x3ad   :  { %7367 = vst [vmem:[#allocation54_spill] sm:$0xff] %v5644_v61  ;;  %v5646_v29 = vpop.permute.xlu0 %1250  ;;  %v2474_v59 = vsel %vm2037_vm14, %v2472_v48, %v7369_v34  ;;  %v1295_v2 = vsel %vm633_vm2, %v5644_v61, %v5414_v63  ;;  %v5664_v22 = vsel %vm631_vm0, %v7333_v52, %v7370_v21  ;;  %v1837_v20 = vsel %vm1412_vm13, %v1823_v12, %v1836_v25 }
 0x3ae   :  { %7368 = vst [vmem:[#allocation55_spill] sm:$0xff] %v5646_v29  ;;  %v1287_v24 = vsel %vm633_vm2, %v5646_v29, %v5389_v18  ;;  %v1327_v48 = vadd.f32 %v1295_v2, %v1163_v39  ;;  %v1629_v63 = vrot.slane %v1552_v35, 1  ;;  %v7371_v18 = vrot.slane %v5605_v40, 1 }
 0x3af   :  { %v1319_v34 = vadd.f32 %v1287_v24, %v1155_v32  ;;  %2516 = vrot.lane.b32.xlu0 %v2474_v59, %s4429_s20  ;;  %1881 = vrot.lane.b32.xlu1 %v1837_v20, %s4429_s20  ;;  %v7372_v5 = vrot.slane %v5609_v60, 1  ;;  %v1604_v59 = vrot.slane %v1537_v14, 1  ;;  %v2166_v12 = vmul.f32 %v5398_v7, %v5562_v42  ;;  %v5683_v20 = vld [vmem:[#allocation2 + $0x60] sm:$0x3] }
 0x3b0   :  { %v1424_v54 = vsel %vm1412_vm13, %v1422_v45, %v7371_v18  ;;  %v5677_v39 = vpop.permute.xlu1 %1282  ;;  %7375 = vst [vmem:[#allocation57_spill] sm:$0xff] %v5683_v20  ;;  %v7378_v2 = vrot.slane %v5471_v31, 1  ;;  %v5695_v45 = vmul.f32 %v5664_v22, %v5059_v10  ;;  %v7379_v7 = vrot.slane %v5443_v33, 1 }
 0x3b1   :  { %v1444_v52 = vsel %vm1412_vm13, %v1442_v8, %v7372_v5  ;;  %7373 = vst [vmem:[#allocation25_spill] sm:$0xff] %v5677_v39  ;;  %v5679_v32 = vpop.permute.xlu0 %1098  ;;  %v5685_v35 = vadd.f32 %v1424_v54, %v1319_v34  ;;  %v7256_v8 = vrot.slane %v5653_v19, 1  ;;  %v1863_v31 = vrot.slane %v1786_v4, 1 }
 0x3b2   :  { %7374 = vst [vmem:[#allocation56_spill] sm:$0xff] %v5679_v32  ;;  %v5687_v25 = vadd.f32 %v1444_v52, %v1327_v48  ;;  %v1630_v24 = vsel %vm1412_vm13, %v7378_v2, %v1629_v63  ;;  %v1605_v14 = vsel %vm1412_vm13, %v7379_v7, %v1604_v59  ;;  %v2390_v48 = vmul.f32 %v5518_v15, %v5030_v44 }
 0x3b3   :  { %7376 = vst [vmem:[#allocation58_spill] sm:$0xff] %v5685_v35  ;;  %1669 = vrot.lane.b32.xlu0 %v1630_v24, %s4432_s4  ;;  %1649 = vrot.lane.b32.xlu1 %v1605_v14, %s4432_s4  ;;  %v2162_v34 = vmul.f32 %v5664_v22, %v5683_v20  ;;  %v2238_v54 = vrot.slane %v2166_v12, 2  ;;  %v2385_v5 = vmul.f32 %v5518_v15, %v5393_v50  ;;  %v7255_v4 = vrot.slane %v5695_v45, 2 }
 0x3b4   :  { %7377 = vst [vmem:[#allocation59_spill] sm:$0xff] %v5687_v25  ;;  %v5706_v63 = vpop.permute.xlu1 %1092  ;;  %v5715_v33 = vsel %vm631_vm0, %v7335_v53, %v4789_v51  ;;  %v1864_v44 = vsel %vm1412_vm13, %v7256_v8, %v1863_v31  ;;  %v7381_v59 = vrot.slane %v5540_v30, 2  ;;  %v2448_v2 = vrot.slane %v2390_v48, 2 }
 0x3b5   :  { %v5708_v18 = vpop.permute.xlu0 %1262  ;;  %v5723_v52 = vmul.f32 %v5715_v33, %v5070_v62  ;;  %v2229_v51 = vrot.slane %v2162_v34, 2  ;;  %v1528_v53 = vmul.f32 %v5715_v33, %v5592_v17  ;;  %v2447_v14 = vrot.slane %v2385_v5, 2 }
 0x3b6   :  { %7380 = vst [vmem:[#allocation60_spill] sm:$0xff] %v5708_v18  ;;  %v2240_v12 = vsel %vm2037_vm14, %v2238_v54, %v7381_v59  ;;  %v2395_v31 = vmul.f32 %v5518_v15, %v5412_v36  ;;  %v5746_v34 = vmul.f32 %v5664_v22, %v5042_v6 }
 0x3b7   :  { %1903 = vrot.lane.b32.xlu0 %v1864_v44, %s4429_s20  ;;  %2282 = vrot.lane.b32.xlu1 %v2240_v12, %s4432_s4  ;;  %v5738_v44 = vld [vmem:[#allocation2 + $0x88] sm:$0xfc]  ;;  %v2230_v30 = vsel %vm2037_vm14, %v7255_v4, %v2229_v51  ;;  %v7257_v48 = vrot.slane %v5723_v52, 1  ;;  %v2449_v54 = vsel %vm2037_vm14, %v2447_v14, %v2448_v2  ;;  %v1594_v5 = vrot.slane %v1528_v53, 1  ;;  %v7384_v12 = vld [vmem:[#allocation26_spill] sm:$0xff] }
 0x3b8   :  { %v5732_v24 = vpop.permute.xlu1 %1256  ;;  %7383 = vst [vmem:[#allocation62_spill] sm:$0xff] %v5738_v44  ;;  %v2167_v59 = vmul.f32 %v5664_v22, %v5738_v44  ;;  %v5756_v51 = vsel %vm633_vm2, %v7349_v49, %v7384_v12  ;;  %v2461_v6 = vrot.slane %v2395_v31, 2  ;;  %v2242_v14 = vrot.slane %v5746_v34, 2 }
 0x3b9   :  { %v5734_v7 = vpop.permute.xlu0 %1118  ;;  %v1596_v53 = vsel %vm1412_vm13, %v1594_v5, %v7257_v48  ;;  %v2396_v25 = vmul.f32 %v5756_v51, %v5683_v20  ;;  %v1776_v34 = vmul.f32 %v5484_v37, %v5461_v28  ;;  %v2410_v48 = vmul.f32 %v5518_v15, %v5505_v56 }
 0x3ba   :  { %7382 = vst [vmem:[#allocation61_spill] sm:$0xff] %v5734_v7  ;;  %v2462_v49 = vsel %vm2037_vm14, %v2448_v2, %v2461_v6  ;;  %v2241_v31 = vrot.slane %v2167_v59, 2  ;;  %v5807_v59 = vld [vmem:[#allocation2 + $0xd8] sm:$0x3] }
 0x3bb   :  { %2274 = vrot.lane.b32.xlu0 %v2230_v30, %s4432_s4  ;;  %2496 = vrot.lane.b32.xlu1 %v2449_v54, %s4429_s20  ;;  %v1761_v30 = vmul.f32 %v5484_v37, %v5435_v11  ;;  %v5770_v54 = vmul.f32 %v5756_v51, %v5059_v10  ;;  %v5786_v10 = vsel %vm633_vm2, %v7342_v26, %v7322_v47  ;;  %v2463_v37 = vrot.slane %v2396_v25, 2  ;;  %v5813_v25 = vld [vmem:[#allocation2 + $0x10] sm:$0xfc] }
 0x3bc   :  { %v5758_v4 = vpop.permute.xlu1 %1112  ;;  %v2243_v2 = vsel %vm2037_vm14, %v2241_v31, %v2242_v14  ;;  %v5792_v6 = vmul.f32 %v5786_v10, %v5070_v62  ;;  %v1762_v47 = vmul.f32 %v5786_v10, %v5592_v17  ;;  %v1850_v31 = vrot.slane %v1776_v34, 1  ;;  %7389 = vst [vmem:[#allocation65_spill] sm:$0xff] %v5807_v59  ;;  %7391 = vst [vmem:[#allocation66_spill] sm:$0xff] %v5813_v25 }
 0x3bd   :  { %v5760_v8 = vpop.permute.xlu0 %1258  ;;  %v1825_v5 = vrot.slane %v1761_v30, 1  ;;  %v7387_v30 = vrot.slane %v5503_v13, 1  ;;  %v7390_v13 = vrot.slane %v5770_v54, 2  ;;  %v7392_v17 = vrot.slane %v5653_v19, 1 }
 0x3be   :  { %7385 = vst [vmem:[#allocation26_spill] sm:$0xff] %v5760_v8  ;;  %v1828_v34 = vrot.slane %v1762_v47, 1  ;;  %v2177_v15 = vmul.f32 %v5664_v22, %v5807_v59  ;;  %v1782_v47 = vmul.f32 %v5786_v10, %v5089_v23  ;;  %v5848_v8 = vld [vmem:[#allocation2 + $0xe0] sm:$0x1] }
 0x3bf   :  { %1641 = vrot.lane.b32.xlu0 %v1596_v53, %s4432_s4  ;;  %2506 = vrot.lane.b32.xlu1 %v2462_v49, %s4429_s20  ;;  %v1827_v53 = vsel %vm1412_vm13, %v1825_v5, %v7387_v30  ;;  %v2464_v5 = vsel %vm2037_vm14, %v7390_v13, %v2463_v37  ;;  %v1852_v30 = vsel %vm1412_vm13, %v1850_v31, %v7392_v17  ;;  %v2486_v37 = vrot.slane %v2410_v48, 2 }
 0x3c0   :  { %v5777_v39 = vpop.permute.xlu1 %1276  ;;  %v2152_v13 = vmul.f32 %v5664_v22, %v5813_v25  ;;  %v7394_v31 = vrot.slane %v5576_v3, 2  ;;  %v2254_v48 = vrot.slane %v2177_v15, 2  ;;  %v1777_v22 = vmul.f32 %v5786_v10, %v5594_v9 }
 0x3c1   :  { %v5779_v7 = vpop.permute.xlu0 %1116 }
 0x3c2   :  { %7386 = vst [vmem:[#allocation63_spill] sm:$0xff] %v5779_v7  ;;  %v2487_v17 = vsel %vm2037_vm14, %v7394_v31, %v2486_v37  ;;  %v2255_v3 = vsel %vm2037_vm14, %v2242_v14, %v2254_v48  ;;  %v1854_v37 = vrot.slane %v1782_v47, 1  ;;  %v1853_v31 = vrot.slane %v1777_v22, 1  ;;  %v5864_v47 = vld [vmem:[#allocation2 + $0x68] sm:$0x3] }
 0x3c3   :  { %2284 = vrot.lane.b32.xlu0 %v2243_v2, %s4432_s4  ;;  %1873 = vrot.lane.b32.xlu1 %v1827_v53, %s4429_s20  ;;  %v7259_v2 = vrot.slane %v5792_v6, 1  ;;  %v2386_v14 = vmul.f32 %v5756_v51, %v5813_v25  ;;  %7399 = vst [vmem:[#allocation71_spill] sm:$0xff] %v5864_v47  ;;  %v7400_v22 = vrot.slane %v5723_v52, 1  ;;  %v5893_v52 = vld [vmem:[#allocation2 + $0x90] sm:$0xfc] }
 0x3c4   :  { %v5801_v26 = vpop.permute.xlu1 %1094  ;;  %7402 = vst [vmem:[#allocation73_spill] sm:$0xff] %v5893_v52 }
 0x3c5   :  { %7388 = vst [vmem:[#allocation64_spill] sm:$0xff] %v5801_v26  ;;  %v5803_v49 = vpop.permute.xlu0 %1635  ;;  %v1830_v19 = vsel %vm1412_vm13, %v1828_v34, %v7259_v2  ;;  %v2216_v2 = vrot.slane %v2152_v13, 2  ;;  %v1787_v13 = vmul.f32 %v5786_v10, %v5848_v8 }
 0x3c7   :  { %2508 = vrot.lane.b32.xlu0 %v2464_v5, %s4429_s20  ;;  %1893 = vrot.lane.b32.xlu1 %v1852_v30, %s4429_s20  ;;  %v5831_v5 = vld [vmem:[#allocation2 + $0x68] sm:$0x1] }
 0x3c8   :  { %v5822_v53 = vpop.permute.xlu1 %1114  ;;  %v1538_v18 = vmul.f32 %v5715_v33, %v5831_v5 }
 0x3c9   :  { %7393 = vst [vmem:[#allocation67_spill] sm:$0xff] %v5822_v53  ;;  %v5824_v7 = vpop.permute.xlu0 %1645 }
 0x3ca   :  { %v1606_v32 = vrot.slane %v1538_v18, 1 }
 0x3cb   :  { %1875 = vrot.lane.b32.xlu0 %v1830_v19, %s4429_s20  ;;  %2526 = vrot.lane.b32.xlu1 %v2487_v17, %s4429_s20  ;;  %v7397_v19 = vrot.slane %v5695_v45, 2  ;;  %v5869_v45 = vsel %vm631_vm0, %v7370_v21, %v7325_v57  ;;  %v1865_v21 = vrot.slane %v1787_v13, 1 }
 0x3cc   :  { %v5842_v30 = vpop.permute.xlu1 %1278  ;;  %v5874_v48 = vmul.f32 %v5869_v45, %v5070_v62  ;;  %v1607_v18 = vsel %vm1412_vm13, %v7400_v22, %v1606_v32  ;;  %v1543_v32 = vmul.f32 %v5715_v33, %v5594_v9  ;;  %v2173_v13 = vmul.f32 %v5869_v45, %v5089_v23 }
 0x3cd   :  { %7395 = vst [vmem:[#allocation68_spill] sm:$0xff] %v5842_v30  ;;  %v5844_v34 = vpop.permute.xlu0 %1655  ;;  %v2218_v15 = vsel %vm2037_vm14, %v2216_v2, %v7397_v19  ;;  %v1855_v2 = vsel %vm1412_vm13, %v1853_v31, %v1854_v37  ;;  %v2163_v19 = vmul.f32 %v5869_v45, %v5864_v47  ;;  %v2450_v31 = vrot.slane %v2386_v14, 2 }
 0x3ce   :  { %7396 = vst [vmem:[#allocation69_spill] sm:$0xff] %v5844_v34  ;;  %v1619_v22 = vrot.slane %v1543_v32, 1 }
 0x3cf   :  { %2294 = vrot.lane.b32.xlu0 %v2255_v3, %s4432_s4  ;;  %2264 = vrot.lane.b32.xlu1 %v2218_v15, %s4432_s4  ;;  %v5882_v3 = vmul.f32 %v5715_v33, %v5089_v23  ;;  %v2231_v9 = vrot.slane %v2163_v19, 2  ;;  %v1772_v23 = vmul.f32 %v5786_v10, %v5831_v5  ;;  %v2245_v19 = vrot.slane %v2173_v13, 2  ;;  %v5929_v10 = vld [vmem:[#allocation2 + $0xb0] sm:$0xff] }
 0x3d0   :  { %v5858_v17 = vpop.permute.xlu1 %1096 }
 0x3d1   :  { %7398 = vst [vmem:[#allocation70_spill] sm:$0xff] %v5858_v17  ;;  %v5860_v30 = vpop.permute.xlu0 %1869  ;;  %v1620_v14 = vrot.slane %v5882_v3, 1  ;;  %v7406_v3 = vrot.slane %v5874_v48, 2 }
 0x3d3   :  { %1895 = vrot.lane.b32.xlu0 %v1855_v2, %s4429_s20  ;;  %1651 = vrot.lane.b32.xlu1 %v1607_v18, %s4432_s4  ;;  %v1866_v2 = vsel %vm1412_vm13, %v1854_v37, %v1865_v21  ;;  %v7403_v18 = vrot.slane %v5770_v54, 2  ;;  %v5916_v54 = vsel %vm633_vm2, %v7384_v12, %v4797_v55  ;;  %v1621_v32 = vsel %vm1412_vm13, %v1619_v22, %v1620_v14 }
 0x3d4   :  { %v5887_v15 = vpop.permute.xlu1 %1260  ;;  %v2406_v12 = vmul.f32 %v5929_v10, %v5756_v51  ;;  %v2397_v13 = vmul.f32 %v5916_v54, %v5864_v47  ;;  %v2401_v22 = vmul.f32 %v5756_v51, %v5738_v44  ;;  %v4307_v44 = vld [vmem:[#allocation2 + $0x50] sm:$0x1] }
 0x3d5   :  { %7401 = vst [vmem:[#allocation72_spill] sm:$0xff] %v5887_v15  ;;  %v5889_v62 = vpop.permute.xlu0 %1879  ;;  %v2452_v17 = vsel %vm2037_vm14, %v2450_v31, %v7403_v18  ;;  %v2168_v15 = vmul.f32 %v5869_v45, %v5893_v52  ;;  %v5921_v31 = vld [vmem:[#allocation2 + $0x40] sm:$0xff] }
 0x3d6   :  { %v2476_v60 = vrot.slane %v2406_v12, 2  ;;  %v2465_v26 = vrot.slane %v2397_v13, 2 }
 0x3d7   :  { %1905 = vrot.lane.b32.xlu0 %v1866_v2, %s4429_s20  ;;  %2498 = vrot.lane.b32.xlu1 %v2452_v17, %s4429_s20  ;;  %v2232_v17 = vsel %vm2037_vm14, %v7406_v3, %v2231_v9  ;;  %v5925_v2 = vmul.f32 %v5921_v31, %v5916_v54  ;;  %v2244_v18 = vrot.slane %v2168_v15, 2 }
 0x3d8   :  { %v5907_v37 = vpop.permute.xlu1 %1280 }
 0x3d9   :  { %7404 = vst [vmem:[#allocation74_spill] sm:$0xff] %v5907_v37  ;;  %v5909_v21 = vpop.permute.xlu0 %2280  ;;  %v1840_v37 = vrot.slane %v1772_v23, 1  ;;  %v2246_v53 = vsel %vm2037_vm14, %v2244_v18, %v2245_v19  ;;  %v2454_v61 = vrot.slane %v5925_v2, 2  ;;  %v2475_v18 = vrot.slane %v2401_v22, 2 }
 0x3da   :  { %7405 = vst [vmem:[#allocation75_spill] sm:$0xff] %v5909_v21  ;;  %v1553_v2 = vmul.f32 %v5715_v33, %v5848_v8 }
 0x3db   :  { %2276 = vrot.lane.b32.xlu0 %v2232_v17, %s4432_s4  ;;  %1661 = vrot.lane.b32.xlu1 %v1621_v32, %s4432_s4  ;;  %v5942_v17 = vld [vmem:[#allocation2 + $0xe0] sm:$0x3]  ;;  %v7410_v32 = vrot.slane %v5792_v6, 1  ;;  %v2466_v6 = vsel %vm2037_vm14, %v2454_v61, %v2465_v26  ;;  %v2477_v12 = vsel %vm2037_vm14, %v2475_v18, %v2476_v60  ;;  %v5976_v18 = vld [vmem:[#allocation2 + $0x18] sm:$0xfc] }
 0x3dc   :  { %v5936_v9 = vpop.permute.xlu1 %1665  ;;  %7409 = vst [vmem:[#allocation78_spill] sm:$0xff] %v5942_v17  ;;  %v2178_v23 = vmul.f32 %v5869_v45, %v5942_v17  ;;  %v2412_v22 = vmul.f32 %v5916_v54, %v5942_v17  ;;  %v1631_v26 = vrot.slane %v1553_v2, 1  ;;  %7416 = vst [vmem:[#allocation84_spill] sm:$0xff] %v5976_v18 }
 0x3dd   :  { %7407 = vst [vmem:[#allocation76_spill] sm:$0xff] %v5936_v9  ;;  %v5938_v3 = vpop.permute.xlu0 %2494  ;;  %v1841_v15 = vsel %vm1412_vm13, %v7410_v32, %v1840_v37  ;;  %v5960_v37 = vld [vmem:[#allocation2 + $0xb8] sm:$0xff] }
 0x3de   :  { %7408 = vst [vmem:[#allocation77_spill] sm:$0xff] %v5938_v3  ;;  %7413 = vst [vmem:[#allocation81_spill] sm:$0xff] %v5960_v37  ;;  %v2256_v13 = vrot.slane %v2178_v23, 2  ;;  %v2490_v23 = vrot.slane %v2412_v22, 2 }
 0x3df   :  { %2286 = vrot.lane.b32.xlu0 %v2246_v53, %s4432_s4  ;;  %1885 = vrot.lane.b32.xlu1 %v1841_v15, %s4429_s20  ;;  %v2407_v53 = vmul.f32 %v5960_v37, %v5916_v54  ;;  %v2411_v15 = vmul.f32 %v5756_v51, %v5807_v59  ;;  %v2153_v51 = vmul.f32 %v5869_v45, %v5976_v18  ;;  %v4295_v59 = vld [vmem:[#allocation2 + $0xc8] sm:$0x3] }
 0x3e0   :  { %v5953_v35 = vpop.permute.xlu1 %1889  ;;  %v2257_v21 = vsel %vm2037_vm14, %v2245_v19, %v2256_v13  ;;  %v2387_v45 = vmul.f32 %v5916_v54, %v5976_v18 }
 0x3e1   :  { %7411 = vst [vmem:[#allocation79_spill] sm:$0xff] %v5953_v35  ;;  %v5955_v3 = vpop.permute.xlu0 %2504  ;;  %v2488_v2 = vrot.slane %v2411_v15, 2  ;;  %v2219_v15 = vrot.slane %v2153_v51, 2  ;;  %v2402_v51 = vmul.f32 %v5916_v54, %v5893_v52  ;;  %v4306_v52 = vld [vmem:[#allocation2 + $0xc8] sm:$0x1] }
 0x3e2   :  { %7412 = vst [vmem:[#allocation80_spill] sm:$0xff] %v5955_v3  ;;  %v2479_v3 = vrot.slane %v2407_v53, 2  ;;  %v4290_v53 = vld [vmem:[#allocation2 + $0xc0] sm:$0xff] }
 0x3e3   :  { %2510 = vrot.lane.b32.xlu0 %v2466_v6, %s4429_s20  ;;  %2518 = vrot.lane.b32.xlu1 %v2477_v12, %s4429_s20  ;;  %v1632_v6 = vsel %vm1412_vm13, %v1620_v14, %v1631_v26  ;;  %v2408_v13 = vmul.f32 %v4290_v53, %v4797_v55  ;;  %v2489_v14 = vsel %vm2037_vm14, %v2476_v60, %v2488_v2  ;;  %v2453_v53 = vrot.slane %v2387_v45, 2  ;;  %v2113_v45 = vld [vmem:[#allocation2 + $0xe8] sm:$0x3] }
 0x3e4   :  { %v5969_v32 = vpop.permute.xlu1 %1899  ;;  %v2491_v19 = vsel %vm2037_vm14, %v2479_v3, %v2490_v23  ;;  %v7421_v23 = vrot.slane %v5874_v48, 2 }
 0x3e5   :  { %7414 = vst [vmem:[#allocation82_spill] sm:$0xff] %v5969_v32  ;;  %v5971_v33 = vpop.permute.xlu0 %2524  ;;  %v2455_v48 = vsel %vm2037_vm14, %v2453_v53, %v2454_v61  ;;  %v7428_v53 = vld [vmem:[#allocation30_spill] sm:$0xff] }
 0x3e6   :  { %7415 = vst [vmem:[#allocation83_spill] sm:$0xff] %v5971_v33  ;;  %v2221_v60 = vsel %vm2037_vm14, %v2219_v15, %v7421_v23  ;;  %v2388_v15 = vmul.f32 %v4797_v55, %v5295_v16 }
 0x3e7   :  { %2296 = vrot.lane.b32.xlu0 %v2257_v21, %s4432_s4  ;;  %1671 = vrot.lane.b32.xlu1 %v1632_v6, %s4432_s4  ;;  %v2403_v21 = vmul.f32 %v4797_v55, %v5312_v0  ;;  %v2482_v6 = vrot.slane %v2408_v13, 2 }
 0x3e8   :  { %v5981_v12 = vpop.permute.xlu1 %2260 }
 0x3e9   :  { %7417 = vst [vmem:[#allocation85_spill] sm:$0xff] %v5981_v12  ;;  %v5983_v17 = vpop.permute.xlu0 %1643  ;;  %v2481_v2 = vrot.slane %v2403_v21, 2  ;;  %v2478_v21 = vrot.slane %v2402_v51, 2  ;;  %v4297_v12 = vld [vmem:[#allocation2 + $0x8] sm:$0xff] }
 0x3ea   :  { %7418 = vst [vmem:[#allocation86_spill] sm:$0xff] %v5983_v17  ;;  %v4300_v17 = vld [vmem:[#allocation2 + $0x88] sm:$0xff] }
 0x3eb   :  { %2530 = vrot.lane.b32.xlu0 %v2491_v19, %s4429_s20  ;;  %2528 = vrot.lane.b32.xlu1 %v2489_v14, %s4429_s20  ;;  %v2483_v13 = vsel %vm2037_vm14, %v2481_v2, %v2482_v6  ;;  %v2480_v23 = vsel %vm2037_vm14, %v2478_v21, %v2479_v3  ;;  %v2179_v2 = vmul.f32 %v7325_v57, %v2113_v45 }
 0x3ec   :  { %v5994_v22 = vpop.permute.xlu1 %2270  ;;  %v2413_v21 = vmul.f32 %v4797_v55, %v2113_v45  ;;  %v7438_v55 = vld [vmem:[#allocation16_spill] sm:$0xff] }
 0x3ed   :  { %7419 = vst [vmem:[#allocation87_spill] sm:$0xff] %v5994_v22  ;;  %v5996_v26 = vpop.permute.xlu0 %1877  ;;  %v2258_v3 = vrot.slane %v2179_v2, 2  ;;  %v6053_v45 = vsub.s32 6, %v7438_v55  ;;  %v7449_v22 = vld [vmem:[#allocation27_spill] sm:$0xff] }
 0x3ee   :  { %7420 = vst [vmem:[#allocation88_spill] sm:$0xff] %v5996_v26 }
 0x3ef   :  { %2512 = vrot.lane.b32.xlu0 %v5218_v27, %s4429_s20  ;;  %2266 = vrot.lane.b32.xlu1 %v2221_v60, %s4432_s4  ;;  %v2456_v60 = vrot.slane %v2388_v15, 2 }
 0x3f0   :  { %v6006_v0 = vpop.permute.xlu1 %2290 }
 0x3f1   :  { %7422 = vst [vmem:[#allocation89_spill] sm:$0xff] %v6006_v0  ;;  %v6008_v19 = vpop.permute.xlu0 %1673  ;;  %v4296_v0 = vld [vmem:[#allocation2] sm:$0xff] }
 0x3f2   :  { %7423 = vst [vmem:[#allocation90_spill] sm:$0xff] %v6008_v19 }
 0x3f3   :  { %2522 = vrot.lane.b32.xlu0 %v2483_v13, %s4429_s20  ;;  %2500 = vrot.lane.b32.xlu1 %v2455_v48, %s4429_s20  ;;  %v7429_v13 = vrot.slane %v7428_v53, 2 }
 0x3f4   :  { %v6016_v27 = vpop.permute.xlu1 %2514 }
 0x3f5   :  { %7424 = vst [vmem:[#allocation91_spill] sm:$0xff] %v6016_v27  ;;  %v6018_v14 = vpop.permute.xlu0 %2268  ;;  %v2458_v48 = vsel %vm2037_vm14, %v2456_v60, %v7429_v13  ;;  %v2492_v60 = vrot.slane %v2413_v21, 2  ;;  %v6062_v21 = vld [vmem:[#allocation8 + $0x10] sm:$0xff] }
 0x3f6   :  { %7425 = vst [vmem:[#allocation92_spill] sm:$0xff] %v6018_v14 }
 0x3f7   :  { %2520 = vrot.lane.b32.xlu1 %v2480_v23, %s4429_s20  ;;  %v7432_v23 = vld [vmem:[#allocation28_spill] sm:$0xff]  ;;  %v2493_v53 = vsel %vm2037_vm14, %v2482_v6, %v2492_v60  ;;  %v6066_v6 = vrot.slane %v6062_v21, %v5454_v41 }
 0x3f8   :  { %v6024_v54 = vpop.permute.xlu1 %1653  ;;  %v7433_v14 = vrot.slane %v7432_v23, 2 }
 0x3f9   :  { %7426 = vst [vmem:[#allocation93_spill] sm:$0xff] %v6024_v54  ;;  %v6026_v61 = vpop.permute.xlu0 %2288 }
 0x3fa   :  { %7427 = vst [vmem:[#allocation94_spill] sm:$0xff] %v6026_v61  ;;  %v2259_v61 = vsel %vm2037_vm14, %v7433_v14, %v2258_v3 }
 0x3fb   :  { %2502 = vrot.lane.b32.xlu1 %v2458_v48, %s4429_s20 }
 0x3fc   :  { %v6033_v51 = vpop.permute.xlu1 %1663 }
 0x3fd   :  { %7430 = vst [vmem:[#allocation30_spill] sm:$0xff] %v6033_v51  ;;  %v6035_v16 = vpop.permute.xlu0 %1667  ;;  %v7444_v51 = vld [vmem:[#allocation24_spill] sm:$0xff] }
 0x3fe   :  { %7431 = vst [vmem:[#allocation95_spill] sm:$0xff] %v6035_v16  ;;  %v6081_v54 = vrot.slane %v7444_v51, %v6053_v45  ;;  %v4305_v16 = vld [vmem:[#allocation2 + $0xa8] sm:$0xff] }
 0x3ff   :  { %2298 = vrot.lane.b32.xlu1 %v2259_v61, %s4432_s4  ;;  %v4291_v61 = vld [vmem:[#allocation8] sm:$0xff] }
 0x400   :  { %v6042_v57 = vpop.permute.xlu1 %1887  ;;  %v6060_v3 = vrot.slane %v4291_v61, %v6053_v45  ;;  %v1351_v26 = vrot.slane %v4291_v61, %v5454_v41  ;;  %v4298_v41 = vld [vmem:[#allocation2 + $0x78] sm:$0xff] }
 0x401   :  { %7434 = vst [vmem:[#allocation28_spill] sm:$0xff] %v6042_v57  ;;  %v6044_v15 = vpop.permute.xlu0 %1891  ;;  %v7443_v57 = vld [vmem:[#allocation29_spill] sm:$0xff] }
 0x402   :  { %7435 = vst [vmem:[#allocation96_spill] sm:$0xff] %v6044_v15  ;;  %v6084_v33 = vmul.f32 %v4295_v59, %v6060_v3  ;;  %v4303_v15 = vld [vmem:[#allocation2] sm:$0xfe]  ;;  %v1372_v1 = vmul.f32 %v4307_v44, %v1351_v26  ;;  %v6163_v44 = vmul.f32 %v5921_v31, %v5536_v46 }
 0x403   :  { %2532 = vrot.lane.b32.xlu1 %v2493_v53, %s4429_s20  ;;  %v4293_v53 = vld [vmem:[#allocation2] sm:$0xfc]  ;;  %v1364_v29 = vmul.f32 %v4303_v15, %v1351_v26 }
 0x404   :  { %v6048_v13 = vpop.permute.xlu1 %1897  ;;  %v6073_v55 = vmul.f32 %v4293_v53, %v6060_v3  ;;  %v963_v53 = vrot.slane %v6062_v21, %v7443_v57  ;;  %7461 = vst [vmem:[#allocation106_spill] sm:$0xff] %v6163_v44 }
 0x405   :  { %7436 = vst [vmem:[#allocation97_spill] sm:$0xff] %v6048_v13  ;;  %v6050_v2 = vpop.permute.xlu0 %1901  ;;  %v955_v13 = vrot.slane %v4291_v61, %v7443_v57  ;;  %v7452_v57 = vld [vmem:[#allocation40_spill] sm:$0xff]  ;;  %v1413_v47 = vrot.slane %v1364_v29, 1 }
 0x406   :  { %7437 = vst [vmem:[#allocation98_spill] sm:$0xff] %v6050_v2  ;;  %v6113_v32 = vmul.f32 %v4300_v17, %v963_v53 }
 0x408   :  { %v6055_v48 = vpop.permute.xlu1 %1907  ;;  %7450 = vst [vmem:[#allocation27_spill] sm:$0xff] %v6113_v32 }
 0x409   :  { %7439 = vst [vmem:[#allocation99_spill] sm:$0xff] %v6055_v48  ;;  %v6057_v14 = vpop.permute.xlu0 %2262  ;;  %v4294_v48 = vld [vmem:[#allocation2 + $0x50] sm:$0x3] }
 0x40a   :  { %7440 = vst [vmem:[#allocation100_spill] sm:$0xff] %v6057_v14  ;;  %v6076_v19 = vmul.f32 %v4294_v48, %v6060_v3  ;;  %v6094_v48 = vmul.f32 %v6081_v54, %v5562_v42  ;;  %v7446_v14 = vld [vmem:[#allocation42_spill] sm:$0xff] }
 0x40b   :  { %v6104_v18 = vmul.f32 %v4297_v12, %v7446_v14  ;;  %v7448_v42 = vld [vmem:[#allocation22_spill] sm:$0xff]  ;;  %v4304_v12 = vld [vmem:[#allocation2 + $0x30] sm:$0xff]  ;;  %v6140_v15 = vmul.f32 %v4305_v16, %v7446_v14 }
 0x40c   :  { %v6068_v23 = vpop.permute.xlu1 %2278  ;;  %v1120_v61 = vsel %vm635_vm1, %v7449_v22, %v7448_v42 }
 0x40d   :  { %7441 = vst [vmem:[#allocation101_spill] sm:$0xff] %v6068_v23  ;;  %v6070_v60 = vpop.permute.xlu0 %2272  ;;  %v6088_v23 = vmul.f32 %v6066_v6, %v5479_v58  ;;  %v968_v58 = vmul.f32 %v4296_v0, %v955_v13  ;;  %7447 = vst [vmem:[#allocation42_spill] sm:$0xff] %v6104_v18  ;;  %v4301_v0 = vld [vmem:[#allocation2 + $0x10] sm:$0xff] }
 0x40e   :  { %7442 = vst [vmem:[#allocation102_spill] sm:$0xff] %v6070_v60  ;;  %v6110_v60 = vmul.f32 %v4298_v41, %v955_v13  ;;  %v6115_v2 = vmul.f32 %v4301_v0, %v963_v53  ;;  %v7453_v18 = vld [vmem:[#allocation32_spill] sm:$0xff]  ;;  %v4302_v41 = vld [vmem:[#allocation2 + $0xa0] sm:$0xff]  ;;  %v6131_v0 = vmul.f32 %v5960_v37, %v5536_v46 }
 0x40f   :  { %v1284_v35 = vsel %vm633_vm2, %v7453_v18, %v7452_v57  ;;  %v1380_v42 = vmul.f32 %v4302_v41, %v1351_v26  ;;  %v1152_v17 = vadd.f32 %v1120_v61, %v968_v58  ;;  %v6127_v32 = vmul.f32 %v4302_v41, %v955_v13 }
 0x410   :  { %v6097_v27 = vpop.permute.xlu1 %1637  ;;  %7451 = vst [vmem:[#allocation103_spill] sm:$0xff] %v6115_v2  ;;  %7455 = vst [vmem:[#allocation104_spill] sm:$0xff] %v6131_v0  ;;  %v7456_v2 = vld [vmem:[#allocation39_spill] sm:$0xff]  ;;  %v6137_v57 = vmul.f32 %v4304_v12, %v7446_v14  ;;  %v6144_v61 = vmul.f32 %v5566_v38, %v5848_v8  ;;  %v6156_v8 = vld [vmem:[#allocation2 + $0x38] sm:$0xff] }
 0x411   :  { %v6099_v51 = vpop.permute.xlu0 %1639  ;;  %v6134_v18 = vmul.f32 %v4304_v12, %v7456_v2  ;;  %v7458_v0 = vld [vmem:[#allocation35_spill] sm:$0xff]  ;;  %v1434_v40 = vrot.slane %v1380_v42, 1  ;;  %v2005_v42 = vmul.f32 %v4302_v41, %v6060_v3 }
 0x412   :  { %7445 = vst [vmem:[#allocation24_spill] sm:$0xff] %v6099_v51  ;;  %v4299_v51 = vld [vmem:[#allocation2 + $0x28] sm:$0xff]  ;;  %7457 = vst [vmem:[#allocation39_spill] sm:$0xff] %v6137_v57  ;;  %v1365_v37 = vmul.f32 %v7456_v2, %v7458_v0  ;;  %v4308_v57 = vld [vmem:[#allocation2 + $0x78] sm:$0xfe] }
 0x413   :  { %v1368_v25 = vmul.f32 %v4299_v51, %v1351_v26  ;;  %v6121_v22 = vmul.f32 %v4299_v51, %v955_v13  ;;  %v1316_v13 = vadd.f32 %v1284_v35, %v1152_v17  ;;  %v1376_v20 = vmul.f32 %v4308_v57, %v1351_v26 }
 0x414   :  { %v6123_v9 = vpop.permute.xlu1 %1647  ;;  %v6154_v35 = vmul.f32 %v5929_v10, %v963_v53  ;;  %v1417_v29 = vrot.slane %v6134_v18, 1  ;;  %v1416_v0 = vrot.slane %v1365_v37, 1 }
 0x415   :  { %v6125_v59 = vpop.permute.xlu0 %1659  ;;  %v1414_v58 = vrot.slane %v1368_v25, 1  ;;  %v1993_v25 = vmul.f32 %v4299_v51, %v6060_v3  ;;  %v1675_v51 = vsel %vm635_vm1, %v5803_v49, %v6097_v27 }
 0x416   :  { %7454 = vst [vmem:[#allocation32_spill] sm:$0xff] %v6125_v59  ;;  %v1384_v59 = vmul.f32 %v4306_v52, %v1351_v26  ;;  %7460 = vst [vmem:[#allocation105_spill] sm:$0xff] %v6154_v35  ;;  %v6159_v52 = vmul.f32 %v6156_v8, %v963_v53  ;;  %v1373_v53 = vmul.f32 %v7456_v2, %v5463_v43 }
 0x417   :  { %v1415_v57 = vsel %vm1412_vm13, %v1413_v47, %v1414_v58  ;;  %v2039_v18 = vrot.slane %v1993_v25, 2  ;;  %v6180_v49 = vsel %vm1412_vm13, %v1416_v0, %v1417_v29  ;;  %v2059_v25 = vrot.slane %v2005_v42, 2 }
 0x418   :  { %v6148_v34 = vpop.permute.xlu1 %1657  ;;  %v1445_v26 = vrot.slane %v1384_v59, 1  ;;  %v1469_v17 = vadd.f32 %v1415_v57, %v1316_v13  ;;  %v1433_v59 = vrot.slane %v1376_v20, 1  ;;  %v7465_v0 = vrot.slane %v6073_v55, 2 }
 0x419   :  { %v6150_v14 = vpop.permute.xlu0 %1883  ;;  %v7466_v42 = vrot.slane %v6076_v19, 2 }
 0x41a   :  { %7459 = vst [vmem:[#allocation35_spill] sm:$0xff] %v6150_v14  ;;  %v1425_v14 = vrot.slane %v1372_v1, 1  ;;  %v6175_v35 = vsel %vm1412_vm13, %v1434_v40, %v1445_v26  ;;  %v1707_v44 = vadd.f32 %v1675_v51, %v1469_v17  ;;  %v7463_v1 = vld [vmem:[#allocation21_spill] sm:$0xff]  ;;  %v6188_v13 = vsel %vm1412_vm13, %v1433_v59, %v1434_v40 }
 0x41b   :  { %v1385_v43 = vmul.f32 %v7456_v2, %v7463_v1  ;;  %v1994_v26 = vmul.f32 %v4304_v12, %v6081_v54  ;;  %v1427_v51 = vrot.slane %v1373_v53, 1  ;;  %v4310_v17 = vld [vmem:[#allocation2 + $0x78] sm:$0xfc]  ;;  %v7464_v2 = vld [vmem:[#allocation19_spill] sm:$0xff]  ;;  %v2040_v59 = vsel %vm2037_vm14, %v7465_v0, %v2039_v18 }
 0x41c   :  { %v1426_v41 = vsel %vm1412_vm13, %v1414_v58, %v1425_v14  ;;  %v2001_v58 = vmul.f32 %v4310_v17, %v6060_v3  ;;  %v1370_v14 = vmul.f32 %v6156_v8, %v6066_v6  ;;  %v1124_v40 = vsel %vm635_vm1, %v7464_v2, %v5706_v63  ;;  %v7468_v17 = vld [vmem:[#allocation20_spill] sm:$0xff] }
 0x41d   :  { %v6177_v47 = vpop.permute.xlu0 %2292  ;;  %v6183_v37 = vpop.permute.xlu1 %1871  ;;  %v1998_v12 = vmul.f32 %v6081_v54, %v5412_v36  ;;  %v6215_v53 = vsel %vm2037_vm14, %v2039_v18, %v7466_v42  ;;  %v1447_v55 = vrot.slane %v1385_v43, 1  ;;  %v1288_v36 = vsel %vm633_vm2, %v7468_v17, %v5732_v24  ;;  %v7471_v42 = vld [vmem:[#allocation31_spill] sm:$0xff] }
 0x41e   :  { %7462 = vst [vmem:[#allocation107_spill] sm:$0xff] %v6183_v37  ;;  %v1909_v20 = vsel %vm633_vm2, %v5860_v30, %v6183_v37  ;;  %v6230_v19 = vsel %vm1412_vm13, %v1417_v29, %v1427_v51  ;;  %v2042_v18 = vrot.slane %v1994_v26, 2  ;;  %v1156_v2 = vadd.f32 %v1124_v40, %v6121_v22  ;;  %v7472_v22 = vld [vmem:[#allocation23_spill] sm:$0xff] }
 0x41f   :  { %v1941_v57 = vadd.f32 %v1909_v20, %v1707_v44  ;;  %v6208_v44 = vmul.f32 %v4305_v16, %v6081_v54  ;;  %v1366_v20 = vmul.f32 %v6066_v6, %v5435_v11  ;;  %v7469_v16 = vrot.slane %v6084_v33, 2 }
 0x420   :  { %v2058_v0 = vrot.slane %v2001_v58, 2  ;;  %v1420_v43 = vrot.slane %v1370_v14, 1  ;;  %v1990_v11 = vmul.f32 %v6081_v54, %v5393_v50  ;;  %v2052_v33 = vrot.slane %v1998_v12, 2 }
 0x421   :  { %v6203_v30 = vpop.permute.xlu0 %2516  ;;  %v6210_v3 = vadd.f32 %v2040_v59, %v1941_v57  ;;  %v6217_v1 = vpop.permute.xlu1 %1881  ;;  %v6227_v57 = vsel %vm2037_vm14, %v2059_v25, %v7469_v16  ;;  %v7470_v59 = vld [vmem:[#allocation37_spill] sm:$0xff]  ;;  %v2062_v16 = vrot.slane %v6208_v44, 2  ;;  %v2010_v29 = vmul.f32 %v6081_v54, %v5505_v56 }
 0x422   :  { %7467 = vst [vmem:[#allocation21_spill] sm:$0xff] %v6217_v1  ;;  %v1128_v17 = vsel %vm635_vm1, %v7471_v42, %v7470_v59  ;;  %v1320_v26 = vadd.f32 %v1288_v36, %v1156_v2  ;;  %v7473_v58 = vrot.slane %v7472_v22, 1  ;;  %v6251_v50 = vsel %vm2037_vm14, %v2058_v0, %v2059_v25  ;;  %v7474_v59 = vld [vmem:[#allocation43_spill] sm:$0xff]  ;;  %v7475_v42 = vld [vmem:[#allocation33_spill] sm:$0xff] }
 0x423   :  { %v1419_v40 = vrot.slane %v1366_v20, 1  ;;  %v1292_v12 = vsel %vm633_vm2, %v7475_v42, %v7474_v59  ;;  %v6257_v44 = vsel %vm2037_vm14, %v2042_v18, %v2052_v33  ;;  %v1375_v56 = vmul.f32 %v5566_v38, %v5831_v5  ;;  %v7481_v33 = vld [vmem:[#allocation34_spill] sm:$0xff] }
 0x424   :  { %v6248_v14 = vsel %vm1412_vm13, %v7473_v58, %v1447_v55  ;;  %7476 = vst [vmem:[#allocation19_spill] sm:$0xff] %v6257_v44  ;;  %v1378_v54 = vmul.f32 %v6066_v6, %v5461_v28  ;;  %v1160_v55 = vadd.f32 %v1128_v17, %v6110_v60  ;;  %v2041_v25 = vrot.slane %v1990_v11, 2  ;;  %v7508_v44 = vld [vmem:[#allocation79_spill] sm:$0xff] }
 0x425   :  { %v6238_v46 = vpop.permute.xlu0 %1669  ;;  %v6243_v51 = vpop.permute.xlu1 %1649  ;;  %v6265_v36 = vsel %vm1412_vm13, %v1419_v40, %v1420_v43  ;;  %v6269_v20 = vmul.f32 %v5929_v10, %v6066_v6  ;;  %v1679_v2 = vsel %vm635_vm1, %v5824_v7, %v6123_v9  ;;  %v7479_v38 = vrot.slane %v6094_v48, 2  ;;  %v7484_v40 = vld [vmem:[#allocation45_spill] sm:$0xff] }
 0x426   :  { %v2072_v5 = vrot.slane %v2010_v29, 2  ;;  %v7480_v60 = vrot.slane %v6088_v23, 1  ;;  %v1324_v17 = vadd.f32 %v1292_v12, %v1160_v55  ;;  %v1132_v22 = vsel %vm635_vm1, %v7481_v33, %v5758_v4 }
 0x427   :  { %7477 = vst [vmem:[#allocation20_spill] sm:$0xff] %v6269_v20  ;;  %v6279_v28 = vsel %vm2037_vm14, %v7479_v38, %v2062_v16  ;;  %v1473_v58 = vadd.f32 %v1426_v41, %v1320_v26  ;;  %v6293_v48 = vrot.slane %v6062_v21, %v6053_v45  ;;  %v1913_v29 = vsel %vm633_vm2, %v5889_v62, %v6217_v1  ;;  %v7486_v41 = vld [vmem:[#allocation38_spill] sm:$0xff] }
 0x428   :  { %v6284_v11 = vsel %vm1412_vm13, %v1420_v43, %v7480_v60  ;;  %v6299_v23 = vsel %vm2037_vm14, %v2041_v25, %v2042_v18  ;;  %v1431_v43 = vrot.slane %v1375_v56, 1  ;;  %v6303_v59 = vrot.slane %v7484_v40, %v6053_v45  ;;  %v7487_v18 = vld [vmem:[#allocation69_spill] sm:$0xff] }
 0x429   :  { %v6274_v0 = vpop.permute.xlu0 %1903  ;;  %v6289_v7 = vpop.permute.xlu1 %2282  ;;  %7483 = vst [vmem:[#allocation23_spill] sm:$0xff] %v6299_v23  ;;  %v1296_v26 = vsel %vm633_vm2, %v7486_v41, %v5777_v39  ;;  %v1711_v42 = vadd.f32 %v1679_v2, %v1473_v58  ;;  %v7292_v21 = vrot.slane %v6269_v20, 1  ;;  %v6311_v12 = vmul.f32 %v6156_v8, %v6293_v48  ;;  %v7489_v8 = vld [vmem:[#allocation57_spill] sm:$0xff]  ;;  %v7511_v20 = vld [vmem:[#allocation98_spill] sm:$0xff] }
 0x42a   :  { %7478 = vst [vmem:[#allocation37_spill] sm:$0xff] %v6274_v0  ;;  %7482 = vst [vmem:[#allocation31_spill] sm:$0xff] %v6289_v7  ;;  %v1164_v62 = vadd.f32 %v1132_v22, %v6127_v32  ;;  %v1683_v56 = vsel %vm635_vm1, %v7487_v18, %v6148_v34  ;;  %v1439_v45 = vrot.slane %v1378_v54, 1  ;;  %v6321_v25 = vmul.f32 %v5921_v31, %v6303_v59  ;;  %v7490_v32 = vld [vmem:[#allocation71_spill] sm:$0xff]  ;;  %v7493_v40 = vld [vmem:[#allocation49_spill] sm:$0xff] }
 0x42b   :  { %7485 = vst [vmem:[#allocation43_spill] sm:$0xff] %v6303_v59  ;;  %v1477_v2 = vadd.f32 %v6188_v13, %v1324_v17  ;;  %v1945_v38 = vadd.f32 %v1913_v29, %v1711_v42  ;;  %v6328_v33 = vmul.f32 %v6293_v48, %v7489_v8  ;;  %v6332_v22 = vmul.f32 %v6303_v59, %v7490_v32  ;;  %v7496_v13 = vld [vmem:[#allocation48_spill] sm:$0xff]  ;;  %v7500_v18 = vld [vmem:[#allocation41_spill] sm:$0xff]  ;;  %v7513_v0 = vld [vmem:[#allocation66_spill] sm:$0xff] }
 0x42c   :  { %v1328_v58 = vadd.f32 %v1296_v26, %v1164_v62  ;;  %v6335_v54 = vsel %vm2037_vm14, %v2062_v16, %v2072_v5  ;;  %v7494_v31 = vrot.slane %v7493_v40, 1  ;;  %v6344_v17 = vmul.f32 %v6066_v6, %v7496_v13  ;;  %v7498_v62 = vld [vmem:[#allocation62_spill] sm:$0xff]  ;;  %v7499_v5 = vld [vmem:[#allocation52_spill] sm:$0xff]  ;;  %v7501_v32 = vld [vmem:[#allocation73_spill] sm:$0xff] }
 0x42d   :  { %v6317_v55 = vpop.permute.xlu0 %2274  ;;  %v6324_v60 = vpop.permute.xlu1 %2496  ;;  %7491 = vst [vmem:[#allocation34_spill] sm:$0xff] %v6332_v22  ;;  %7492 = vst [vmem:[#allocation45_spill] sm:$0xff] %v6335_v54  ;;  %v1715_v29 = vadd.f32 %v1683_v56, %v1477_v2  ;;  %v6349_v42 = vsel %vm1412_vm13, %v1439_v45, %v7292_v21  ;;  %v6354_v16 = vmul.f32 %v6293_v48, %v7498_v62  ;;  %v7502_v2 = vld [vmem:[#allocation95_spill] sm:$0xff]  ;;  %v7503_v40 = vld [vmem:[#allocation76_spill] sm:$0xff] }
 0x42e   :  { %7488 = vst [vmem:[#allocation33_spill] sm:$0xff] %v6317_v55  ;;  %v6340_v41 = vsel %vm1412_vm13, %v7494_v31, %v1431_v43  ;;  %7497 = vst [vmem:[#allocation69_spill] sm:$0xff] %v6344_v17  ;;  %v1122_v43 = vsel %vm635_vm1, %v7500_v18, %v7499_v5  ;;  %v6362_v56 = vmul.f32 %v6303_v59, %v7501_v32  ;;  %v7505_v6 = vld [vmem:[#allocation55_spill] sm:$0xff]  ;;  %v7506_v26 = vld [vmem:[#allocation46_spill] sm:$0xff] }
 0x42f   :  { %7495 = vst [vmem:[#allocation38_spill] sm:$0xff] %v6340_v41  ;;  %v6366_v45 = vmul.f32 %v5929_v10, %v6293_v48  ;;  %v1687_v31 = vsel %vm635_vm1, %v7503_v40, %v7502_v2  ;;  %v2098_v13 = vadd.f32 %v6215_v53, %v1945_v38  ;;  %v1286_v32 = vsel %vm633_vm2, %v7506_v26, %v7505_v6  ;;  %v7507_v10 = vld [vmem:[#allocation96_spill] sm:$0xff]  ;;  %v7509_v40 = vld [vmem:[#allocation81_spill] sm:$0xff]  ;;  %v7510_v53 = vld [vmem:[#allocation103_spill] sm:$0xff] }
 0x430   :  { %v1481_v54 = vadd.f32 %v6175_v35, %v1328_v58  ;;  %v1917_v55 = vsel %vm633_vm2, %v7508_v44, %v7507_v10  ;;  %v6385_v23 = vmul.f32 %v7509_v40, %v6303_v59  ;;  %v1154_v38 = vadd.f32 %v1122_v43, %v7510_v53  ;;  %v7512_v5 = vld [vmem:[#allocation82_spill] sm:$0xff]  ;;  %v7515_v58 = vld [vmem:[#allocation87_spill] sm:$0xff]  ;;  %v7516_v44 = vld [vmem:[#allocation80_spill] sm:$0xff] }
 0x431   :  { %v1642_v8 = vpop.permute.xlu0 %1641  ;;  %v6372_v62 = vpop.permute.xlu1 %2506  ;;  %v1921_v21 = vsel %vm633_vm2, %v7512_v5, %v7511_v20  ;;  %v1949_v22 = vadd.f32 %v1917_v55, %v1715_v29  ;;  %v1991_v6 = vmul.f32 %v6293_v48, %v7513_v0  ;;  %v7514_v35 = vld [vmem:[#allocation102_spill] sm:$0xff]  ;;  %v7518_v43 = vld [vmem:[#allocation84_spill] sm:$0xff] }
 0x432   :  { %7504 = vst [vmem:[#allocation57_spill] sm:$0xff] %v6372_v62  ;;  %v1719_v17 = vadd.f32 %v1687_v31, %v1481_v54  ;;  %v2304_v1 = vsel %vm635_vm1, %v7515_v58, %v7514_v35  ;;  %v2538_v40 = vsel %vm633_vm2, %v7516_v44, %v6372_v62  ;;  %v1992_v53 = vmul.f32 %v6303_v59, %v7518_v43  ;;  %v7519_v5 = vld [vmem:[#allocation32_spill] sm:$0xff]  ;;  %v7521_v35 = vld [vmem:[#allocation85_spill] sm:$0xff]  ;;  %v7522_v62 = vld [vmem:[#allocation75_spill] sm:$0xff] }
 0x433   :  { %v1318_v41 = vadd.f32 %v1286_v32, %v1154_v38  ;;  %v1684_v55 = vsel %vm635_vm1, %v6148_v34, %v7519_v5  ;;  %v2336_v0 = vadd.f32 %v2304_v1, %v2098_v13  ;;  %v7520_v58 = vld [vmem:[#allocation100_spill] sm:$0xff]  ;;  %v7523_v32 = vld [vmem:[#allocation77_spill] sm:$0xff]  ;;  %v2102_v34 = vadd.f32 %v6251_v50, %v1949_v22  ;;  %v7527_v22 = vld [vmem:[#allocation86_spill] sm:$0xff] }
 0x434   :  { %v1953_v31 = vadd.f32 %v1921_v21, %v1719_v17  ;;  %v2300_v44 = vsel %vm635_vm1, %v7521_v35, %v7520_v58  ;;  %v2534_v38 = vsel %vm633_vm2, %v7523_v32, %v6324_v60  ;;  %v7524_v17 = vld [vmem:[#allocation53_spill] sm:$0xff]  ;;  %v7526_v50 = vld [vmem:[#allocation24_spill] sm:$0xff]  ;;  %v7561_v21 = vld [vmem:[#allocation63_spill] sm:$0xff] }
 0x435   :  { %v6399_v37 = vpop.permute.xlu0 %2284  ;;  %v6406_v54 = vpop.permute.xlu1 %1873  ;;  %v2332_v1 = vadd.f32 %v2300_v44, %v6210_v3  ;;  %v6420_v13 = vadd.f32 %v2538_v40, %v2336_v0  ;;  %v1716_v43 = vadd.f32 %v1684_v55, %v7524_v17  ;;  %v7525_v35 = vld [vmem:[#allocation89_spill] sm:$0xff]  ;;  %v1677_v3 = vsel %vm635_vm1, %v7526_v50, %v1642_v8  ;;  %v7531_v17 = vld [vmem:[#allocation58_spill] sm:$0xff] }
 0x436   :  { %7517 = vst [vmem:[#allocation71_spill] sm:$0xff] %v6399_v37  ;;  %v2308_v37 = vsel %vm635_vm1, %v7522_v62, %v6289_v7  ;;  %v2312_v29 = vsel %vm635_vm1, %v7525_v35, %v6177_v47  ;;  %v2044_v62 = vrot.slane %v1991_v6, 2  ;;  %v2047_v7 = vrot.slane %v1992_v53, 2 }
 0x437   :  { %v2340_v58 = vadd.f32 %v2308_v37, %v2102_v34  ;;  %v6429_v32 = vadd.f32 %v2534_v38, %v2332_v1  ;;  %v1678_v40 = vsel %vm635_vm1, %v1642_v8, %v7527_v22  ;;  %v2106_v55 = vadd.f32 %v6227_v57, %v1953_v31 }
 0x438   :  { %v1471_v44 = vadd.f32 %v6265_v36, %v1318_v41  ;;  %v7528_v34 = vrot.slane %v6311_v12, 2  ;;  %v7529_v1 = vrot.slane %v6321_v25, 2  ;;  %v7530_v36 = vld [vmem:[#allocation91_spill] sm:$0xff]  ;;  %v1710_v35 = vadd.f32 %v1678_v40, %v7531_v17 }
 0x439   :  { %v6427_v59 = vpop.permute.xlu0 %2508  ;;  %v6435_v0 = vpop.permute.xlu1 %1893  ;;  %v2582_v53 = vadd.f32 %v6420_v13, %v6429_v32  ;;  %v2344_v31 = vadd.f32 %v2312_v29, %v2106_v55  ;;  %v2542_v41 = vsel %vm633_vm2, %v7530_v36, %v6203_v30  ;;  %v7534_v55 = vld [vmem:[#allocation22_spill] sm:$0xff]  ;;  %v7535_v40 = vld [vmem:[#allocation83_spill] sm:$0xff]  ;;  %v7538_v36 = vld [vmem:[#allocation64_spill] sm:$0xff] }
 0x43a   :  { %v1918_v6 = vsel %vm633_vm2, %v7507_v10, %v6435_v0  ;;  %v2046_v8 = vsel %vm2037_vm14, %v2044_v62, %v7528_v34  ;;  %v2049_v57 = vsel %vm2037_vm14, %v2047_v7, %v7529_v1  ;;  %v1709_v10 = vadd.f32 %v1677_v3, %v1471_v44  ;;  %v7533_v7 = vld [vmem:[#allocation88_spill] sm:$0xff] }
 0x43b   :  { %v1950_v38 = vadd.f32 %v1918_v6, %v1716_v43  ;;  %v6455_v37 = vadd.f32 %v2542_v41, %v2340_v58  ;;  %v1121_v3 = vsel %vm635_vm1, %v7534_v55, %v7500_v18  ;;  %v1125_v41 = vsel %vm635_vm1, %v5706_v63, %v7538_v36  ;;  %v7540_v18 = vld [vmem:[#allocation40_spill] sm:$0xff] }
 0x43d   :  { %v1876_v22 = vpop.permute.xlu0 %1875  ;;  %v6458_v43 = vadd.f32 %v6279_v28, %v1950_v38  ;;  %v6460_v6 = vpop.permute.xlu1 %2526  ;;  %v7536_v28 = vld [vmem:[#allocation51_spill] sm:$0xff]  ;;  %v7537_v38 = vld [vmem:[#allocation44_spill] sm:$0xff] }
 0x43e   :  { %7532 = vst [vmem:[#allocation49_spill] sm:$0xff] %v6460_v6  ;;  %v1911_v62 = vsel %vm633_vm2, %v6406_v54, %v1876_v22  ;;  %v1912_v29 = vsel %vm633_vm2, %v1876_v22, %v7533_v7  ;;  %v2546_v58 = vsel %vm633_vm2, %v7535_v40, %v6460_v6  ;;  %v1130_v1 = vsel %vm635_vm1, %v7537_v38, %v7536_v28  ;;  %v7548_v28 = vld [vmem:[#allocation47_spill] sm:$0xff] }
 0x43f   :  { %v1943_v44 = vadd.f32 %v1911_v62, %v1709_v10  ;;  %v1944_v34 = vadd.f32 %v1912_v29, %v1710_v35  ;;  %v6478_v17 = vadd.f32 %v2546_v58, %v2344_v31  ;;  %v2583_v22 = vadd.f32 %v2582_v53, %v6455_v37  ;;  %v7542_v35 = vld [vmem:[#allocation50_spill] sm:$0xff] }
 0x440   :  { %v1285_v7 = vsel %vm633_vm2, %v7540_v18, %v7506_v26  ;;  %v7541_v10 = vrot.slane %v6144_v61, 1  ;;  %v7543_v62 = vrot.slane %v7542_v35, 1  ;;  %v7546_v31 = vld [vmem:[#allocation42_spill] sm:$0xff]  ;;  %v7549_v61 = vrot.slane %v6328_v33, 2 }
 0x441   :  { %7539 = vst [vmem:[#allocation48_spill] sm:$0xff] %v6478_v17  ;;  %v6484_v55 = vpop.permute.xlu0 %2294  ;;  %v6493_v40 = vadd.f32 %v2046_v8, %v1943_v44  ;;  %v6495_v63 = vadd.f32 %v2049_v57, %v1944_v34  ;;  %v1153_v58 = vadd.f32 %v1121_v3, %v7546_v31  ;;  %v7547_v53 = vld [vmem:[#allocation54_spill] sm:$0xff]  ;;  %v2584_v26 = vadd.f32 %v2583_v22, %v6478_v17  ;;  %v6502_v18 = vpop.permute.xlu1 %2264  ;;  %v7551_v8 = vld [vmem:[#allocation27_spill] sm:$0xff]  ;;  %v7563_v17 = vld [vmem:[#allocation65_spill] sm:$0xff] }
 0x442   :  { %v6491_v29 = vsel %vm1412_vm13, %v7543_v62, %v7541_v10  ;;  %v1294_v38 = vsel %vm633_vm2, %v7548_v28, %v7547_v53  ;;  %v7550_v35 = vrot.slane %v6311_v12, 2  ;;  %v1162_v57 = vadd.f32 %v1130_v1, %v7551_v8  ;;  %v7552_v44 = vld [vmem:[#allocation39_spill] sm:$0xff]  ;;  %v7554_v31 = vld [vmem:[#allocation70_spill] sm:$0xff]  ;;  %v7555_v28 = vld [vmem:[#allocation56_spill] sm:$0xff] }
 0x443   :  { %7544 = vst [vmem:[#allocation62_spill] sm:$0xff] %v6493_v40  ;;  %7545 = vst [vmem:[#allocation52_spill] sm:$0xff] %v6495_v63  ;;  %v1157_v34 = vadd.f32 %v1125_v41, %v7552_v44  ;;  %v7553_v3 = vld [vmem:[#allocation67_spill] sm:$0xff]  ;;  %v1126_v22 = vsel %vm635_vm1, %v7538_v36, %v7554_v31  ;;  %v1317_v53 = vadd.f32 %v1285_v7, %v1153_v58  ;;  %v2585_v33 = vrot.slane %v2584_v26, 4  ;;  %v7556_v1 = vld [vmem:[#allocation26_spill] sm:$0xff] }
 0x444   :  { %v6509_v10 = vsel %vm2037_vm14, %v7550_v35, %v7549_v61  ;;  %v1133_v62 = vsel %vm635_vm1, %v5758_v4, %v7553_v3  ;;  %v1127_v12 = vsel %vm635_vm1, %v7554_v31, %v7555_v28  ;;  %v1326_v35 = vadd.f32 %v1294_v38, %v1162_v57  ;;  %v7557_v8 = vld [vmem:[#allocation68_spill] sm:$0xff]  ;;  %v7562_v40 = vld [vmem:[#allocation106_spill] sm:$0xff] }
 0x445   :  { %v1289_v41 = vsel %vm633_vm2, %v5732_v24, %v7556_v1  ;;  %v1297_v4 = vsel %vm633_vm2, %v5777_v39, %v7557_v8  ;;  %v7558_v44 = vld [vmem:[#allocation72_spill] sm:$0xff]  ;;  %v1896_v7 = vpop.permute.xlu0 %1895  ;;  %v1165_v58 = vadd.f32 %v1133_v62, %v6140_v15  ;;  %v1158_v31 = vadd.f32 %v1126_v22, %v6159_v52  ;;  %v1652_v61 = vpop.permute.xlu1 %1651  ;;  %v7560_v24 = vld [vmem:[#allocation61_spill] sm:$0xff] }
 0x446   :  { %v1290_v36 = vsel %vm633_vm2, %v7556_v1, %v7558_v44  ;;  %v7559_v28 = vld [vmem:[#allocation60_spill] sm:$0xff]  ;;  %v2586_v57 = vadd.f32 %v2585_v33, %v2584_v26  ;;  %v1135_v63 = vsel %vm635_vm1, %v7561_v21, %v7560_v24  ;;  %v1321_v39 = vadd.f32 %v1289_v41, %v1157_v34  ;;  %v7569_v41 = vld [vmem:[#allocation25_spill] sm:$0xff] }
 0x447   :  { %v1291_v38 = vsel %vm633_vm2, %v7558_v44, %v7559_v28  ;;  %v1159_v6 = vadd.f32 %v1127_v12, %v7562_v40  ;;  %v6543_v1 = vmul.f32 %v6293_v48, %v7563_v17  ;;  %v1134_v15 = vsel %vm635_vm1, %v7553_v3, %v7561_v21  ;;  %v7568_v3 = vld [vmem:[#allocation74_spill] sm:$0xff] }
 0x448   :  { %v1329_v52 = vadd.f32 %v1297_v4, %v1165_v58  ;;  %v1322_v62 = vadd.f32 %v1290_v36, %v1158_v31  ;;  %v2587_v22 = vrot.slane %v2586_v57, 2  ;;  %v1470_v33 = vadd.f32 %v6180_v49, %v1317_v53  ;;  %v7570_v36 = vld [vmem:[#allocation104_spill] sm:$0xff]  ;;  %v7571_v31 = vld [vmem:[#allocation105_spill] sm:$0xff] }
 0x449   :  { %v1323_v26 = vadd.f32 %v1291_v38, %v1159_v6  ;;  %v6549_v44 = vpop.permute.xlu0 %1905  ;;  %v7564_v34 = vrot.slane %v6366_v45, 2  ;;  %v7565_v40 = vrot.slane %v6354_v16, 2  ;;  %v7566_v48 = vrot.slane %v6385_v23, 2  ;;  %v6567_v53 = vpop.permute.xlu1 %2498 }
 0x44a   :  { %v7567_v17 = vrot.slane %v6362_v56, 2  ;;  %v1298_v6 = vsel %vm633_vm2, %v7557_v8, %v7568_v3  ;;  %v1299_v49 = vsel %vm633_vm2, %v7568_v3, %v7569_v41  ;;  %v1479_v16 = vadd.f32 %v6349_v42, %v1326_v35 }
 0x44b   :  { %v2066_v12 = vsel %vm2037_vm14, %v7565_v40, %v7564_v34  ;;  %v2588_v4 = vadd.f32 %v2587_v22, %v2586_v57  ;;  %v1167_v58 = vadd.f32 %v1135_v63, %v7570_v36  ;;  %v1166_v28 = vadd.f32 %v1134_v15, %v7571_v31  ;;  %v7572_v15 = vld [vmem:[#allocation38_spill] sm:$0xff]  ;;  %v7573_v40 = vld [vmem:[#allocation107_spill] sm:$0xff]  ;;  %v7579_v36 = vld [vmem:[#allocation97_spill] sm:$0xff] }
 0x44c   :  { %v2069_v21 = vsel %vm2037_vm14, %v7567_v17, %v7566_v48  ;;  %v1676_v56 = vsel %vm635_vm1, %v6097_v27, %v7526_v50  ;;  %v1680_v8 = vsel %vm635_vm1, %v6123_v9, %v6243_v51  ;;  %v1474_v38 = vadd.f32 %v6230_v19, %v1321_v39  ;;  %v7574_v39 = vld [vmem:[#allocation93_spill] sm:$0xff]  ;;  %v7576_v48 = vld [vmem:[#allocation35_spill] sm:$0xff] }
 0x44d   :  { %v1482_v24 = vadd.f32 %v6248_v14, %v1329_v52  ;;  %v1475_v34 = vadd.f32 %v6284_v11, %v1322_v62  ;;  %v2589_v42 = vrot.slane %v2588_v4, 1  ;;  %v1330_v35 = vadd.f32 %v1298_v6, %v1166_v28  ;;  %v1662_v14 = vpop.permute.xlu1 %1661  ;;  %v6590_v11 = vpop.permute.xlu0 %2276  ;;  %v7575_v62 = vld [vmem:[#allocation30_spill] sm:$0xff]  ;;  %v7577_v17 = vld [vmem:[#allocation21_spill] sm:$0xff]  ;;  %v7578_v6 = vld [vmem:[#allocation59_spill] sm:$0xff] }
 0x44e   :  { %v1331_v57 = vadd.f32 %v1299_v49, %v1167_v58  ;;  %v1688_v63 = vsel %vm635_vm1, %v7502_v2, %v6238_v46  ;;  %v1476_v22 = vadd.f32 %v7572_v15, %v1323_v26  ;;  %v1708_v27 = vadd.f32 %v1676_v56, %v1470_v33 }
 0x44f   :  { %v1712_v50 = vadd.f32 %v1680_v8, %v1474_v38  ;;  %v1910_v9 = vsel %vm633_vm2, %v7573_v40, %v6406_v54  ;;  %v1681_v19 = vsel %vm635_vm1, %v6243_v51, %v1652_v61  ;;  %v1682_v52 = vsel %vm635_vm1, %v1652_v61, %v7574_v39 }
 0x450   :  { %v1685_v2 = vsel %vm635_vm1, %v7519_v5, %v1662_v14  ;;  %v1686_v26 = vsel %vm635_vm1, %v1662_v14, %v7575_v62  ;;  %v6598_v33 = vadd.f32 %v2589_v42, %v2588_v4  ;;  %v1914_v54 = vsel %vm633_vm2, %v7577_v17, %v7576_v48  ;;  %v7580_v4 = vld [vmem:[#allocation69_spill] sm:$0xff]  ;;  %v7582_v42 = vld [vmem:[#allocation28_spill] sm:$0xff] }
 0x451   :  { %v1720_v3 = vadd.f32 %v1688_v63, %v1482_v24  ;;  %v1717_v51 = vadd.f32 %v1685_v2, %v1479_v16  ;;  %v1718_v41 = vadd.f32 %v1686_v26, %v7578_v6  ;;  %v1942_v49 = vadd.f32 %v1910_v9, %v1708_v27  ;;  %v1886_v8 = vpop.permute.xlu1 %1885  ;;  %v7581_v24 = vld [vmem:[#allocation37_spill] sm:$0xff]  ;;  %v7589_v26 = vld [vmem:[#allocation23_spill] sm:$0xff]  ;;  %v7591_v6 = vld [vmem:[#allocation102_spill] sm:$0xff] }
 0x452   :  { %v1919_v61 = vsel %vm633_vm2, %v6435_v0, %v1896_v7  ;;  %v1920_v5 = vsel %vm633_vm2, %v1896_v7, %v7579_v36  ;;  %2623 = vrot.lane.b32.xlu1 %v6598_v33, %s4429_s20  ;;  %2619 = vrot.lane.b32.xlu0 %v6598_v33, %s4432_s4  ;;  %v1449_v58 = vrot.slane %v7580_v4, 1  ;;  %v1713_v31 = vadd.f32 %v1681_v19, %v1475_v34  ;;  %v7584_v19 = vld [vmem:[#allocation34_spill] sm:$0xff] }
 0x453   :  { %v1714_v28 = vadd.f32 %v1682_v52, %v1476_v22  ;;  %v1951_v16 = vadd.f32 %v1919_v61, %v1717_v51  ;;  %v1952_v56 = vadd.f32 %v1920_v5, %v1718_v41  ;;  %v1946_v38 = vadd.f32 %v1914_v54, %v1712_v50  ;;  %v6624_v22 = vpop.permute.xlu0 %2286  ;;  %v7583_v50 = vld [vmem:[#allocation100_spill] sm:$0xff] }
 0x454   :  { %v1922_v0 = vsel %vm633_vm2, %v7511_v20, %v7581_v24  ;;  %v1915_v7 = vsel %vm633_vm2, %v7576_v48, %v1886_v8  ;;  %v1916_v63 = vsel %vm633_vm2, %v1886_v8, %v7582_v42  ;;  %v2301_v9 = vsel %vm635_vm1, %v7583_v50, %v6502_v18  ;;  %v7587_v52 = vld [vmem:[#allocation20_spill] sm:$0xff]  ;;  %v7597_v8 = vld [vmem:[#allocation31_spill] sm:$0xff]  ;;  %v7599_v42 = vld [vmem:[#allocation45_spill] sm:$0xff] }
 0x455   :  { %v1947_v15 = vadd.f32 %v1915_v7, %v1713_v31  ;;  %v1948_v27 = vadd.f32 %v1916_v63, %v1714_v28  ;;  %v6620_v40 = vadd.f32 %v2066_v12, %v1951_v16  ;;  %v6622_v34 = vadd.f32 %v2069_v21, %v1952_v56  ;;  %v6644_v51 = vpop.permute.xlu1 %2518  ;;  %v7596_v56 = vld [vmem:[#allocation71_spill] sm:$0xff] }
 0x456   :  { %v7585_v20 = vrot.slane %v7584_v19, 2  ;;  %v7586_v14 = vrot.slane %v6321_v25, 2  ;;  %2627 = vrot.lane.b32.xlu1 %v6598_v33, %s4427_s30  ;;  %v7588_v12 = vrot.slane %v7587_v52, 1  ;;  %v2074_v2 = vrot.slane %v6543_v1, 2  ;;  %v7590_v25 = vld [vmem:[#allocation33_spill] sm:$0xff] }
 0x457   :  { %v1954_v62 = vadd.f32 %v1922_v0, %v1720_v3  ;;  %v2095_v48 = vadd.f32 %v7589_v26, %v1942_v49  ;;  %v2100_v17 = vadd.f32 %v6509_v10, %v1947_v15  ;;  %v2305_v41 = vsel %vm635_vm1, %v7591_v6, %v7590_v25  ;;  %v7593_v3 = vld [vmem:[#allocation78_spill] sm:$0xff]  ;;  %v7594_v49 = vld [vmem:[#allocation43_spill] sm:$0xff] }
 0x458   :  { %v2057_v39 = vsel %vm2037_vm14, %v7586_v14, %v7585_v20  ;;  %v1450_v21 = vsel %vm1412_vm13, %v7588_v12, %v1449_v58  ;;  %v2535_v61 = vsel %vm633_vm2, %v6324_v60, %v6567_v53  ;;  %v7592_v36 = vrot.slane %v6366_v45, 2  ;;  %v7595_v10 = vld [vmem:[#allocation19_spill] sm:$0xff]  ;;  %v7598_v45 = vld [vmem:[#allocation57_spill] sm:$0xff] }
 0x459   :  { %v6642_v54 = vadd.f32 %v2057_v39, %v1948_v27  ;;  %v2012_v5 = vmul.f32 %v7594_v49, %v7593_v3  ;;  %v2099_v4 = vadd.f32 %v7595_v10, %v1946_v38  ;;  %v2333_v58 = vadd.f32 %v2301_v9, %v2095_v48  ;;  %v1672_v15 = vpop.permute.xlu1 %1671  ;;  %v7600_v9 = vld [vmem:[#allocation90_spill] sm:$0xff]  ;;  %v7603_v3 = vld [vmem:[#allocation49_spill] sm:$0xff] }
 0x45a   :  { %v2075_v1 = vsel %vm2037_vm14, %v7592_v36, %v2074_v2  ;;  %v1483_v31 = vadd.f32 %v1450_v21, %v1330_v35  ;;  %v1484_v28 = vadd.f32 %v6491_v29, %v1331_v57  ;;  %v2677_v16 = vmul.f32 %v6420_v13, %v6420_v13  ;;  %v6674_v57 = vpop.permute.xlu0 %2510  ;;  %v7601_v21 = vld [vmem:[#allocation99_spill] sm:$0xff] }
 0x45b   :  { %v2309_v60 = vsel %vm635_vm1, %v7597_v8, %v7596_v56  ;;  %v2539_v0 = vsel %vm633_vm2, %v7598_v45, %v6427_v59  ;;  %v2543_v7 = vsel %vm633_vm2, %v6203_v30, %v6644_v51  ;;  %v2337_v38 = vadd.f32 %v2305_v41, %v2099_v4 }
 0x45c   :  { %v2107_v35 = vadd.f32 %v7599_v42, %v1954_v62  ;;  %v6671_v63 = vadd.f32 %v2535_v61, %v2333_v58  ;;  %v2341_v29 = vadd.f32 %v2309_v60, %v6458_v43  ;;  %v2673_v27 = vmul.f32 %v6429_v32, %v6429_v32  ;;  %v7602_v61 = vld [vmem:[#allocation48_spill] sm:$0xff]  ;;  %v7605_v42 = vld [vmem:[#allocation62_spill] sm:$0xff] }
 0x45d   :  { %v2313_v50 = vsel %vm635_vm1, %v6177_v47, %v6484_v55  ;;  %v1689_v30 = vsel %vm635_vm1, %v6238_v46, %v1672_v15  ;;  %v1690_v19 = vsel %vm635_vm1, %v1672_v15, %v7600_v9  ;;  %v6685_v20 = vadd.f32 %v2539_v0, %v2337_v38  ;;  %v2529_v6 = vpop.permute.xlu1 %2528 }
 0x45e   :  { %v6687_v14 = vadd.f32 %v2543_v7, %v2341_v29  ;;  %v1721_v43 = vadd.f32 %v1689_v30, %v1483_v31  ;;  %v1722_v39 = vadd.f32 %v1690_v19, %v1484_v28  ;;  %v2689_v52 = vadd.f32 %v2677_v16, %v2673_v27  ;;  %v6707_v4 = vpop.permute.xlu0 %2296 }
 0x45f   :  { %v1923_v12 = vsel %vm633_vm2, %v7581_v24, %v6549_v44  ;;  %v1924_v47 = vsel %vm633_vm2, %v6549_v44, %v7601_v21  ;;  %v2076_v2 = vrot.slane %v2012_v5, 2  ;;  %v2345_v46 = vadd.f32 %v2313_v50, %v2107_v35 }
 0x460   :  { %v2591_v62 = vadd.f32 %v6685_v20, %v6671_v63  ;;  %v1955_v26 = vadd.f32 %v1923_v12, %v1721_v43  ;;  %v1956_v48 = vadd.f32 %v1924_v47, %v1722_v39  ;;  %v2681_v41 = vmul.f32 %v6455_v37, %v6455_v37  ;;  %v7606_v39 = vld [vmem:[#allocation101_spill] sm:$0xff] }
 0x461   :  { %v2685_v36 = vmul.f32 %v7602_v61, %v7602_v61  ;;  %v2547_v24 = vsel %vm633_vm2, %v7603_v3, %v2529_v6  ;;  %v7604_v49 = vrot.slane %v6385_v23, 2  ;;  %v2267_v8 = vpop.permute.xlu1 %2266  ;;  %v2306_v0 = vsel %vm635_vm1, %v7590_v25, %v6590_v11 }
 0x462   :  { %v2592_v5 = vadd.f32 %v2591_v62, %v6687_v14  ;;  %v2108_v10 = vadd.f32 %v2075_v1, %v1955_v26  ;;  %v6709_v58 = vadd.f32 %v2547_v24, %v2345_v46  ;;  %v2690_v28 = vadd.f32 %v2689_v52, %v2681_v41  ;;  %v6719_v38 = vpop.permute.xlu0 %2530  ;;  %v7607_v46 = vld [vmem:[#allocation92_spill] sm:$0xff] }
 0x463   :  { %v2077_v44 = vsel %vm2037_vm14, %v7604_v49, %v2076_v2  ;;  %v2302_v60 = vsel %vm635_vm1, %v6502_v18, %v2267_v8  ;;  %v2338_v1 = vadd.f32 %v2306_v0, %v2100_v17  ;;  %v2678_v15 = vmul.f32 %v6685_v20, %v6685_v20 }
 0x464   :  { %v6711_v31 = vadd.f32 %v2077_v44, %v1956_v48  ;;  %v2593_v16 = vadd.f32 %v2592_v5, %v6709_v58  ;;  %v2691_v45 = vadd.f32 %v2690_v28, %v2685_v36  ;;  %v2334_v35 = vadd.f32 %v2302_v60, %v7605_v42  ;;  %v7608_v44 = vld [vmem:[#allocation52_spill] sm:$0xff] }
 0x465   :  { %v2501_v29 = vpop.permute.xlu1 %2500  ;;  %v2674_v27 = vmul.f32 %v6671_v63, %v6671_v63  ;;  %v2314_v17 = vsel %vm635_vm1, %v6484_v55, %v6707_v4  ;;  %v2310_v9 = vsel %vm635_vm1, %v7596_v56, %v6624_v22  ;;  %v2682_v19 = vmul.f32 %v6687_v14, %v6687_v14 }
 0x466   :  { %v2594_v23 = vrot.slane %v2593_v16, 4  ;;  %v2536_v18 = vsel %vm633_vm2, %v6567_v53, %v2501_v29  ;;  %v2692_v50 = vrot.slane %v2691_v45, 4  ;;  %v2540_v43 = vsel %vm633_vm2, %v6427_v59, %v6674_v57 }
 0x467   :  { %v6731_v25 = vadd.f32 %v2536_v18, %v2334_v35  ;;  %v2346_v53 = vadd.f32 %v2314_v17, %v2108_v10  ;;  %v2307_v52 = vsel %vm635_vm1, %v6590_v11, %v7606_v39  ;;  %v2342_v55 = vadd.f32 %v2310_v9, %v6620_v40  ;;  %v2513_v11 = vpop.permute.xlu0 %2512 }
 0x468   :  { %v2595_v7 = vadd.f32 %v2594_v23, %v2593_v16  ;;  %v6745_v12 = vadd.f32 %v2540_v43, %v2338_v1  ;;  %v2698_v2 = vadd.f32 %v2678_v15, %v2674_v27  ;;  %v2686_v56 = vmul.f32 %v6709_v58, %v6709_v58  ;;  %v7609_v15 = vld [vmem:[#allocation94_spill] sm:$0xff] }
 0x469   :  { %v2521_v21 = vpop.permute.xlu1 %2520  ;;  %v2303_v62 = vsel %vm635_vm1, %v2267_v8, %v7607_v46  ;;  %v2548_v26 = vsel %vm633_vm2, %v2529_v6, %v6719_v38  ;;  %v2339_v24 = vadd.f32 %v2307_v52, %v6642_v54  ;;  %v2693_v49 = vadd.f32 %v2692_v50, %v2691_v45 }
 0x46a   :  { %v2596_v30 = vrot.slane %v2595_v7, 2  ;;  %v2544_v59 = vsel %vm633_vm2, %v6644_v51, %v2521_v21  ;;  %v2600_v40 = vadd.f32 %v6745_v12, %v6731_v25  ;;  %v2699_v36 = vadd.f32 %v2698_v2, %v2682_v19 }
 0x46b   :  { %v6757_v48 = vadd.f32 %v2544_v59, %v2342_v55  ;;  %v6759_v3 = vadd.f32 %v2548_v26, %v2346_v53  ;;  %v2335_v5 = vadd.f32 %v2303_v62, %v7608_v44  ;;  %v2675_v51 = vmul.f32 %v6731_v25, %v6731_v25  ;;  %v2523_v42 = vpop.permute.xlu0 %2522 }
 0x46c   :  { %v2597_v47 = vadd.f32 %v2596_v30, %v2595_v7  ;;  %v2679_v16 = vmul.f32 %v6745_v12, %v6745_v12  ;;  %v2700_v8 = vadd.f32 %v2699_v36, %v2686_v56  ;;  %v2541_v60 = vsel %vm633_vm2, %v6674_v57, %v2513_v11 }
 0x46d   :  { %v2601_v6 = vadd.f32 %v2600_v40, %v6757_v48  ;;  %v2503_v10 = vpop.permute.xlu1 %2502  ;;  %v2683_v23 = vmul.f32 %v6757_v48, %v6757_v48  ;;  %v6782_v1 = vadd.f32 %v2541_v60, %v2339_v24  ;;  %v2311_v27 = vsel %vm635_vm1, %v6624_v22, %v7609_v15 }
 0x46e   :  { %v2598_v41 = vrot.slane %v2597_v47, 1  ;;  %v2537_v54 = vsel %vm633_vm2, %v2501_v29, %v2503_v10  ;;  %v2707_v7 = vadd.f32 %v2679_v16, %v2675_v51  ;;  %v2694_v29 = vrot.slane %v2693_v49, 2 }
 0x46f   :  { %v2602_v45 = vadd.f32 %v2601_v6, %v6759_v3  ;;  %v6776_v0 = vadd.f32 %v2537_v54, %v2335_v5  ;;  %v2701_v18 = vrot.slane %v2700_v8, 4  ;;  %v2545_v50 = vsel %vm633_vm2, %v2521_v21, %v2523_v42 }
 0x470   :  { %v6766_v28 = vadd.f32 %v2598_v41, %v2597_v47  ;;  %v2343_v30 = vadd.f32 %v2311_v27, %v6622_v34  ;;  %v2708_v9 = vadd.f32 %v2707_v7, %v2683_v23  ;;  %v2687_v53 = vmul.f32 %v6759_v3, %v6759_v3 }
 0x471   :  { %v2603_v57 = vrot.slane %v2602_v45, 4  ;;  %v2299_v35 = vpop.permute.xlu1 %2298  ;;  %v2609_v19 = vadd.f32 %v6782_v1, %v6776_v0  ;;  %v2676_v39 = vmul.f32 %v6776_v0, %v6776_v0  ;;  %v2680_v55 = vmul.f32 %v6782_v1, %v6782_v1 }
 0x472   :  { %2637 = vrot.lane.b32.xlu1 %v6766_v28, %s4429_s20  ;;  %2633 = vrot.lane.b32.xlu0 %v6766_v28, %s4432_s4  ;;  %v2315_v17 = vsel %vm635_vm1, %v6707_v4, %v2299_v35  ;;  %v6797_v22 = vadd.f32 %v2545_v50, %v2343_v30  ;;  %v2695_v47 = vadd.f32 %v2694_v29, %v2693_v49  ;;  %vm3889_vm13 = vcmask 719872  }
 0x473   :  { %v2604_v43 = vadd.f32 %v2603_v57, %v2602_v45  ;;  %v2347_v4 = vadd.f32 %v2315_v17, %v6711_v31  ;;  %v2702_v2 = vadd.f32 %v2701_v18, %v2700_v8  ;;  %v2709_v56 = vadd.f32 %v2708_v9, %v2687_v53 }
 0x474   :  { %v2610_v62 = vadd.f32 %v2609_v19, %v6797_v22  ;;  %v2716_v26 = vadd.f32 %v2680_v55, %v2676_v39  ;;  %v2684_v40 = vmul.f32 %v6797_v22, %v6797_v22  ;;  %v2696_v41 = vrot.slane %v2695_v47, 1 }
 0x475   :  { %v2533_v52 = vpop.permute.xlu1 %2532  ;;  %v2605_v34 = vrot.slane %v2604_v43, 2  ;;  %v2703_v36 = vrot.slane %v2702_v2, 2  ;;  %v2710_v44 = vrot.slane %v2709_v56, 4  ;;  %vm3892_vm14 = vcmask 850944  }
 0x476   :  { %2641 = vrot.lane.b32.xlu1 %v6766_v28, %s4427_s30  ;;  %v2549_v21 = vsel %vm633_vm2, %v6719_v38, %v2533_v52  ;;  %v2717_v51 = vadd.f32 %v2716_v26, %v2684_v40  ;;  %v2697_v6 = vadd.f32 %v2696_v41, %v2695_v47 }
 0x477   :  { %v6806_v46 = vadd.f32 %v2549_v21, %v2347_v4  ;;  %v2606_v59 = vadd.f32 %v2605_v34, %v2604_v43  ;;  %v2704_v8 = vadd.f32 %v2703_v36, %v2702_v2  ;;  %v2711_v60 = vadd.f32 %v2710_v44, %v2709_v56 }
 0x479   :  { %v2611_v11 = vadd.f32 %v2610_v62, %v6806_v46  ;;  %v2607_v31 = vrot.slane %v2606_v59, 1  ;;  %v2688_v38 = vmul.f32 %v6806_v46, %v6806_v46  ;;  %v2705_v23 = vrot.slane %v2704_v8, 1 }
 0x47a   :  { %v2712_v42 = vrot.slane %v2711_v60, 2 }
 0x47b   :  { %v2612_v24 = vrot.slane %v2611_v11, 4  ;;  %v6814_v49 = vadd.f32 %v2607_v31, %v2606_v59  ;;  %v2718_v16 = vadd.f32 %v2717_v51, %v2688_v38  ;;  %v2706_v35 = vadd.f32 %v2705_v23, %v2704_v8 }
 0x47c   :  { %v2713_v15 = vadd.f32 %v2712_v42, %v2711_v60 }
 0x47d   :  { %v2613_v5 = vadd.f32 %v2612_v24, %v2611_v11  ;;  %2651 = vrot.lane.b32.xlu1 %v6814_v49, %s4429_s20  ;;  %2647 = vrot.lane.b32.xlu0 %v6814_v49, %s4432_s4  ;;  %v2719_v45 = vrot.slane %v2718_v16, 4 }
 0x47e   :  { %v2714_v27 = vrot.slane %v2713_v15, 1 }
 0x47f   :  { %v2614_v10 = vrot.slane %v2613_v5, 2  ;;  %v2720_v57 = vadd.f32 %v2719_v45, %v2718_v16 }
 0x480   :  { %v2715_v50 = vadd.f32 %v2714_v27, %v2713_v15 }
 0x481   :  { %2734 = vrot.lane.b32.xlu1 %v2697_v6, %s4427_s30  ;;  %2726 = vrot.lane.b32.xlu0 %v2697_v6, %s4432_s4  ;;  %v2615_v54 = vadd.f32 %v2614_v10, %v2613_v5  ;;  %v2721_v18 = vrot.slane %v2720_v57, 2 }
 0x483   :  { %v2616_v7 = vrot.slane %v2615_v54, 1  ;;  %v2722_v17 = vadd.f32 %v2721_v18, %v2720_v57 }
 0x485   :  { %2655 = vrot.lane.b32.xlu1 %v6814_v49, %s4427_s30  ;;  %2730 = vrot.lane.b32.xlu0 %v2697_v6, %s4429_s20  ;;  %v2617_v29 = vadd.f32 %v2616_v7, %v2615_v54  ;;  %v2723_v30 = vrot.slane %v2722_v17, 1 }
 0x487   :  { %v2724_v9 = vadd.f32 %v2723_v30, %v2722_v17 }
 0x489   :  { %2748 = vrot.lane.b32.xlu1 %v2706_v35, %s4427_s30  ;;  %2661 = vrot.lane.b32.xlu0 %v2617_v29, %s4432_s4 }
 0x48d   :  { %2665 = vrot.lane.b32.xlu1 %v2617_v29, %s4429_s20  ;;  %2740 = vrot.lane.b32.xlu0 %v2706_v35, %s4432_s4 }
 0x491   :  { %2762 = vrot.lane.b32.xlu1 %v2715_v50, %s4427_s30  ;;  %2744 = vrot.lane.b32.xlu0 %v2706_v35, %s4429_s20 }
 0x495   :  { %2669 = vrot.lane.b32.xlu1 %v2617_v29, %s4427_s30  ;;  %2754 = vrot.lane.b32.xlu0 %v2715_v50, %s4432_s4 }
 0x499   :  { %2776 = vrot.lane.b32.xlu1 %v2724_v9, %s4427_s30  ;;  %2758 = vrot.lane.b32.xlu0 %v2715_v50, %s4429_s20 }
 0x49d   :  { %2768 = vrot.lane.b32.xlu0 %v2724_v9, %s4432_s4 }
 0x4a1   :  { %2772 = vrot.lane.b32.xlu0 %v2724_v9, %s4429_s20 }
 0x4c4   :  { %v2624_v19 = vpop.permute.xlu1 %2623  ;;  %v2620_v43 = vpop.permute.xlu0 %2619 }
 0x4c5   :  { %v2622_v39 = vadd.f32 %v2620_v43, %v6598_v33 }
 0x4c7   :  { %v2626_v52 = vadd.f32 %v2624_v19, %v2622_v39 }
 0x4c8   :  { %v2628_v53 = vpop.permute.xlu1 %2627 }
 0x4c9   :  { %v2630_v34 = vadd.f32 %v2628_v53, %v2626_v52 }
 0x4cb   :  { %v2631_v47 = vadd.f32 %v2630_v34, %v6766_v28 }
 0x4e4   :  { %v2638_v4 = vpop.permute.xlu1 %2637  ;;  %v2634_v55 = vpop.permute.xlu0 %2633 }
 0x4e5   :  { %v2636_v62 = vadd.f32 %v2634_v55, %v2631_v47 }
 0x4e7   :  { %v2640_v11 = vadd.f32 %v2638_v4, %v2636_v62  ;;  %v2780_v62 = vld [vmem:[%s7200_s5] sm:$0x1] }
 0x4e8   :  { %v2642_v21 = vpop.permute.xlu1 %2641 }
 0x4e9   :  { %v2644_v36 = vadd.f32 %v2642_v21, %v2640_v11  ;;  %v7610_v11 = vld [vmem:[#allocation29_spill] sm:$0xff] }
 0x4eb   :  { %v2645_v44 = vadd.f32 %v2644_v36, %v6814_v49 }
 0x4ef   :  { %v2652_v2 = vpop.permute.xlu1 %2651  ;;  %v2648_v56 = vpop.permute.xlu0 %2647 }
 0x4f0   :  { %v2650_v51 = vadd.f32 %v2648_v56, %v2645_v44 }
 0x4f2   :  { %v2654_v8 = vadd.f32 %v2652_v2, %v2650_v51 }
 0x4f3   :  { %v2735_v59 = vpop.permute.xlu1 %2734  ;;  %v2727_v26 = vpop.permute.xlu0 %2726 }
 0x4f4   :  { %v2729_v31 = vadd.f32 %v2727_v26, %v2697_v6 }
 0x4f7   :  { %v2656_v40 = vpop.permute.xlu1 %2655  ;;  %v2731_v41 = vpop.permute.xlu0 %2730 }
 0x4f8   :  { %v2733_v24 = vadd.f32 %v2731_v41, %v2729_v31  ;;  %v2658_v45 = vadd.f32 %v2656_v40, %v2654_v8 }
 0x4fa   :  { %v2737_v5 = vadd.f32 %v2735_v59, %v2733_v24  ;;  %v2659_v57 = vadd.f32 %v2658_v45, %v2617_v29 }
 0x4fb   :  { %v2749_v38 = vpop.permute.xlu1 %2748  ;;  %v2662_v33 = vpop.permute.xlu0 %2661 }
 0x4fc   :  { %v2738_v16 = vadd.f32 %v2737_v5, %v2706_v35  ;;  %v2664_v17 = vadd.f32 %v2662_v33, %v2659_v57 }
 0x4ff   :  { %v2741_v10 = vpop.permute.xlu0 %2740  ;;  %v2666_v28 = vpop.permute.xlu1 %2665 }
 0x500   :  { %v2743_v60 = vadd.f32 %v2741_v10, %v2738_v16  ;;  %v2668_v19 = vadd.f32 %v2666_v28, %v2664_v17 }
 0x503   :  { %v2745_v54 = vpop.permute.xlu0 %2744  ;;  %v2763_v6 = vpop.permute.xlu1 %2762 }
 0x504   :  { %v2747_v23 = vadd.f32 %v2745_v54, %v2743_v60 }
 0x506   :  { %v2751_v7 = vadd.f32 %v2749_v38, %v2747_v23 }
 0x507   :  { %v2755_v42 = vpop.permute.xlu0 %2754  ;;  %v2670_v49 = vpop.permute.xlu1 %2669 }
 0x508   :  { %v2752_v15 = vadd.f32 %v2751_v7, %v2715_v50  ;;  %v2672_v35 = vadd.f32 %v2670_v49, %v2668_v19 }
 0x50a   :  { %v2757_v27 = vadd.f32 %v2755_v42, %v2752_v15  ;;  %v2782_v34 = vmul.f32 0.001953125, %v2672_v35 }
 0x50b   :  { %v2759_v18 = vpop.permute.xlu0 %2758  ;;  %v2777_v21 = vpop.permute.xlu1 %2776 }
 0x50c   :  { %v2761_v30 = vadd.f32 %v2759_v18, %v2757_v27  ;;  %v2784_v2 = vmul.f32 %v2782_v34, %v2782_v34 }
 0x50e   :  { %v2765_v43 = vadd.f32 %v2763_v6, %v2761_v30 }
 0x50f   :  { %v2769_v53 = vpop.permute.xlu0 %2768 }
 0x510   :  { %v2766_v39 = vadd.f32 %v2765_v43, %v2724_v9  ;;  %v2781_v9 = vld [vmem:[%s7201_s6] sm:$0x1] }
 0x512   :  { %v2771_v4 = vadd.f32 %v2769_v53, %v2766_v39 }
 0x513   :  { %v2773_v52 = vpop.permute.xlu0 %2772 }
 0x514   :  { %v2775_v55 = vadd.f32 %v2773_v52, %v2771_v4 }
 0x516   :  { %v2779_v47 = vadd.f32 %v2777_v21, %v2775_v55 }
 0x518   :  { %v2783_v56 = vmul.f32 0.001953125, %v2779_v47 }
 0x51a   :  { %v2785_v29 = vsub.f32 %v2783_v56, %v2784_v2 }
 0x51c   :  { %v2786_v50 = vadd.f32 1e-05, %v2785_v29 }
 0x51e   :  { %4273 = vrsqrt.f32 %v2786_v50 }
 0x52b   :  { %v4274_v59 = vpop.eup %4273 }
 0x52c   :  { %v2788_v26 = vmul.f32 %v4274_v59, %v2780_v62 }
 0x52e   :  { %v2795_v31 = vrot.slane %v2788_v26, %v7610_v11  ;;  %v2789_v40 = vmul.f32 %v2788_v26, %v2782_v34 }
 0x530   :  { %2799 = vrot.lane.b32.xlu1 %v2795_v31, %s4429_s20  ;;  %2796 = vrot.lane.b32.xlu0 %v2795_v31, %s4427_s30  ;;  %v2790_v41 = vsub.f32 %v2781_v9, %v2789_v40 }
 0x532   :  { %v2812_v36 = vrot.slane %v2790_v41, %v7610_v11 }
 0x534   :  { %2802 = vrot.lane.b32.xlu0 %v2795_v31, %s4432_s4  ;;  %2813 = vrot.lane.b32.xlu1 %v2812_v36, %s4427_s30 }
 0x538   :  { %2816 = vrot.lane.b32.xlu0 %v2812_v36, %s4429_s20  ;;  %2819 = vrot.lane.b32.xlu1 %v2812_v36, %s4432_s4 }
 0x5a2   :  { %v2800_v24 = vpop.permute.xlu1 %2799  ;;  %v2797_v38 = vpop.permute.xlu0 %2796 }
 0x5a3   :  { %v2805_v33 = vsel %vm631_vm0, %v2788_v26, %v2797_v38 }
 0x5a4   :  { %v2806_v44 = vsel %vm633_vm2, %v2805_v33, %v2800_v24 }
 0x5a6   :  { %v2803_v5 = vpop.permute.xlu0 %2802  ;;  %v2814_v51 = vpop.permute.xlu1 %2813 }
 0x5a7   :  { %v2807_v10 = vsel %vm635_vm1, %v2806_v44, %v2803_v5  ;;  %v2822_v28 = vsel %vm631_vm0, %v2790_v41, %v2814_v51 }
 0x5a8   :  { %v6858_v16 = vrot.slane %v2807_v10, %v7610_v11 }
 0x5aa   :  { %v2817_v8 = vpop.permute.xlu0 %2816  ;;  %v2820_v60 = vpop.permute.xlu1 %2819  ;;  %v2837_v45 = vmul.f32 %v6858_v16, %v6455_v37  ;;  %v2841_v23 = vmul.f32 %v6858_v16, %v7602_v61  ;;  %v2829_v6 = vmul.f32 %v6858_v16, %v6429_v32  ;;  %v2833_v42 = vmul.f32 %v6858_v16, %v6420_v13 }
 0x5ab   :  { %v2823_v54 = vsel %vm633_vm2, %v2822_v28, %v2817_v8  ;;  %v2838_v57 = vmul.f32 %v6858_v16, %v6687_v14  ;;  %v2842_v37 = vmul.f32 %v6858_v16, %v6709_v58  ;;  %v2830_v61 = vmul.f32 %v6858_v16, %v6671_v63 }
 0x5ac   :  { %v2824_v7 = vsel %vm635_vm1, %v2823_v54, %v2820_v60  ;;  %v2834_v27 = vmul.f32 %v6858_v16, %v6685_v20  ;;  %v2839_v32 = vmul.f32 %v6858_v16, %v6757_v48  ;;  %v2843_v13 = vmul.f32 %v6858_v16, %v6759_v3 }
 0x5ad   :  { %v6874_v15 = vrot.slane %v2824_v7, %v7610_v11  ;;  %v2831_v14 = vmul.f32 %v6858_v16, %v6731_v25  ;;  %v2835_v18 = vmul.f32 %v6858_v16, %v6745_v12 }
 0x5af   :  { %v2857_v58 = vadd.f32 %v6874_v15, %v2837_v45  ;;  %v2861_v17 = vadd.f32 %v6874_v15, %v2841_v23  ;;  %v2849_v63 = vadd.f32 %v6874_v15, %v2829_v6  ;;  %v2853_v20 = vadd.f32 %v6874_v15, %v2833_v42 }
 0x5b0   :  { %v2858_v30 = vadd.f32 %v6874_v15, %v2838_v57  ;;  %v2862_v48 = vadd.f32 %v6874_v15, %v2842_v37  ;;  %v2850_v3 = vadd.f32 %v6874_v15, %v2830_v61  ;;  %v2854_v49 = vadd.f32 %v6874_v15, %v2834_v27 }
 0x5b1   :  { %v2873_v25 = vmax.f32 %v2857_v58, 0.0  ;;  %v2877_v19 = vmax.f32 %v2861_v17, 0.0  ;;  %v2865_v43 = vmax.f32 %v2849_v63, 0.0  ;;  %v2869_v12 = vmax.f32 %v2853_v20, 0.0 }
 0x5b2   :  { %v2874_v53 = vmax.f32 %v2858_v30, 0.0  ;;  %v2878_v35 = vmax.f32 %v2862_v48, 0.0  ;;  %v2866_v39 = vmax.f32 %v2850_v3, 0.0  ;;  %v2870_v4 = vmax.f32 %v2854_v49, 0.0 }
 0x5b3   :  { %v6898_v52 = vmin.f32 %v2873_v25, 6.0  ;;  %v6900_v34 = vmin.f32 %v2877_v19, 6.0  ;;  %v6902_v55 = vmin.f32 %v2865_v43, 6.0  ;;  %v6904_v21 = vmin.f32 %v2869_v12, 6.0 }
 0x5b4   :  { %v6906_v47 = vmin.f32 %v2874_v53, 6.0  ;;  %v6908_v2 = vmin.f32 %v2878_v35, 6.0  ;;  %v6910_v56 = vmin.f32 %v2866_v39, 6.0  ;;  %v6912_v29 = vmin.f32 %v2870_v4, 6.0 }
 0x5b5   :  { %v2925_v50 = vadd.f32 %v6900_v34, %v6898_v52  ;;  %v2897_v62 = vadd.f32 %v6904_v21, %v6902_v55  ;;  %v2859_v59 = vadd.f32 %v6874_v15, %v2839_v32  ;;  %v2863_v26 = vadd.f32 %v6874_v15, %v2843_v13 }
 0x5b6   :  { %v2932_v9 = vadd.f32 %v6908_v2, %v6906_v47  ;;  %v2904_v31 = vadd.f32 %v6912_v29, %v6910_v56  ;;  %v2851_v40 = vadd.f32 %v6874_v15, %v2831_v14  ;;  %v2855_v41 = vadd.f32 %v6874_v15, %v2835_v18 }
 0x5b7   :  { %v2926_v36 = vrot.slane %v2925_v50, 4  ;;  %v2898_v24 = vrot.slane %v2897_v62, 4  ;;  %v2875_v38 = vmax.f32 %v2859_v59, 0.0  ;;  %v2879_v33 = vmax.f32 %v2863_v26, 0.0 }
 0x5b8   :  { %v2933_v44 = vrot.slane %v2932_v9, 4  ;;  %v2905_v5 = vrot.slane %v2904_v31, 4  ;;  %v2867_v51 = vmax.f32 %v2851_v40, 0.0  ;;  %v2871_v10 = vmax.f32 %v2855_v41, 0.0 }
 0x5b9   :  { %v2927_v28 = vadd.f32 %v2926_v36, %v2925_v50  ;;  %v2899_v8 = vadd.f32 %v2898_v24, %v2897_v62  ;;  %v6926_v45 = vmin.f32 %v2875_v38, 6.0  ;;  %v6928_v23 = vmin.f32 %v2879_v33, 6.0 }
 0x5ba   :  { %v2934_v7 = vadd.f32 %v2933_v44, %v2932_v9  ;;  %v2906_v6 = vadd.f32 %v2905_v5, %v2904_v31  ;;  %v6930_v42 = vmin.f32 %v2867_v51, 6.0  ;;  %v6932_v57 = vmin.f32 %v2871_v10, 6.0 }
 0x5bb   :  { %v2928_v60 = vrot.slane %v2927_v28, 2  ;;  %v2900_v54 = vrot.slane %v2899_v8, 2  ;;  %v2840_v27 = vmul.f32 %v6858_v16, %v6797_v22  ;;  %v2844_v32 = vmul.f32 %v6858_v16, %v6806_v46 }
 0x5bc   :  { %v2832_v13 = vmul.f32 %v6858_v16, %v6776_v0  ;;  %v2939_v58 = vadd.f32 %v6928_v23, %v6926_v45  ;;  %v2836_v17 = vmul.f32 %v6858_v16, %v6782_v1  ;;  %v2935_v63 = vrot.slane %v2934_v7, 2 }
 0x5bd   :  { %v2929_v37 = vadd.f32 %v2928_v60, %v2927_v28  ;;  %v2901_v61 = vadd.f32 %v2900_v54, %v2899_v8  ;;  %v2907_v20 = vrot.slane %v2906_v6, 2  ;;  %v2911_v30 = vadd.f32 %v6932_v57, %v6930_v42 }
 0x5be   :  { %v2860_v22 = vadd.f32 %v6874_v15, %v2840_v27  ;;  %v2864_v0 = vadd.f32 %v6874_v15, %v2844_v32  ;;  %v2852_v3 = vadd.f32 %v6874_v15, %v2832_v13  ;;  %v2856_v1 = vadd.f32 %v6874_v15, %v2836_v17  ;;  %v4237_v32 = vld [vmem:[%s7202_s7 + $0x8] sm:$0xff]  }
 0x5bf   :  { %v2930_v14 = vrot.slane %v2929_v37, 1  ;;  %v2902_v18 = vrot.slane %v2901_v61, 1  ;;  %v2936_v16 = vadd.f32 %v2935_v63, %v2934_v7  ;;  %v2908_v49 = vadd.f32 %v2907_v20, %v2906_v6  ;;  %4148 = vmatpush3.bf16.msra.mxu0 %v4237_v32  ;;  %v4238_v63 = vld [vmem:[%s7202_s7] sm:$0xff]  }
 0x5c0   :  { %v2940_v25 = vrot.slane %v2939_v58, 4  ;;  %v2876_v19 = vmax.f32 %v2860_v22, 0.0  ;;  %v2912_v43 = vrot.slane %v2911_v30, 4  ;;  %v2880_v12 = vmax.f32 %v2864_v0, 0.0 }
 0x5c1   :  { %v6947_v48 = vadd.f32 %v2930_v14, %v2929_v37  ;;  %v6949_v46 = vadd.f32 %v2902_v18, %v2901_v61  ;;  %v2868_v53 = vmax.f32 %v2852_v3, 0.0  ;;  %v2872_v35 = vmax.f32 %v2856_v1, 0.0 }
 0x5c2   :  { %v2937_v39 = vrot.slane %v2936_v16, 1  ;;  %v2909_v4 = vrot.slane %v2908_v49, 1  ;;  %v2941_v50 = vadd.f32 %v2940_v25, %v2939_v58  ;;  %v6962_v62 = vmin.f32 %v2876_v19, 6.0 }
 0x5c3   :  { %2957 = vrot.lane.b32.xlu0 %v6947_v48, %s4432_s4  ;;  %2955 = vrot.lane.b32.xlu1 %v6949_v46, %s4432_s4  ;;  %v2913_v15 = vadd.f32 %v2912_v43, %v2911_v30  ;;  %v6964_v59 = vmin.f32 %v2880_v12, 6.0  ;;  %v6966_v26 = vmin.f32 %v2868_v53, 6.0  ;;  %v6968_v9 = vmin.f32 %v2872_v35, 6.0 }
 0x5c4   :  { %v6974_v31 = vadd.f32 %v2937_v39, %v2936_v16  ;;  %v2942_v40 = vrot.slane %v2941_v50, 2  ;;  %v6976_v41 = vadd.f32 %v2909_v4, %v2908_v49  ;;  %v7611_v18 = vmov 0.0  }
 0x5c5   :  { %v2914_v36 = vrot.slane %v2913_v15, 2  ;;  %v2946_v24 = vadd.f32 %v6964_v59, %v6962_v62  ;;  %v2918_v38 = vadd.f32 %v6968_v9, %v6966_v26  ;;  %4149 = vmatprep.subr.bf16.mxu0 %v7611_v18  ;;  %4151 = vmatprep.mubr.msk.bf16.mxu0 %vm4434_vm15, %v7611_v18 }
 0x5c6   :  { %v2943_v33 = vadd.f32 %v2942_v40, %v2941_v50  ;;  %4157 = vmatprep.mubr.msk.bf16.mxu1 %vm4434_vm15, %v7611_v18  ;;  %4150 = vmatpush3.bf16.msra.mxu0 %v4238_v63  ;;  %vm3894_vm15 = vcmask 916480  }
 0x5c7   :  { %2965 = vrot.lane.b32.xlu0 %v6947_v48, %s4429_s20  ;;  %2963 = vrot.lane.b32.xlu1 %v6949_v46, %s4429_s20  ;;  %v2915_v44 = vadd.f32 %v2914_v36, %v2913_v15  ;;  %v2947_v5 = vrot.slane %v2946_v24, 4  ;;  %v2919_v51 = vrot.slane %v2918_v38, 4 }
 0x5c8   :  { %v2944_v10 = vrot.slane %v2943_v33, 1 }
 0x5c9   :  { %v2916_v28 = vrot.slane %v2915_v44, 1  ;;  %v2948_v8 = vadd.f32 %v2947_v5, %v2946_v24  ;;  %v2920_v60 = vadd.f32 %v2919_v51, %v2918_v38 }
 0x5ca   :  { %v2945_v54 = vadd.f32 %v2944_v10, %v2943_v33 }
 0x5cb   :  { %2973 = vrot.lane.b32.xlu0 %v6947_v48, %s4427_s30  ;;  %2971 = vrot.lane.b32.xlu1 %v6949_v46, %s4427_s30  ;;  %v2917_v7 = vadd.f32 %v2916_v28, %v2915_v44  ;;  %v2949_v6 = vrot.slane %v2948_v8, 2  ;;  %v2921_v37 = vrot.slane %v2920_v60, 2 }
 0x5cd   :  { %v2950_v61 = vadd.f32 %v2949_v6, %v2948_v8  ;;  %v2922_v27 = vadd.f32 %v2921_v37, %v2920_v60 }
 0x5cf   :  { %2985 = vrot.lane.b32.xlu0 %v6974_v31, %s4432_s4  ;;  %2983 = vrot.lane.b32.xlu1 %v6976_v41, %s4432_s4  ;;  %v2951_v13 = vrot.slane %v2950_v61, 1  ;;  %v2923_v14 = vrot.slane %v2922_v27, 1 }
 0x5d1   :  { %v2952_v58 = vadd.f32 %v2951_v13, %v2950_v61  ;;  %v2924_v17 = vadd.f32 %v2923_v14, %v2922_v27 }
 0x5d3   :  { %2993 = vrot.lane.b32.xlu0 %v6974_v31, %s4429_s20  ;;  %2991 = vrot.lane.b32.xlu1 %v6976_v41, %s4429_s20 }
 0x5d7   :  { %3001 = vrot.lane.b32.xlu0 %v6974_v31, %s4427_s30  ;;  %2999 = vrot.lane.b32.xlu1 %v6976_v41, %s4427_s30 }
 0x5db   :  { %3013 = vrot.lane.b32.xlu0 %v2945_v54, %s4432_s4  ;;  %3011 = vrot.lane.b32.xlu1 %v2917_v7, %s4432_s4 }
 0x5df   :  { %3021 = vrot.lane.b32.xlu0 %v2945_v54, %s4429_s20  ;;  %3019 = vrot.lane.b32.xlu1 %v2917_v7, %s4429_s20 }
 0x5e3   :  { %3029 = vrot.lane.b32.xlu0 %v2945_v54, %s4427_s30  ;;  %3027 = vrot.lane.b32.xlu1 %v2917_v7, %s4427_s30 }
 0x5e7   :  { %3041 = vrot.lane.b32.xlu0 %v2952_v58, %s4432_s4  ;;  %3039 = vrot.lane.b32.xlu1 %v2924_v17, %s4432_s4 }
 0x5eb   :  { %3049 = vrot.lane.b32.xlu0 %v2952_v58, %s4429_s20  ;;  %3047 = vrot.lane.b32.xlu1 %v2924_v17, %s4429_s20 }
 0x5ef   :  { %3057 = vrot.lane.b32.xlu0 %v2952_v58, %s4427_s30  ;;  %3055 = vrot.lane.b32.xlu1 %v2924_v17, %s4427_s30 }
 0x635   :  { %v2958_v20 = vpop.permute.xlu0 %2957  ;;  %v2956_v30 = vpop.permute.xlu1 %2955 }
 0x636   :  { %v2962_v3 = vadd.f32 %v2958_v20, %v6947_v48  ;;  %v2961_v1 = vadd.f32 %v2956_v30, %v6949_v46 }
 0x639   :  { %v2966_v22 = vpop.permute.xlu0 %2965  ;;  %v2964_v0 = vpop.permute.xlu1 %2963 }
 0x63a   :  { %v2970_v16 = vadd.f32 %v2966_v22, %v2962_v3  ;;  %v2969_v49 = vadd.f32 %v2964_v0, %v2961_v1 }
 0x63d   :  { %v2974_v25 = vpop.permute.xlu0 %2973  ;;  %v2972_v19 = vpop.permute.xlu1 %2971 }
 0x63e   :  { %v2978_v43 = vadd.f32 %v2974_v25, %v2970_v16  ;;  %v2977_v12 = vadd.f32 %v2972_v19, %v2969_v49 }
 0x640   :  { %v2980_v39 = vadd.f32 %v2978_v43, %v6974_v31  ;;  %v2979_v4 = vadd.f32 %v2977_v12, %v6976_v41 }
 0x641   :  { %v2986_v53 = vpop.permute.xlu0 %2985  ;;  %v2984_v35 = vpop.permute.xlu1 %2983 }
 0x642   :  { %v2990_v40 = vadd.f32 %v2986_v53, %v2980_v39  ;;  %v2989_v36 = vadd.f32 %v2984_v35, %v2979_v4 }
 0x645   :  { %v2994_v50 = vpop.permute.xlu0 %2993  ;;  %v2992_v15 = vpop.permute.xlu1 %2991 }
 0x646   :  { %v2998_v24 = vadd.f32 %v2994_v50, %v2990_v40  ;;  %v2997_v48 = vadd.f32 %v2992_v15, %v2989_v36  ;;  %v3149_v50 = vld [vmem:[%s7204_s9] sm:$0xf] }
 0x647   :  { %v3163_v15 = vsel %vm3161_vm4, %v3149_v50, 0  ;;  %v4046_v40 = vld [vmem:[%s7203_s8] ss:$0 sm:$0xff] }
 0x648   :  { %4156 = vmatpush3.bf16.msra.mxu1 %v3163_v15  ;;  %v4262_v50 = vld [vmem:[#allocation9 + $0x90] sm:$0xff]   ;;  %v4263_v15 = vld [vmem:[#allocation9 + $0x48] sm:$0xff]  }
 0x649   :  { %v3002_v38 = vpop.permute.xlu0 %3001  ;;  %v3000_v46 = vpop.permute.xlu1 %2999 }
 0x64a   :  { %v3006_v33 = vadd.f32 %v3002_v38, %v2998_v24  ;;  %v3005_v44 = vadd.f32 %v3000_v46, %v2997_v48 }
 0x64c   :  { %v3008_v10 = vadd.f32 %v3006_v33, %v2945_v54  ;;  %v3007_v28 = vadd.f32 %v3005_v44, %v2917_v7 }
 0x64d   :  { %v3014_v5 = vpop.permute.xlu0 %3013  ;;  %v3012_v51 = vpop.permute.xlu1 %3011 }
 0x64e   :  { %v3018_v6 = vadd.f32 %v3014_v5, %v3008_v10  ;;  %v3017_v31 = vadd.f32 %v3012_v51, %v3007_v28 }
 0x651   :  { %v3022_v8 = vpop.permute.xlu0 %3021  ;;  %v3020_v60 = vpop.permute.xlu1 %3019 }
 0x652   :  { %v3026_v37 = vadd.f32 %v3022_v8, %v3018_v6  ;;  %v3025_v41 = vadd.f32 %v3020_v60, %v3017_v31  ;;  %v4239_v8 = vld [vmem:[#allocation9 + $0x78] sm:$0xff]  }
 0x653   :  { %v4240_v60 = vld [vmem:[#allocation9 + $0xf8] sm:$0xff]   ;;  %4091 = vmatprep.subr.bf16.mxu0 %v4239_v8 }
 0x654   :  { %v4241_v6 = vld [vmem:[#allocation9 + $0x38] sm:$0xff]   ;;  %4119 = vmatprep.subr.bf16.mxu1 %v4240_v60 }
 0x655   :  { %v3030_v61 = vpop.permute.xlu0 %3029  ;;  %v3028_v27 = vpop.permute.xlu1 %3027  ;;  %v4242_v31 = vld [vmem:[#allocation9 + $0xb8] sm:$0xff]  }
 0x656   :  { %v3034_v32 = vadd.f32 %v3030_v61, %v3026_v37  ;;  %v3033_v13 = vadd.f32 %v3028_v27, %v3025_v41  ;;  %v4243_v37 = vld [vmem:[#allocation9 + $0x70] sm:$0xff]  }
 0x657   :  { %v4244_v41 = vld [vmem:[#allocation9 + $0xf0] sm:$0xff]  }
 0x658   :  { %v3036_v63 = vadd.f32 %v3034_v32, %v2952_v58  ;;  %v3035_v20 = vadd.f32 %v3033_v13, %v2924_v17  ;;  %v4245_v61 = vld [vmem:[#allocation9 + $0x30] sm:$0xff]   ;;  %v4247_v32 = vld [vmem:[#allocation9 + $0x68] sm:$0xff]  }
 0x659   :  { %v3042_v14 = vpop.permute.xlu0 %3041  ;;  %v3040_v18 = vpop.permute.xlu1 %3039  ;;  %v4246_v27 = vld [vmem:[#allocation9 + $0xb0] sm:$0xff]   ;;  %v4248_v13 = vld [vmem:[#allocation9 + $0xe8] sm:$0xff]  }
 0x65a   :  { %v3046_v0 = vadd.f32 %v3042_v14, %v3036_v63  ;;  %v3045_v3 = vadd.f32 %v3040_v18, %v3035_v20  ;;  %v4249_v14 = vld [vmem:[#allocation9 + $0x28] sm:$0xff]   ;;  %v4051_v63 = vld [vmem:[%s7205_s10] ss:$0 sm:$0xff]  ;;  %s4436_s10 = smov 112  }
 0x65b   :  { %v4250_v18 = vld [vmem:[#allocation9 + $0xa8] sm:$0xff]  }
 0x65d   :  { %v3050_v30 = vpop.permute.xlu0 %3049  ;;  %v3048_v22 = vpop.permute.xlu1 %3047 }
 0x65e   :  { %v3054_v54 = vadd.f32 %v3050_v30, %v3046_v0  ;;  %v3053_v7 = vadd.f32 %v3048_v22, %v3045_v3 }
 0x661   :  { %v3058_v1 = vpop.permute.xlu0 %3057  ;;  %v3056_v16 = vpop.permute.xlu1 %3055 }
 0x662   :  { %v3062_v49 = vadd.f32 %v3058_v1, %v3054_v54  ;;  %v3061_v25 = vadd.f32 %v3056_v16, %v3053_v7  ;;  %v4251_v16 = vld [vmem:[#allocation9 + $0x60] sm:$0xff]  }
 0x664   :  { %v3064_v19 = vmul.f32 0.00390625, %v3062_v49  ;;  %v3063_v43 = vmul.f32 0.00390625, %v3061_v25  ;;  %v4252_v49 = vld [vmem:[#allocation9 + $0xe0] sm:$0xff]  }
 0x665   :  { %v4253_v25 = vld [vmem:[#allocation9 + $0x20] sm:$0xff]  }
 0x666   :  { %v3066_v12 = vpack.c.bf16 %v3064_v19, %v3064_v19  ;;  %v3065_v53 = vpack.c.bf16 %v3063_v43, %v3063_v43  ;;  %v4254_v19 = vld [vmem:[#allocation9 + $0xa0] sm:$0xff]   ;;  %v4255_v43 = vld [vmem:[#allocation9 + $0x58] sm:$0xff]  }
 0x668   :  { %v3081_v35 = vunpack.c.l.b16 %v3066_v12  ;;  %v3080_v4 = vunpack.c.l.b16 %v3065_v53  ;;  %v4256_v12 = vld [vmem:[#allocation9 + $0xd8] sm:$0xff]  }
 0x669   :  { %v4257_v53 = vld [vmem:[#allocation9 + $0x18] sm:$0xff]  }
 0x66a   :  { %v3082_v39 = vrot.slane %v3081_v35, 7 }
 0x66c   :  { %v3084_v58 = vsel %vm3083_vm3, %v3082_v39, %v3080_v4  ;;  %v4258_v39 = vld [vmem:[#allocation9 + $0x98] sm:$0xff]   ;;  %v4259_v4 = vld [vmem:[#allocation9 + $0x50] sm:$0xff]   ;;  %vm3896_vm3 = vcmask 982016  }
 0x66d   :  { %v3085_v17 = vpack.c.b16 %v3084_v58, %v3084_v58  ;;  %v4260_v58 = vld [vmem:[#allocation9 + $0xd0] sm:$0xff]  }
 0x66f   :  { %4152 = vmatmul.mubr.msk.bf16.vlgmr.msra.gmra.mxu0 %vm631_vm0, %v3085_v17  ;;  %v4261_v17 = vld [vmem:[#allocation9 + $0x10] sm:$0xff]  }
 0x670   :  { %4092 = vmatpush3.bf16.msra.mxu0 %v4241_v6  ;;  %v7612_v6 = vld [vmem:[#allocation16_spill] sm:$0xff] }
 0x671   :  { %4093 = vmatprep.subr.bf16.mxu0 %v4243_v37 }
 0x674   :  { %4094 = vmatpush3.bf16.msra.mxu0 %v4245_v61 }
 0x675   :  { %4095 = vmatprep.subr.bf16.mxu0 %v4247_v32 }
 0x678   :  { %4096 = vmatpush3.bf16.msra.mxu0 %v4249_v14 }
 0x679   :  { %4097 = vmatprep.subr.bf16.mxu0 %v4251_v16 }
 0x67c   :  { %4098 = vmatpush3.bf16.msra.mxu0 %v4253_v25 }
 0x67d   :  { %4099 = vmatprep.subr.bf16.mxu0 %v4255_v43 }
 0x680   :  { %4100 = vmatpush3.bf16.msra.mxu0 %v4257_v53 }
 0x681   :  { %4101 = vmatprep.subr.bf16.mxu0 %v4259_v4 }
 0x684   :  { %4102 = vmatpush3.bf16.msra.mxu0 %v4261_v17 }
 0x685   :  { %4103 = vmatprep.subr.bf16.mxu0 %v4263_v15 }
 0x72f   :  { %v3135_v36 = vpop.f32.mrf.mxu0 }
 0x730   :  { %v3136_v24 = vadd.f32 %v4046_v40, %v3135_v36  ;;  %v4264_v40 = vld [vmem:[#allocation9 + $0xc8] sm:$0xff]  }
 0x731   :  { %v4153_v48 = vpop.f32.mrf.mxu0  ;;  %v4265_v36 = vld [vmem:[#allocation9 + $0x8] sm:$0xff]  }
 0x732   :  { %v4050_v38 = vmul.f32 -1.442695, %v3136_v24  ;;  %v4267_v48 = vld [vmem:[#allocation9 + $0x40] sm:$0xff]   ;;  %4104 = vmatpush3.bf16.msra.mxu0 %v4265_v36 }
 0x733   :  { %v3138_v46 = vpop.f32.mrf.mxu0  ;;  %4105 = vmatprep.subr.bf16.mxu0 %v4267_v48 }
 0x734   :  { %4275 = vpow2.f32 %v4050_v38  ;;  %v4268_v38 = vld [vmem:[#allocation9 + $0xc0] sm:$0xff]  }
 0x735   :  { %v4154_v33 = vpop.f32.mrf.mxu0  ;;  %v4269_v46 = vld [vmem:[#allocation9] sm:$0xff]  }
 0x736   :  { %v4270_v33 = vld [vmem:[#allocation9 + $0x80] sm:$0xff]   ;;  %4106 = vmatpush3.bf16.msra.mxu0 %v4269_v46 }
 0x741   :  { %v4276_v44 = vpop.eup %4275 }
 0x742   :  { %v3144_v5 = vadd.f32 1.0, %v4276_v44  ;;  %v4435_v44 = vmov 1966171168  }
 0x744   :  { %4277 = vrcp.f32 %v3144_v5  ;;  %v3227_v5 = vunpack.c.l.s4 %v4435_v44 }
 0x751   :  { %v4278_v51 = vpop.eup %4277 }
 0x752   :  { %v3147_v10 = vmul.f32 %v4278_v51, %v3136_v24  ;;  %v4266_v24 = vld [vmem:[#allocation9 + $0x88] sm:$0xff]  }
 0x754   :  { %v3148_v28 = vpack.c.bf16 %v3147_v10, %v3147_v10  ;;  %v3228_v10 = vunpack.c.0.s8 %v3227_v5 }
 0x756   :  { %4158 = vmatmul.mubr.msk.bf16.vlgmr.msra.gmra.mxu1 %vm3157_vm5, %v3148_v28 }
 0x757   :  { %4120 = vmatpush3.bf16.msra.mxu1 %v4242_v31  ;;  %v3231_v31 = vsub.s32 %v3228_v10, %v7612_v6 }
 0x758   :  { %4121 = vmatprep.subr.bf16.mxu1 %v4244_v41 }
 0x75b   :  { %4122 = vmatpush3.bf16.msra.mxu1 %v4246_v27 }
 0x75c   :  { %4123 = vmatprep.subr.bf16.mxu1 %v4248_v13 }
 0x75f   :  { %4124 = vmatpush3.bf16.msra.mxu1 %v4250_v18 }
 0x760   :  { %4125 = vmatprep.subr.bf16.mxu1 %v4252_v49 }
 0x763   :  { %4126 = vmatpush3.bf16.msra.mxu1 %v4254_v19 }
 0x764   :  { %4127 = vmatprep.subr.bf16.mxu1 %v4256_v12 }
 0x767   :  { %4128 = vmatpush3.bf16.msra.mxu1 %v4258_v39 }
 0x768   :  { %4129 = vmatprep.subr.bf16.mxu1 %v4260_v58 }
 0x76b   :  { %4130 = vmatpush3.bf16.msra.mxu1 %v4262_v50 }
 0x76c   :  { %4131 = vmatprep.subr.bf16.mxu1 %v4264_v40 }
 0x76f   :  { %4132 = vmatpush3.bf16.msra.mxu1 %v4266_v24 }
 0x770   :  { %4133 = vmatprep.subr.bf16.mxu1 %v4268_v38 }
 0x773   :  { %4134 = vmatpush3.bf16.msra.mxu1 %v4270_v33 }
 0x816   :  { %v3199_v20 = vpop.f32.mrf.mxu1 }
 0x817   :  { %v3200_v30 = vadd.f32 %v4051_v63, %v3199_v20  ;;  %v7613_v63 = vld [vmem:[#allocation17_spill] sm:$0xff] }
 0x818   :  { %v4159_v22 = vpop.f32.mrf.mxu1 }
 0x819   :  { %v4053_v0 = vmul.f32 -1.442695, %v3200_v30  ;;  %v7614_v30 = vld [vmem:[#allocation36_spill] sm:$0xff] }
 0x81a   :  { %v3202_v3 = vpop.f32.mrf.mxu1 }
 0x81b   :  { %4279 = vpow2.f32 %v4053_v0  ;;  %v7615_v3 = vld [vmem:[#allocation18_spill] sm:$0xff] }
 0x81c   :  { %v4160_v54 = vpop.f32.mrf.mxu1 }
 0x828   :  { %v4280_v7 = vpop.eup %4279 }
 0x829   :  { %v3208_v1 = vadd.f32 1.0, %v4280_v7 }
 0x82b   :  { %4281 = vrcp.f32 %v3208_v1 }
 0x838   :  { %v4282_v35 = vpop.eup %4281 }
 0x839   :  { %3215 = vrot.lane.b32.xlu1 %v4282_v35, %s4429_s20  ;;  %3212 = vrot.lane.b32.xlu0 %v4282_v35, %s4427_s30 }
 0x83d   :  { %3218 = vrot.lane.b32.xlu0 %v4282_v35, %s4432_s4 }
 0x8ab   :  { %v3213_v51 = vpop.permute.xlu0 %3212  ;;  %v3216_v28 = vpop.permute.xlu1 %3215 }
 0x8ac   :  { %v3221_v8 = vsel %vm631_vm0, %v4282_v35, %v3213_v51 }
 0x8ad   :  { %v3222_v60 = vsel %vm633_vm2, %v3221_v8, %v3216_v28 }
 0x8af   :  { %v3219_v37 = vpop.permute.xlu0 %3218 }
 0x8b0   :  { %v3223_v41 = vsel %vm635_vm1, %v3222_v60, %v3219_v37 }
 0x8b1   :  { %v3225_v61 = vcombine.low %v3223_v41, %v3223_v41 }
 0x8b3   :  { %v3232_v27 = vrot.slane %v3225_v61, %v3231_v31 }
 0x8b5   :  { %v3233_v32 = vcombine.low %v3232_v27, %v3232_v27  ;;  %v3234_v13 = vcombine.high %v3232_v27, %v3232_v27 }
 0x8b7   :  { %v3241_v14 = vrot.slane %v3233_v32, %v3231_v31  ;;  %v3248_v18 = vrot.slane %v3234_v13, %v3231_v31 }
 0x8b9   :  { %v3256_v20 = vrot.slane %v3241_v14, %v7613_v63  ;;  %v3264_v22 = vrot.slane %v3241_v14, %v7614_v30  ;;  %v3252_v0 = vrot.slane %v3241_v14, %v7610_v11  ;;  %v3260_v54 = vrot.slane %v3241_v14, %v7615_v3 }
 0x8ba   :  { %v3272_v7 = vrot.slane %v3248_v18, %v7613_v63  ;;  %v3280_v1 = vrot.slane %v3248_v18, %v7614_v30  ;;  %v3268_v16 = vrot.slane %v3248_v18, %v7610_v11  ;;  %v3276_v49 = vrot.slane %v3248_v18, %v7615_v3 }
 0x8bb   :  { %v3290_v25 = vmul.f32 %v3256_v20, %v6910_v56  ;;  %v3294_v19 = vmul.f32 %v3256_v20, %v6912_v29  ;;  %v3292_v43 = vmul.f32 %v3264_v22, %v6966_v26  ;;  %v3296_v12 = vmul.f32 %v3264_v22, %v6968_v9 }
 0x8bc   :  { %v3289_v53 = vmul.f32 %v3252_v0, %v6902_v55  ;;  %v3293_v35 = vmul.f32 %v3252_v0, %v6904_v21  ;;  %v3291_v39 = vmul.f32 %v3260_v54, %v6930_v42  ;;  %v3295_v4 = vmul.f32 %v3260_v54, %v6932_v57 }
 0x8bd   :  { %v3306_v58 = vpack.c.bf16 %v3294_v19, %v3290_v25  ;;  %v3308_v17 = vpack.c.bf16 %v3296_v12, %v3292_v43  ;;  %v3298_v50 = vmul.f32 %v3272_v7, %v6906_v47  ;;  %v3302_v56 = vmul.f32 %v3272_v7, %v6908_v2 }
 0x8be   :  { %v3305_v15 = vpack.c.bf16 %v3293_v35, %v3289_v53  ;;  %v3307_v29 = vpack.c.bf16 %v3295_v4, %v3291_v39  ;;  %v3300_v26 = vmul.f32 %v3280_v1, %v6962_v62  ;;  %v3304_v9 = vmul.f32 %v3280_v1, %v6964_v59 }
 0x8bf   :  { %3601 = vmatprep.mubr.bf16.mxu0 %v3306_v58  ;;  %3650 = vmatprep.mubr.bf16.mxu1 %v3308_v17  ;;  %v3310_v55 = vpack.c.bf16 %v3302_v56, %v3298_v50  ;;  %v3297_v42 = vmul.f32 %v3268_v16, %v6898_v52  ;;  %v3301_v47 = vmul.f32 %v3268_v16, %v6900_v34 }
 0x8c0   :  { %3602 = vmatmul.mubr.bf16.vlgmr.msra.gmra.mxu0 %v3305_v15  ;;  %3651 = vmatmul.mubr.bf16.vlgmr.msra.gmra.mxu1 %v3307_v29  ;;  %v3312_v21 = vpack.c.bf16 %v3304_v9, %v3300_v26  ;;  %v3299_v2 = vmul.f32 %v3276_v49, %v6926_v45  ;;  %v3303_v57 = vmul.f32 %v3276_v49, %v6928_v23 }
 0x8c1   :  { %3609 = vmatprep.mubr.bf16.mxu0 %v3310_v55  ;;  %v3309_v40 = vpack.c.bf16 %v3301_v47, %v3297_v42 }
 0x8c2   :  { %3658 = vmatprep.mubr.bf16.mxu1 %v3312_v21  ;;  %v3311_v62 = vpack.c.bf16 %v3303_v57, %v3299_v2 }
 0x8c8   :  { %3610 = vmatmul.mubr.bf16.gmra.mxu0 %v3309_v40  ;;  %3659 = vmatmul.mubr.bf16.gmra.mxu1 %v3311_v62 }
 0x980   :  { %v4107_v59 = vpop.f32.mrf.mxu0  ;;  %v4135_v36 = vpop.f32.mrf.mxu1 }
 0x982   :  { %v4108_v24 = vpop.f32.mrf.mxu0  ;;  %v4136_v48 = vpop.f32.mrf.mxu1 }
 0x983   :  { %v4109_v33 = vadd.f32 %v4108_v24, %v4107_v59  ;;  %v4137_v44 = vadd.f32 %v4136_v48, %v4135_v36 }
 0x984   :  { %v4110_v38 = vpop.f32.mrf.mxu0  ;;  %v4138_v46 = vpop.f32.mrf.mxu1 }
 0x985   :  { %v7063_v23 = vadd.f32 %v4137_v44, %v4109_v33 }
 0x986   :  { %v4111_v5 = vpop.f32.mrf.mxu0  ;;  %v4139_v52 = vpop.f32.mrf.mxu1 }
 0x987   :  { %v4112_v51 = vadd.f32 %v4111_v5, %v4110_v38  ;;  %v4140_v34 = vadd.f32 %v4139_v52, %v4138_v46  ;;  %v3737_v32 = vmul.f32 %v7063_v23, %v7063_v23 }
 0x988   :  { %v4113_v10 = vpop.f32.mrf.mxu0  ;;  %v4141_v45 = vpop.f32.mrf.mxu1 }
 0x989   :  { %v7061_v28 = vadd.f32 %v4140_v34, %v4112_v51 }
 0x98a   :  { %v4114_v8 = vpop.f32.mrf.mxu0  ;;  %v4142_v60 = vpop.f32.mrf.mxu1 }
 0x98b   :  { %v4115_v6 = vadd.f32 %v4114_v8, %v4113_v10  ;;  %v4143_v31 = vadd.f32 %v4142_v60, %v4141_v45  ;;  %v3738_v61 = vmul.f32 %v7061_v28, %v7061_v28  ;;  %v3667_v18 = vadd.f32 %v7061_v28, %v7063_v23 }
 0x98c   :  { %v4116_v37 = vpop.f32.mrf.mxu0  ;;  %v4144_v41 = vpop.f32.mrf.mxu1 }
 0x98d   :  { %v7067_v27 = vadd.f32 %v4143_v31, %v4115_v6  ;;  %v3741_v22 = vadd.f32 %v3738_v61, %v3737_v32 }
 0x98e   :  { %v4117_v13 = vpop.f32.mrf.mxu0  ;;  %v4145_v14 = vpop.f32.mrf.mxu1 }
 0x98f   :  { %v3739_v63 = vmul.f32 %v7067_v27, %v7067_v27  ;;  %v4118_v20 = vadd.f32 %v4117_v13, %v4116_v37  ;;  %v4146_v30 = vadd.f32 %v4145_v14, %v4144_v41  ;;  %v3668_v0 = vadd.f32 %v3667_v18, %v7067_v27 }
 0x991   :  { %v7076_v3 = vadd.f32 %v4146_v30, %v4118_v20  ;;  %v3742_v54 = vadd.f32 %v3741_v22, %v3739_v63 }
 0x993   :  { %v3669_v7 = vadd.f32 %v3668_v0, %v7076_v3  ;;  %v3740_v1 = vmul.f32 %v7076_v3, %v7076_v3 }
 0x995   :  { %v3670_v16 = vrot.slane %v3669_v7, 4  ;;  %v3743_v49 = vadd.f32 %v3742_v54, %v3740_v1 }
 0x997   :  { %v3671_v25 = vadd.f32 %v3670_v16, %v3669_v7  ;;  %v3744_v19 = vrot.slane %v3743_v49, 4 }
 0x999   :  { %v3672_v43 = vrot.slane %v3671_v25, 2  ;;  %v3745_v12 = vadd.f32 %v3744_v19, %v3743_v49 }
 0x99b   :  { %v3673_v53 = vadd.f32 %v3672_v43, %v3671_v25  ;;  %v3746_v35 = vrot.slane %v3745_v12, 2 }
 0x99d   :  { %v3674_v39 = vrot.slane %v3673_v53, 1  ;;  %v3747_v4 = vadd.f32 %v3746_v35, %v3745_v12 }
 0x99f   :  { %v3675_v58 = vadd.f32 %v3674_v39, %v3673_v53  ;;  %v3748_v17 = vrot.slane %v3747_v4, 1 }
 0x9a1   :  { %3681 = vrot.lane.b32.xlu0 %v3675_v58, %s4436_s10  ;;  %3677 = vrot.lane.b32.xlu1 %v3675_v58, %s4437_s21  ;;  %v3749_v50 = vadd.f32 %v3748_v17, %v3747_v4 }
 0x9a5   :  { %3685 = vrot.lane.b32.xlu0 %v3675_v58, %s4438_s22  ;;  %3751 = vrot.lane.b32.xlu1 %v3749_v50, %s4437_s21 }
 0x9a9   :  { %3689 = vrot.lane.b32.xlu0 %v3675_v58, %s4432_s4  ;;  %3755 = vrot.lane.b32.xlu1 %v3749_v50, %s4436_s10 }
 0x9ad   :  { %3693 = vrot.lane.b32.xlu0 %v3675_v58, %s4439_s25  ;;  %3759 = vrot.lane.b32.xlu1 %v3749_v50, %s4438_s22 }
 0x9b1   :  { %3697 = vrot.lane.b32.xlu0 %v3675_v58, %s4440_s11  ;;  %3763 = vrot.lane.b32.xlu1 %v3749_v50, %s4432_s4 }
 0x9b5   :  { %3701 = vrot.lane.b32.xlu0 %v3675_v58, %s4441_s26  ;;  %3767 = vrot.lane.b32.xlu1 %v3749_v50, %s4439_s25 }
 0x9b9   :  { %3705 = vrot.lane.b32.xlu0 %v3675_v58, %s4429_s20  ;;  %3771 = vrot.lane.b32.xlu1 %v3749_v50, %s4440_s11 }
 0x9bd   :  { %3709 = vrot.lane.b32.xlu0 %v3675_v58, %s4442_s1  ;;  %3775 = vrot.lane.b32.xlu1 %v3749_v50, %s4441_s26 }
 0x9c1   :  { %3713 = vrot.lane.b32.xlu0 %v3675_v58, %s4443_s27  ;;  %3779 = vrot.lane.b32.xlu1 %v3749_v50, %s4429_s20 }
 0x9c5   :  { %3717 = vrot.lane.b32.xlu0 %v3675_v58, %s4444_s2  ;;  %3783 = vrot.lane.b32.xlu1 %v3749_v50, %s4442_s1 }
 0x9c9   :  { %3721 = vrot.lane.b32.xlu0 %v3675_v58, %s4427_s30  ;;  %3787 = vrot.lane.b32.xlu1 %v3749_v50, %s4443_s27 }
 0x9cd   :  { %3725 = vrot.lane.b32.xlu0 %v3675_v58, %s4445_s3  ;;  %3791 = vrot.lane.b32.xlu1 %v3749_v50, %s4444_s2 }
 0x9d1   :  { %3729 = vrot.lane.b32.xlu0 %v3675_v58, %s4421_s17  ;;  %3795 = vrot.lane.b32.xlu1 %v3749_v50, %s4427_s30 }
 0x9d5   :  { %3733 = vrot.lane.b32.xlu0 %v3675_v58, %s4424_s24  ;;  %3799 = vrot.lane.b32.xlu1 %v3749_v50, %s4445_s3 }
 0x9d9   :  { %3807 = vrot.lane.b32.xlu0 %v3749_v50, %s4424_s24  ;;  %3803 = vrot.lane.b32.xlu1 %v3749_v50, %s4421_s17 }
 0xa13   :  { %v3682_v56 = vpop.permute.xlu0 %3681  ;;  %v3678_v15 = vpop.permute.xlu1 %3677 }
 0xa14   :  { %v3680_v62 = vadd.f32 %v3678_v15, %v3675_v58 }
 0xa16   :  { %v3684_v24 = vadd.f32 %v3682_v56, %v3680_v62 }
 0xa17   :  { %v3686_v29 = vpop.permute.xlu0 %3685  ;;  %v3752_v26 = vpop.permute.xlu1 %3751 }
 0xa18   :  { %v3688_v46 = vadd.f32 %v3686_v29, %v3684_v24  ;;  %v3754_v33 = vadd.f32 %v3752_v26, %v3749_v50 }
 0xa1b   :  { %v3690_v9 = vpop.permute.xlu0 %3689  ;;  %v3756_v55 = vpop.permute.xlu1 %3755 }
 0xa1c   :  { %v3692_v44 = vadd.f32 %v3690_v9, %v3688_v46  ;;  %v3758_v51 = vadd.f32 %v3756_v55, %v3754_v33 }
 0xa1f   :  { %v3694_v21 = vpop.permute.xlu0 %3693  ;;  %v3760_v42 = vpop.permute.xlu1 %3759 }
 0xa20   :  { %v3696_v34 = vadd.f32 %v3694_v21, %v3692_v44  ;;  %v3762_v10 = vadd.f32 %v3760_v42, %v3758_v51  ;;  %v3811_v21 = vld [vmem:[%s7207_s12] sm:$0x1]  ;;  %s4446_s12 = smov [#allocation11]  }
 0xa23   :  { %v3698_v47 = vpop.permute.xlu0 %3697  ;;  %v3764_v2 = vpop.permute.xlu1 %3763 }
 0xa24   :  { %v3700_v45 = vadd.f32 %v3698_v47, %v3696_v34  ;;  %v3766_v6 = vadd.f32 %v3764_v2, %v3762_v10  ;;  %v3812_v2 = vld [vmem:[%s7208_s13] sm:$0x1]  ;;  %s3996_s13 = sshll.u32 %s4446_s12, 4  ;;  %s3997_s13 = int_to_ptr.vmem [resolvable:$true] %s3996_s13 }
 0xa25   :  { %p4396_p7 = scmp.lt.s32.totalorder %s3997_s13, %s3997_s13 }
 0xa27   :  { %v3702_v57 = vpop.permute.xlu0 %3701  ;;  %v3768_v40 = vpop.permute.xlu1 %3767 }
 0xa28   :  { %v3704_v31 = vadd.f32 %v3702_v57, %v3700_v45  ;;  %v3770_v37 = vadd.f32 %v3768_v40, %v3766_v6 }
 0xa2b   :  { %v3706_v59 = vpop.permute.xlu0 %3705  ;;  %v3772_v36 = vpop.permute.xlu1 %3771 }
 0xa2c   :  { %v3708_v41 = vadd.f32 %v3706_v59, %v3704_v31  ;;  %v3774_v13 = vadd.f32 %v3772_v36, %v3770_v37 }
 0xa2f   :  { %v3710_v48 = vpop.permute.xlu0 %3709  ;;  %v3776_v38 = vpop.permute.xlu1 %3775 }
 0xa30   :  { %v3712_v14 = vadd.f32 %v3710_v48, %v3708_v41  ;;  %v3778_v18 = vadd.f32 %v3776_v38, %v3774_v13 }
 0xa33   :  { %v3714_v5 = vpop.permute.xlu0 %3713  ;;  %v3780_v52 = vpop.permute.xlu1 %3779 }
 0xa34   :  { %v3716_v63 = vadd.f32 %v3714_v5, %v3712_v14  ;;  %v3782_v22 = vadd.f32 %v3780_v52, %v3778_v18 }
 0xa37   :  { %v3718_v8 = vpop.permute.xlu0 %3717  ;;  %v3784_v60 = vpop.permute.xlu1 %3783 }
 0xa38   :  { %v3720_v0 = vadd.f32 %v3718_v8, %v3716_v63  ;;  %v3786_v54 = vadd.f32 %v3784_v60, %v3782_v22 }
 0xa3b   :  { %v3722_v61 = vpop.permute.xlu0 %3721  ;;  %v3788_v32 = vpop.permute.xlu1 %3787 }
 0xa3c   :  { %v3724_v7 = vadd.f32 %v3722_v61, %v3720_v0  ;;  %v3790_v49 = vadd.f32 %v3788_v32, %v3786_v54 }
 0xa3f   :  { %v3726_v20 = vpop.permute.xlu0 %3725  ;;  %v3792_v30 = vpop.permute.xlu1 %3791 }
 0xa40   :  { %v3728_v25 = vadd.f32 %v3726_v20, %v3724_v7  ;;  %v3794_v19 = vadd.f32 %v3792_v30, %v3790_v49 }
 0xa43   :  { %v3730_v1 = vpop.permute.xlu0 %3729  ;;  %v3796_v16 = vpop.permute.xlu1 %3795 }
 0xa44   :  { %v3732_v43 = vadd.f32 %v3730_v1, %v3728_v25  ;;  %v3798_v35 = vadd.f32 %v3796_v16, %v3794_v19 }
 0xa47   :  { %v3734_v12 = vpop.permute.xlu0 %3733  ;;  %v3800_v53 = vpop.permute.xlu1 %3799 }
 0xa48   :  { %v3736_v39 = vadd.f32 %v3734_v12, %v3732_v43  ;;  %v3802_v4 = vadd.f32 %v3800_v53, %v3798_v35 }
 0xa4a   :  { %v3813_v17 = vmul.f32 0.001953125, %v3736_v39 }
 0xa4b   :  { %v3804_v58 = vpop.permute.xlu1 %3803  ;;  %v3808_v56 = vpop.permute.xlu0 %3807 }
 0xa4c   :  { %v3806_v50 = vadd.f32 %v3804_v58, %v3802_v4  ;;  %v3815_v29 = vmul.f32 %v3813_v17, %v3813_v17 }
 0xa4e   :  { %v3810_v15 = vadd.f32 %v3808_v56, %v3806_v50 }
 0xa50   :  { %v3814_v26 = vmul.f32 0.001953125, %v3810_v15 }
 0xa52   :  { %v3816_v9 = vsub.f32 %v3814_v26, %v3815_v29 }
 0xa54   :  { %v3817_v55 = vadd.f32 1e-05, %v3816_v9 }
 0xa56   :  { %4283 = vrsqrt.f32 %v3817_v55 }
 0xa63   :  { %v4284_v42 = vpop.eup %4283 }
 0xa64   :  { %v3819_v47 = vmul.f32 %v4284_v42, %v3811_v21 }
 0xa66   :  { %v3820_v57 = vmul.f32 %v3819_v47, %v3813_v17  ;;  %v3826_v40 = vrot.slane %v3819_v47, %v7610_v11 }
 0xa68   :  { %v7118_v62 = vsub.f32 %v3812_v2, %v3820_v57  ;;  %3830 = vrot.lane.b32.xlu0 %v3826_v40, %s4421_s17  ;;  %3827 = vrot.lane.b32.xlu1 %v3826_v40, %s4424_s24 }
 0xa6a   :  { %v3902_v59 = vrot.slane %v7118_v62, %v7610_v11 }
 0xa6c   :  { %3833 = vrot.lane.b32.xlu1 %v3826_v40, %s4445_s3  ;;  %3903 = vrot.lane.b32.xlu0 %v3902_v59, %s4424_s24 }
 0xa70   :  { %3836 = vrot.lane.b32.xlu1 %v3826_v40, %s4427_s30  ;;  %3906 = vrot.lane.b32.xlu0 %v3902_v59, %s4421_s17  ;;  %s4391_s17 = scalar_lea.vmem %s3997_s13, 512 }
 0xa71   :  { %p4392_p6 = scmp.ne.s32.totalorder %s3997_s13, %s4391_s17  ;;  %p4397_p8 = scmp.lt.s32.totalorder %s4391_s17, %s4391_s17 }
 0xa73   :  { %p4398_p9 = por %p4397_p8, %p4396_p7 }
 0xa74   :  { %3839 = vrot.lane.b32.xlu1 %v3826_v40, %s4444_s2  ;;  %3909 = vrot.lane.b32.xlu0 %v3902_v59, %s4445_s3 }
 0xa75   :  { %p4399_p10 = pnand %p4398_p9, %p4392_p6 }
 0xa78   :  { %3842 = vrot.lane.b32.xlu1 %v3826_v40, %s4443_s27  ;;  %3912 = vrot.lane.b32.xlu0 %v3902_v59, %s4427_s30 }
 0xa7c   :  { %3845 = vrot.lane.b32.xlu1 %v3826_v40, %s4442_s1  ;;  %3915 = vrot.lane.b32.xlu0 %v3902_v59, %s4444_s2 }
 0xa80   :  { %3848 = vrot.lane.b32.xlu1 %v3826_v40, %s4429_s20  ;;  %3918 = vrot.lane.b32.xlu0 %v3902_v59, %s4443_s27 }
 0xa84   :  { %3851 = vrot.lane.b32.xlu1 %v3826_v40, %s4441_s26  ;;  %3921 = vrot.lane.b32.xlu0 %v3902_v59, %s4442_s1 }
 0xa88   :  { %3854 = vrot.lane.b32.xlu1 %v3826_v40, %s4440_s11  ;;  %3924 = vrot.lane.b32.xlu0 %v3902_v59, %s4429_s20 }
 0xa8c   :  { %3857 = vrot.lane.b32.xlu1 %v3826_v40, %s4439_s25  ;;  %3927 = vrot.lane.b32.xlu0 %v3902_v59, %s4441_s26 }
 0xa90   :  { %3860 = vrot.lane.b32.xlu1 %v3826_v40, %s4432_s4  ;;  %3930 = vrot.lane.b32.xlu0 %v3902_v59, %s4440_s11 }
 0xa94   :  { %3863 = vrot.lane.b32.xlu1 %v3826_v40, %s4438_s22  ;;  %3933 = vrot.lane.b32.xlu0 %v3902_v59, %s4439_s25 }
 0xa98   :  { %3866 = vrot.lane.b32.xlu1 %v3826_v40, %s4436_s10  ;;  %3936 = vrot.lane.b32.xlu0 %v3902_v59, %s4432_s4 }
 0xa9c   :  { %3869 = vrot.lane.b32.xlu1 %v3826_v40, %s4437_s21  ;;  %3939 = vrot.lane.b32.xlu0 %v3902_v59, %s4438_s22 }
 0xaa0   :  { %3942 = vrot.lane.b32.xlu1 %v3902_v59, %s4436_s10  ;;  %3945 = vrot.lane.b32.xlu0 %v3902_v59, %s4437_s21 }
 0xada   :  { %v3831_v36 = vpop.permute.xlu0 %3830  ;;  %v3828_v24 = vpop.permute.xlu1 %3827 }
 0xadb   :  { %v3872_v32 = vsel %vm3157_vm5, %v3819_v47, %v3828_v24 }
 0xadc   :  { %v3874_v13 = vsel %vm3873_vm6, %v3872_v32, %v3831_v36 }
 0xade   :  { %v3834_v48 = vpop.permute.xlu1 %3833  ;;  %v3904_v38 = vpop.permute.xlu0 %3903 }
 0xadf   :  { %v3876_v63 = vsel %vm3875_vm7, %v3874_v13, %v3834_v48  ;;  %v3948_v22 = vsel %vm3157_vm5, %v7118_v62, %v3904_v38 }
 0xae2   :  { %v3837_v46 = vpop.permute.xlu1 %3836  ;;  %v3907_v33 = vpop.permute.xlu0 %3906 }
 0xae3   :  { %v3877_v20 = vsel %vm631_vm0, %v3876_v63, %v3837_v46  ;;  %v3949_v1 = vsel %vm3873_vm6, %v3948_v22, %v3907_v33 }
 0xae6   :  { %v3840_v44 = vpop.permute.xlu1 %3839  ;;  %v3910_v5 = vpop.permute.xlu0 %3909 }
 0xae7   :  { %v3879_v30 = vsel %vm3878_vm8, %v3877_v20, %v3840_v44  ;;  %v3950_v49 = vsel %vm3875_vm7, %v3949_v1, %v3910_v5  ;;  %v3979_v5 = vld [vmem:[#allocation3] sm:$0xff] }
 0xaea   :  { %v3843_v52 = vpop.permute.xlu1 %3842  ;;  %v3913_v51 = vpop.permute.xlu0 %3912 }
 0xaeb   :  { %v3881_v0 = vsel %vm3880_vm9, %v3879_v30, %v3843_v52  ;;  %v3951_v19 = vsel %vm631_vm0, %v3950_v49, %v3913_v51  ;;  %v3980_v52 = vld [vmem:[#allocation3 + $0x8] sm:$0xff]  ;;  %v3981_v51 = vld [vmem:[#allocation3 + $0x10] sm:$0xff] }
 0xaee   :  { %v3846_v34 = vpop.permute.xlu1 %3845  ;;  %v3916_v10 = vpop.permute.xlu0 %3915 }
 0xaef   :  { %v3883_v16 = vsel %vm3882_vm10, %v3881_v0, %v3846_v34  ;;  %v3952_v12 = vsel %vm3878_vm8, %v3951_v19, %v3916_v10  ;;  %v3982_v34 = vld [vmem:[#allocation3 + $0x18] sm:$0xff] }
 0xaf2   :  { %v3849_v45 = vpop.permute.xlu1 %3848  ;;  %v3919_v8 = vpop.permute.xlu0 %3918 }
 0xaf3   :  { %v3884_v25 = vsel %vm633_vm2, %v3883_v16, %v3849_v45  ;;  %v3953_v4 = vsel %vm3880_vm9, %v3952_v12, %v3919_v8 }
 0xaf6   :  { %v3852_v60 = vpop.permute.xlu1 %3851  ;;  %v3922_v6 = vpop.permute.xlu0 %3921 }
 0xaf7   :  { %v3886_v43 = vsel %vm3885_vm11, %v3884_v25, %v3852_v60  ;;  %v3954_v17 = vsel %vm3882_vm10, %v3953_v4, %v3922_v6 }
 0xafa   :  { %v3855_v31 = vpop.permute.xlu1 %3854  ;;  %v3925_v37 = vpop.permute.xlu0 %3924 }
 0xafb   :  { %v3888_v53 = vsel %vm3887_vm12, %v3886_v43, %v3855_v31  ;;  %v3955_v56 = vsel %vm633_vm2, %v3954_v17, %v3925_v37 }
 0xafe   :  { %v3858_v41 = vpop.permute.xlu1 %3857  ;;  %v3928_v61 = vpop.permute.xlu0 %3927 }
 0xaff   :  { %v3890_v58 = vsel %vm3889_vm13, %v3888_v53, %v3858_v41  ;;  %v3956_v29 = vsel %vm3885_vm11, %v3955_v56, %v3928_v61 }
 0xb02   :  { %v3861_v14 = vpop.permute.xlu1 %3860  ;;  %v3931_v18 = vpop.permute.xlu0 %3930 }
 0xb03   :  { %v3891_v50 = vsel %vm635_vm1, %v3890_v58, %v3861_v14  ;;  %v3957_v21 = vsel %vm3887_vm12, %v3956_v29, %v3931_v18 }
 0xb06   :  { %v3864_v54 = vpop.permute.xlu1 %3863  ;;  %v3934_v7 = vpop.permute.xlu0 %3933 }
 0xb07   :  { %v3893_v15 = vsel %vm3892_vm14, %v3891_v50, %v3864_v54  ;;  %v3958_v47 = vsel %vm3889_vm13, %v3957_v21, %v3934_v7 }
 0xb0a   :  { %v3867_v35 = vpop.permute.xlu1 %3866  ;;  %v3937_v39 = vpop.permute.xlu0 %3936 }
 0xb0b   :  { %v3895_v26 = vsel %vm3894_vm15, %v3893_v15, %v3867_v35  ;;  %v3959_v57 = vsel %vm635_vm1, %v3958_v47, %v3937_v39 }
 0xb0e   :  { %v3870_v9 = vpop.permute.xlu1 %3869  ;;  %v3940_v55 = vpop.permute.xlu0 %3939 }
 0xb0f   :  { %v3897_v42 = vsel %vm3896_vm3, %v3895_v26, %v3870_v9  ;;  %v3960_v40 = vsel %vm3892_vm14, %v3959_v57, %v3940_v55 }
 0xb10   :  { %v3966_v2 = vrot.slane %v3897_v42, %v7610_v11 }
 0xb12   :  { %v3943_v62 = vpop.permute.xlu1 %3942  ;;  %v3946_v59 = vpop.permute.xlu0 %3945  ;;  %v3967_v24 = vmul.f32 %v3966_v2, %v7063_v23  ;;  %v3968_v38 = vmul.f32 %v3966_v2, %v7061_v28  ;;  %v3969_v46 = vmul.f32 %v3966_v2, %v7067_v27  ;;  %v3970_v33 = vmul.f32 %v3966_v2, %v7076_v3 }
 0xb13   :  { %v3961_v36 = vsel %vm3894_vm15, %v3960_v40, %v3943_v62 }
 0xb14   :  { %v3962_v48 = vsel %vm3896_vm3, %v3961_v36, %v3946_v59 }
 0xb15   :  { %v3974_v44 = vrot.slane %v3962_v48, %v7610_v11 }
 0xb17   :  { %v3975_v10 = vadd.f32 %v3974_v44, %v3967_v24  ;;  %v3976_v45 = vadd.f32 %v3974_v44, %v3968_v38  ;;  %v3977_v8 = vadd.f32 %v3974_v44, %v3969_v46  ;;  %v3978_v23 = vadd.f32 %v3974_v44, %v3970_v33 }
 0xb19   :  { %v3983_v60 = vadd.f32 %v3979_v5, %v3975_v10  ;;  %v3984_v6 = vadd.f32 %v3980_v52, %v3976_v45  ;;  %v3985_v31 = vadd.f32 %v3981_v51, %v3977_v8  ;;  %v3986_v28 = vadd.f32 %v3982_v34, %v3978_v23 }
 0xb1b   :  { %3987 = vst [vmem:[#allocation11] sm:$0xff] %v3983_v60  ;;  %3988 = vst [vmem:[#allocation11 + $0x8] sm:$0xff] %v3984_v6 }
 0xb1c   :  { %3989 = vst [vmem:[#allocation11 + $0x10] sm:$0xff] %v3985_v31  ;;  %3990 = vst [vmem:[#allocation11 + $0x18] sm:$0xff] %v3986_v28 }
 0xb1d   :  { %4402 = shalt.err (!%p4399_p10)
}
 0xb1e   :  { %4002 = dma.vmem_to_hbm [thread:$0]  %s3997_s13, 512, %s7209_s14, [#allocation5], %s4423_s23, %s4423_s23, %s4424_s24  }
 0xb1f   :  { %4417 = dma.done.wait [#allocation5], 512  }
 0xb20   :  { %4418 = vsyncadd [#allocation5], 4294966784 }
 0xb21   :  { %4006 = vsyncpa [#allocation4], 1 }
 0xb22   :  { %4007 = vsyncpa [#allocation7], 1 }
 0xb23   :  { %4008 = vsyncpa [#allocation10], 1 }
 0xb24   :  { %4009 = vsyncpa [#allocation5], 1 }

</bundles_post_ra>
